<compile_context>
chip_gen: v6e
topology: v6e:2x2x1
jax: 0.10.0
libtpu: 0.0.40
codegen_flags: <defaults>
</compile_context>

<pallas_src>
import functools

import jax
import jax.numpy as jnp
from jax.experimental import pallas as pl
from jax.experimental.pallas import tpu as pltpu

_LANE = 128  # TPU vreg lane width


def _round_up(n, m):
    return ((n + m - 1) // m) * m


def _sublane(dtype):
    return {4: 8, 2: 16, 1: 32}.get(jnp.dtype(dtype).itemsize, 8)


def _tpu_info():
    try:
        return pltpu.get_tpu_info()
    except Exception:
        return None


def _tpu_vmem_bytes(info):
    v = getattr(info, "vmem_capacity_bytes", None) if info is not None else None
    # v5e/v6e report 128 MiB, v7x 64 MiB; fall back conservatively-large so the
    # limit is still clamped by `needed` below.
    return int(v) if v else (128 << 20)


def _tpu_num_cores(info):
    if info is not None:
        for name in ("num_cores", "num_tensorcores", "tensorcores_per_chip",
                     "cores_per_chip", "core_count"):
            v = getattr(info, name, None)
            if isinstance(v, int) and v > 0:
                return v
    # Unknown: assume 2 (v7x megacore).  Extra grid steps on 1-core chips cost
    # only ~0.35 us each, so over-splitting is harmless at these tile sizes.
    return 2


def _pick_block_rows(batch, dtype, d_io, widest, resident_param_bytes,
                     vmem_bytes, num_cores):
    """Row-tile choice:
      * start from a roofline-friendly dtype target (~512 rows f32 / 1024 bf16),
      * cap so 2x-buffered x/out tiles + f32 intermediates + single-buffered
        resident params fit in ~60% of this generation's VMEM,
      * cap so the grid has >= 2 steps per TensorCore (pipelining survives
        megacore sharding on v7x),
      * keep it a sublane-tile multiple; the wrapper zero-pads the batch.
    """
    sub = _sublane(dtype)
    itemsize = jnp.dtype(dtype).itemsize
    block_rows = {8: 512, 16: 1024, 32: 2048}[sub]

    # VMEM-budget cap: per-row bytes = double-buffered x tile + out tile,
    # plus two f32 intermediate activations of the widest layer.
    per_row = 2 * 2 * d_io * itemsize + 2 * widest * 4
    budget = int(0.6 * vmem_bytes) - resident_param_bytes
    if budget > 0 and per_row > 0:
        block_rows = min(block_rows, max(sub, (budget // per_row) // sub * sub))

    # >= 2 grid steps per TensorCore when the batch allows it.
    min_steps = max(2, 2 * num_cores)
    steps_cap = max(sub, _round_up(-(-batch // min_steps), sub))
    block_rows = min(block_rows, steps_cap)
    return max(sub, block_rows)


def _pad_lane_dense(x, weights, biases, lane=_LANE):
    """Zero-pad EVERY feature dim (input, hidden, output) up to lane multiples
    so activations, MXU K/N tiles and the output stores are lane-dense.
    Exact: padded x columns are zero so the matching padded W0 rows contribute
    nothing; padded W columns + zero bias give zero pre-activations which ReLU
    keeps at zero; padded output columns come out exactly zero and are sliced
    off in the wrapper."""
    # TODO(synk): on v6e/v7x bf16, consider rounding to 256 multiples (2x256^2
    # MXU) when already padding past a 128 boundary; needs a sweep.
    ws, bs = list(weights), list(biases)
    d_in = x.shape[1]
    pad_in = _round_up(d_in, lane) - d_in
    if pad_in:
        x = jnp.pad(x, ((0, 0), (0, pad_in)))
        ws[0] = jnp.pad(ws[0], ((0, pad_in), (0, 0)))
    for i in range(len(ws)):
        out_u = ws[i].shape[1]
        pad = _round_up(out_u, lane) - out_u
        if pad:
            ws[i] = jnp.pad(ws[i], ((0, 0), (0, pad)))
            bs[i] = jnp.pad(bs[i], ((0, 0), (0, pad)))
            if i + 1 < len(ws):
                ws[i + 1] = jnp.pad(ws[i + 1], ((0, pad), (0, 0)))
    return x, ws, bs


def _residual_mlp_kernel(n_layers, operand_dtype, x_ref, *rest):
    # rest = (w0, b0, w1, b1, ..., out_ref)
    out_ref = rest[-1]
    param_refs = rest[:-1]

    # MXU operands stay in operand_dtype (bf16 x bf16 -> f32 is the native MXU
    # path); only the accumulator / bias add / residual are f32.
    h = x_ref[...].astype(operand_dtype)
    for i in range(n_layers):
        w = param_refs[2 * i][...]
        b = param_refs[2 * i + 1][...].astype(jnp.float32)
        h = jnp.dot(h, w, preferred_element_type=jnp.float32) + b
        if i < n_layers - 1:
            # hidden ReLU; back to operand dtype for the next MXU matmul
            h = jnp.maximum(h, 0.0).astype(operand_dtype)
    # Residual + final ReLU.  Re-read x from VMEM at the point of use instead
    # of holding a live copy across every layer (lower vreg pressure/spills).
    out = jnp.maximum(x_ref[...].astype(jnp.float32) + h, 0.0)
    out_ref[...] = out.astype(out_ref.dtype)


def residual_multiple_layer(x, weights, biases, *, block_rows=None,
                            cast_to_bf16=False):
    """Pallas implementation of ResidulMultipleLayer.forward.

    x:        (B, units[0])
    weights:  list of (in_i, out_i) arrays (pre-transposed vs. PyTorch (out, in))
    biases:   list of (out_i,) or (1, out_i) arrays
    cast_to_bf16: opt-in — cast f32 matmul operands/weights to bf16 for the
      native MXU path (f32 accumulation kept); rounds operands to bf16.
    """
    n_layers = len(weights)
    assert n_layers >= 1
    B, D_in = x.shape
    D_out = weights[-1].shape[1]
    assert D_in == D_out, "residual connection requires units[0] == units[-1]"
    biases = [b.reshape(1, -1) for b in biases]

    operand_dtype = x.dtype
    if cast_to_bf16 and x.dtype == jnp.float32:
        weights = [w.astype(jnp.bfloat16) for w in weights]
        operand_dtype = jnp.bfloat16

    # Lane-dense feature widths everywhere (exact, folded into the params).
    xp, weights, biases = _pad_lane_dense(x, weights, biases)
    D_pad = xp.shape[1]

    params = []
    for w, b in zip(weights, biases):
        params.extend([w, b])
    param_bytes = sum(int(p.size) * p.dtype.itemsize for p in params)
    widest = max(w.shape[1] for w in weights)

    info = _tpu_info()
    vmem_bytes = _tpu_vmem_bytes(info)
    num_cores = _tpu_num_cores(info)

    if block_rows is None:
        block_rows = _pick_block_rows(B, x.dtype, D_pad, widest, param_bytes,
                                      vmem_bytes, num_cores)
    assert block_rows % 8 == 0, "block_rows must be a multiple of 8 (sublane)"

    # Ragged batch: pad rows (exact — sliced off below) so the grid keeps
    # multiple pipelined steps instead of one huge unpipelined block.
    B_pad = _round_up(B, block_rows)
    if B_pad != B:
        xp = jnp.pad(xp, ((0, B_pad - B), (0, 0)))
    grid = (B_pad // block_rows,)

    # TODO(synk): when single-buffered resident params exceed ~1/3 of this
    # generation's VMEM budget (wide layers on v7x), switch to a K/N reduction
    # grid axis marked 'arbitrary' with an f32 accumulator + pl.when
    # init/finalize so weights stream per K-block instead of staying resident.
    def _make_specs(single_buffer_params):
        in_specs = [pl.BlockSpec((block_rows, D_pad), lambda i: (i, 0))]
        for w, b in zip(weights, biases):
            if single_buffer_params:
                # Grid-invariant operands: constant index_map => fetched once;
                # Buffered(1) drops the default double-buffer so resident
                # weights cost 1x VMEM (biggest lever on v7x's 64 MiB).
                in_specs.append(pl.BlockSpec(w.shape, lambda i: (0, 0),
                                             pipeline_mode=pl.Buffered(1)))
                in_specs.append(pl.BlockSpec(b.shape, lambda i: (0, 0),
                                             pipeline_mode=pl.Buffered(1)))
            else:
                in_specs.append(pl.BlockSpec(w.shape, lambda i: (0, 0)))
                in_specs.append(pl.BlockSpec(b.shape, lambda i: (0, 0)))
        out_spec = pl.BlockSpec((block_rows, D_pad), lambda i: (i, 0))
        return in_specs, out_spec
    # TODO(synk): on v5e with narrow layers (HBM-streaming-bound), bump the x
    # spec to pipeline_mode=pl.Buffered(3) when VMEM headroom allows.

    # Generation-aware VMEM limit: actual footprint (+ headroom), capped at
    # ~75% of this generation's physical VMEM (48 MiB on v7x, 96 MiB v5e/v6e).
    itemsize = jnp.dtype(x.dtype).itemsize
    io_block_bytes = 2 * block_rows * D_pad * itemsize           # x + out tile
    act_bytes = 2 * block_rows * widest * 4                      # f32 intermediates
    # conservative 2x on params in case the single-buffer path falls back
    needed = 2 * io_block_bytes + 2 * param_bytes + act_bytes
    vmem_limit_bytes = int(min(max(needed + (8 << 20), 32 << 20),
                               int(0.75 * vmem_bytes)))

    # Advisory cost so XLA schedules/overlaps the custom call sensibly.
    flops = 2 * B_pad * sum(w.shape[0] * w.shape[1] for w in weights)
    bytes_accessed = int((xp.size + B_pad * D_pad) * itemsize + param_bytes)
    cost = pl.CostEstimate(flops=flops, transcendentals=0,
                           bytes_accessed=bytes_accessed)

    kernel = functools.partial(_residual_mlp_kernel, n_layers, operand_dtype)

    def _call(single_buffer_params):
        in_specs, out_spec = _make_specs(single_buffer_params)
        return pl.pallas_call(
            kernel,
            out_shape=jax.ShapeDtypeStruct((B_pad, D_pad), x.dtype),
            grid_spec=pltpu.PrefetchScalarGridSpec(
                num_scalar_prefetch=0,
                grid=grid,
                in_specs=in_specs,
                out_specs=out_spec,
            ),
            compiler_params=pltpu.CompilerParams(
                dimension_semantics=("parallel",),
                vmem_limit_bytes=vmem_limit_bytes,
            ),
            cost_estimate=cost,
        )(xp, *params)

    try:
        out = _call(single_buffer_params=True)
    except Exception:
        # pipeline_mode=pl.Buffered(1) not supported on this jax/Mosaic build;
        # fall back to default double-buffered specs (correctness identical).
        out = _call(single_buffer_params=False)

    if B_pad != B or D_pad != D_out:
        out = out[:B, :D_out]
    return out


def init_params(key, units, dtype=jnp.float32):
    """Deterministic init mimicking PyTorch nn.Linear (uniform +-1/sqrt(fan_in))."""
    weights, biases = [], []
    for in_u, out_u in zip(units[:-1], units[1:]):
        key, kw, kb = jax.random.split(key, 3)
        bound = 1.0 / float(in_u) ** 0.5
        w = jax.random.uniform(kw, (in_u, out_u), jnp.float32, -bound, bound)
        b = jax.random.uniform(kb, (1, out_u), jnp.float32, -bound, bound)
        weights.append(w.astype(dtype))   # stored already transposed: (in, out)
        biases.append(b.astype(dtype))
    return weights, biases


def reference_forward(x, weights, biases):
    # f32 reference of the PyTorch module forward
    h = x.astype(jnp.float32)
    x32 = h
    n = len(weights)
    for i, (w, b) in enumerate(zip(weights, biases)):
        h = h @ w.astype(jnp.float32) + b.reshape(1, -1).astype(jnp.float32)
        if i < n - 1:
            h = jnp.maximum(h, 0.0)
    return jnp.maximum(x32 + h, 0.0)


if __name__ == "__main__":
    key = jax.random.PRNGKey(0)

    # Case 1: module-default units=[512, 256, 512] (lane-dense), f32.
    units = [512, 256, 512]
    batch = 256
    key, kx, kp = jax.random.split(key, 3)
    x = jax.random.normal(kx, (batch, units[0]), jnp.float32)
    weights, biases = init_params(kp, units, jnp.float32)
    out = jax.block_until_ready(residual_multiple_layer(x, weights, biases))
    ref = reference_forward(x, weights, biases)
    assert out.shape == (batch, units[-1])
    assert jnp.allclose(out, ref, atol=1e-4, rtol=1e-4), "f32 mismatch vs reference"

    # Case 2: ragged everything — I/O width 96, hidden 40/72, batch 50 —
    # exercises lane padding of input/hidden/output dims and batch padding.
    units2 = [96, 40, 72, 96]
    batch2 = 50
    key, kx2, kp2 = jax.random.split(key, 3)
    x2 = jax.random.normal(kx2, (batch2, units2[0]), jnp.float32)
    w2, b2 = init_params(kp2, units2, jnp.float32)
    out2 = jax.block_until_ready(residual_multiple_layer(x2, w2, b2))
    ref2 = reference_forward(x2, w2, b2)
    assert out2.shape == (batch2, units2[-1])
    assert jnp.allclose(out2, ref2, atol=1e-4, rtol=1e-4), "ragged-case mismatch"

    # Case 3: native bf16 operands take the MXU bf16xbf16->f32 path.
    units3 = [256, 128, 256]
    batch3 = 128
    key, kx3, kp3 = jax.random.split(key, 3)
    x3 = jax.random.normal(kx3, (batch3, units3[0]), jnp.bfloat16)
    w3, b3 = init_params(kp3, units3, jnp.bfloat16)
    out3 = jax.block_until_ready(residual_multiple_layer(x3, w3, b3))
    ref3 = reference_forward(x3, w3, b3)
    assert out3.dtype == jnp.bfloat16
    err3 = jnp.max(jnp.abs(out3.astype(jnp.float32) - ref3))
    assert bool(err3 < 0.1), f"bf16 path error too large: {err3}"

    # Case 4: opt-in bf16 operand cast on f32 inputs (f32 accumulation kept).
    out4 = jax.block_until_ready(
        residual_multiple_layer(x, weights, biases, cast_to_bf16=True))
    err4 = jnp.max(jnp.abs(out4 - ref))
    assert out4.dtype == jnp.float32
    assert bool(err4 < 0.1), f"cast_to_bf16 path error too large: {err4}"

    print("KERNEL_OK")
</pallas_src>

<mosaic_0001>
module attributes {stable_mosaic.version = 11 : i64} {
  func.func @_residual_mlp_kernel(%arg0: i32, %arg1: memref<64x512xf32, #tpu.memory_space<vmem>>, %arg2: memref<512x256xf32, #tpu.memory_space<vmem>>, %arg3: memref<1x256xf32, #tpu.memory_space<vmem>>, %arg4: memref<256x512xf32, #tpu.memory_space<vmem>>, %arg5: memref<1x512xf32, #tpu.memory_space<vmem>>, %arg6: memref<64x512xf32, #tpu.memory_space<vmem>>) attributes {dimension_semantics = [#tpu.dimension_semantics<parallel>], iteration_bounds = array<i64: 4>, scalar_prefetch = 0 : i64, scratch_operands = 0 : i64, tpu.core_type = #tpu.core_type<tc>, window_params = [{transform_indices = @transform_0, window_bounds = array<i64: 64, 512>}, {pipeline_mode = #tpu.pipeline_mode<synchronous>, transform_indices = @transform_1, window_bounds = array<i64: 512, 256>}, {pipeline_mode = #tpu.pipeline_mode<synchronous>, transform_indices = @transform_2, window_bounds = array<i64: 1, 256>}, {pipeline_mode = #tpu.pipeline_mode<synchronous>, transform_indices = @transform_3, window_bounds = array<i64: 256, 512>}, {pipeline_mode = #tpu.pipeline_mode<synchronous>, transform_indices = @transform_4, window_bounds = array<i64: 1, 512>}, {transform_indices = @transform_5, window_bounds = array<i64: 64, 512>}]} {
    %c0 = arith.constant 0 : index
    %c0_0 = arith.constant 0 : index
    %0 = vector.load %arg1[%c0, %c0_0] : memref<64x512xf32, #tpu.memory_space<vmem>>, vector<64x512xf32>
    %c0_1 = arith.constant 0 : index
    %c0_2 = arith.constant 0 : index
    %1 = vector.load %arg2[%c0_1, %c0_2] : memref<512x256xf32, #tpu.memory_space<vmem>>, vector<512x256xf32>
    %c0_3 = arith.constant 0 : index
    %c0_4 = arith.constant 0 : index
    %2 = vector.load %arg3[%c0_3, %c0_4] : memref<1x256xf32, #tpu.memory_space<vmem>>, vector<1x256xf32>
    %cst = arith.constant dense<0.000000e+00> : vector<64x256xf32>
    %3 = tpu.matmul %0, %1, %cst {dimension_numbers = #tpu.dot_dimension_numbers<[1], [0], [0], [1], [0, 0, 1, 1], [], []>} : vector<64x512xf32>, vector<512x256xf32>, vector<64x256xf32> -> vector<64x256xf32>
    %4 = vector.broadcast %2 : vector<1x256xf32> to vector<64x256xf32>
    %5 = arith.addf %3, %4 : vector<64x256xf32>
    %cst_5 = arith.constant 0.000000e+00 : f32
    %6 = vector.broadcast %cst_5 : f32 to vector<64x256xf32>
    %7 = arith.maximumf %5, %6 : vector<64x256xf32>
    %c0_6 = arith.constant 0 : index
    %c0_7 = arith.constant 0 : index
    %8 = vector.load %arg4[%c0_6, %c0_7] : memref<256x512xf32, #tpu.memory_space<vmem>>, vector<256x512xf32>
    %c0_8 = arith.constant 0 : index
    %c0_9 = arith.constant 0 : index
    %9 = vector.load %arg5[%c0_8, %c0_9] : memref<1x512xf32, #tpu.memory_space<vmem>>, vector<1x512xf32>
    %cst_10 = arith.constant dense<0.000000e+00> : vector<64x512xf32>
    %10 = tpu.matmul %7, %8, %cst_10 {dimension_numbers = #tpu.dot_dimension_numbers<[1], [0], [0], [1], [0, 0, 1, 1], [], []>} : vector<64x256xf32>, vector<256x512xf32>, vector<64x512xf32> -> vector<64x512xf32>
    %11 = vector.broadcast %9 : vector<1x512xf32> to vector<64x512xf32>
    %12 = arith.addf %10, %11 : vector<64x512xf32>
    %c0_11 = arith.constant 0 : index
    %c0_12 = arith.constant 0 : index
    %13 = vector.load %arg1[%c0_11, %c0_12] : memref<64x512xf32, #tpu.memory_space<vmem>>, vector<64x512xf32>
    %14 = arith.addf %13, %12 : vector<64x512xf32>
    %cst_13 = arith.constant 0.000000e+00 : f32
    %15 = vector.broadcast %cst_13 : f32 to vector<64x512xf32>
    %16 = arith.maximumf %14, %15 : vector<64x512xf32>
    %c0_14 = arith.constant 0 : index
    %c0_15 = arith.constant 0 : index
    %17 = vector.load %arg6[%c0_14, %c0_15] : memref<64x512xf32, #tpu.memory_space<vmem>>, vector<64x512xf32>
    tpu.vector_store %arg6[%c0_14, %c0_15], %16 {strides = array<i32>} : memref<64x512xf32, #tpu.memory_space<vmem>>, vector<64x512xf32>,
    return
  }
  func.func @transform_0(%arg0: i32) -> (i32, i32) {
    %c0_i32 = arith.constant 0 : i32
    %c0_i32_0 = arith.constant 0 : i32
    return %arg0, %c0_i32 : i32, i32
  }
  func.func @transform_1(%arg0: i32) -> (i32, i32) {
    %c0_i32 = arith.constant 0 : i32
    %c0_i32_0 = arith.constant 0 : i32
    %c0_i32_1 = arith.constant 0 : i32
    return %c0_i32, %c0_i32_0 : i32, i32
  }
  func.func @transform_2(%arg0: i32) -> (i32, i32) {
    %c0_i32 = arith.constant 0 : i32
    %c0_i32_0 = arith.constant 0 : i32
    %c0_i32_1 = arith.constant 0 : i32
    return %c0_i32, %c0_i32_0 : i32, i32
  }
  func.func @transform_3(%arg0: i32) -> (i32, i32) {
    %c0_i32 = arith.constant 0 : i32
    %c0_i32_0 = arith.constant 0 : i32
    %c0_i32_1 = arith.constant 0 : i32
    return %c0_i32, %c0_i32_0 : i32, i32
  }
  func.func @transform_4(%arg0: i32) -> (i32, i32) {
    %c0_i32 = arith.constant 0 : i32
    %c0_i32_0 = arith.constant 0 : i32
    %c0_i32_1 = arith.constant 0 : i32
    return %c0_i32, %c0_i32_0 : i32, i32
  }
  func.func @transform_5(%arg0: i32) -> (i32, i32) {
    %c0_i32 = arith.constant 0 : i32
    %c0_i32_0 = arith.constant 0 : i32
    return %arg0, %c0_i32 : i32, i32
  }
}

module attributes {stable_mosaic.version = 11 : i64} {
  func.func @_residual_mlp_kernel(%arg0: i32, %arg1: memref<64x512xf32, #tpu.memory_space<vmem>>, %arg2: memref<512x256xf32, #tpu.memory_space<vmem>>, %arg3: memref<1x256xf32, #tpu.memory_space<vmem>>, %arg4: memref<256x512xf32, #tpu.memory_space<vmem>>, %arg5: memref<1x512xf32, #tpu.memory_space<vmem>>, %arg6: memref<64x512xf32, #tpu.memory_space<vmem>>) attributes {dimension_semantics = [#tpu.dimension_semantics<parallel>], iteration_bounds = array<i64: 4>, scalar_prefetch = 0 : i64, scratch_operands = 0 : i64, tpu.core_type = #tpu.core_type<tc>, window_params = [{transform_indices = @transform_0, window_bounds = array<i64: 64, 512>}, {pipeline_mode = #tpu.pipeline_mode<synchronous>, transform_indices = @transform_1, window_bounds = array<i64: 512, 256>}, {pipeline_mode = #tpu.pipeline_mode<synchronous>, transform_indices = @transform_2, window_bounds = array<i64: 1, 256>}, {pipeline_mode = #tpu.pipeline_mode<synchronous>, transform_indices = @transform_3, window_bounds = array<i64: 256, 512>}, {pipeline_mode = #tpu.pipeline_mode<synchronous>, transform_indices = @transform_4, window_bounds = array<i64: 1, 512>}, {transform_indices = @transform_5, window_bounds = array<i64: 64, 512>}]} {
    %c0 = arith.constant 0 : index
    %c0_0 = arith.constant 0 : index
    %0 = vector.load %arg1[%c0, %c0_0] : memref<64x512xf32, #tpu.memory_space<vmem>>, vector<64x512xf32>
    %c0_1 = arith.constant 0 : index
    %c0_2 = arith.constant 0 : index
    %1 = vector.load %arg2[%c0_1, %c0_2] : memref<512x256xf32, #tpu.memory_space<vmem>>, vector<512x256xf32>
    %c0_3 = arith.constant 0 : index
    %c0_4 = arith.constant 0 : index
    %2 = vector.load %arg3[%c0_3, %c0_4] : memref<1x256xf32, #tpu.memory_space<vmem>>, vector<1x256xf32>
    %cst = arith.constant dense<0.000000e+00> : vector<64x256xf32>
    %3 = tpu.matmul %0, %1, %cst {dimension_numbers = #tpu.dot_dimension_numbers<[1], [0], [0], [1], [0, 0, 1, 1], [], []>} : vector<64x512xf32>, vector<512x256xf32>, vector<64x256xf32> -> vector<64x256xf32>
    %4 = vector.broadcast %2 : vector<1x256xf32> to vector<64x256xf32>
    %5 = arith.addf %3, %4 : vector<64x256xf32>
    %cst_5 = arith.constant 0.000000e+00 : f32
    %6 = vector.broadcast %cst_5 : f32 to vector<64x256xf32>
    %7 = arith.maximumf %5, %6 : vector<64x256xf32>
    %c0_6 = arith.constant 0 : index
    %c0_7 = arith.constant 0 : index
    %8 = vector.load %arg4[%c0_6, %c0_7] : memref<256x512xf32, #tpu.memory_space<vmem>>, vector<256x512xf32>
    %c0_8 = arith.constant 0 : index
    %c0_9 = arith.constant 0 : index
    %9 = vector.load %arg5[%c0_8, %c0_9] : memref<1x512xf32, #tpu.memory_space<vmem>>, vector<1x512xf32>
    %cst_10 = arith.constant dense<0.000000e+00> : vector<64x512xf32>
    %10 = tpu.matmul %7, %8, %cst_10 {dimension_numbers = #tpu.dot_dimension_numbers<[1], [0], [0], [1], [0, 0, 1, 1], [], []>} : vector<64x256xf32>, vector<256x512xf32>, vector<64x512xf32> -> vector<64x512xf32>
    %11 = vector.broadcast %9 : vector<1x512xf32> to vector<64x512xf32>
    %12 = arith.addf %10, %11 : vector<64x512xf32>
    %c0_11 = arith.constant 0 : index
    %c0_12 = arith.constant 0 : index
    %13 = vector.load %arg1[%c0_11, %c0_12] : memref<64x512xf32, #tpu.memory_space<vmem>>, vector<64x512xf32>
    %14 = arith.addf %13, %12 : vector<64x512xf32>
    %cst_13 = arith.constant 0.000000e+00 : f32
    %15 = vector.broadcast %cst_13 : f32 to vector<64x512xf32>
    %16 = arith.maximumf %14, %15 : vector<64x512xf32>
    %c0_14 = arith.constant 0 : index
    %c0_15 = arith.constant 0 : index
    %17 = vector.load %arg6[%c0_14, %c0_15] : memref<64x512xf32, #tpu.memory_space<vmem>>, vector<64x512xf32>
    tpu.vector_store %arg6[%c0_14, %c0_15], %16 {strides = array<i32>} : memref<64x512xf32, #tpu.memory_space<vmem>>, vector<64x512xf32>,
    return
  }
  func.func @transform_0(%arg0: i32) -> (i32, i32) {
    %c0_i32 = arith.constant 0 : i32
    %c0_i32_0 = arith.constant 0 : i32
    return %arg0, %c0_i32 : i32, i32
  }
  func.func @transform_1(%arg0: i32) -> (i32, i32) {
    %c0_i32 = arith.constant 0 : i32
    %c0_i32_0 = arith.constant 0 : i32
    %c0_i32_1 = arith.constant 0 : i32
    return %c0_i32, %c0_i32_0 : i32, i32
  }
  func.func @transform_2(%arg0: i32) -> (i32, i32) {
    %c0_i32 = arith.constant 0 : i32
    %c0_i32_0 = arith.constant 0 : i32
    %c0_i32_1 = arith.constant 0 : i32
    return %c0_i32, %c0_i32_0 : i32, i32
  }
  func.func @transform_3(%arg0: i32) -> (i32, i32) {
    %c0_i32 = arith.constant 0 : i32
    %c0_i32_0 = arith.constant 0 : i32
    %c0_i32_1 = arith.constant 0 : i32
    return %c0_i32, %c0_i32_0 : i32, i32
  }
  func.func @transform_4(%arg0: i32) -> (i32, i32) {
    %c0_i32 = arith.constant 0 : i32
    %c0_i32_0 = arith.constant 0 : i32
    %c0_i32_1 = arith.constant 0 : i32
    return %c0_i32, %c0_i32_0 : i32, i32
  }
  func.func @transform_5(%arg0: i32) -> (i32, i32) {
    %c0_i32 = arith.constant 0 : i32
    %c0_i32_0 = arith.constant 0 : i32
    return %arg0, %c0_i32 : i32, i32
  }
}

</mosaic_0001>

<bundles_post_ra>
// kernel: tpu_custom_call.1
= control target key start
LH: loop header
LB: loop body
LE: loop exit
PB: predicated region body
PF: predicated region fallthrough
CT: control target
= control target key end

     0   :  { %10 = vsyncpa [#allocation3], 0  ;;  %s2028_s0 = inlined_call_operand.hbm [shape: f32[256,512], index: 0, kind: input, shape index: {}]   ;;  %s2029_s1 = inlined_call_operand.hbm [shape: f32[512,256], index: 1, kind: input, shape index: {}]   ;;  %s2030_s2 = inlined_call_operand.vmem [shape: f32[1,256], index: 2, kind: input, shape index: {}]   ;;  %s2031_s3 = inlined_call_operand.hbm [shape: f32[256,512], index: 3, kind: input, shape index: {}]   ;;  %s2032_s4 = inlined_call_operand.vmem [shape: f32[1,512], index: 4, kind: input, shape index: {}]   ;;  %s2033_s5 = inlined_call_operand.hbm [shape: f32[256,512], index: 5, kind: output, shape index: {}]  }
   0x1   :  { %12 = vsyncpa [#allocation3 + $0x1], 0 }
   0x2   :  { %13 = vsyncpa [#allocation6], 0 }
   0x3   :  { %14 = vsyncpa [#allocation4], 0 }
   0x4   :  { %16 = vsyncpa [#allocation4 + $0x1], 0  ;;  %s1555_s18 = smov 0   ;;  %s1557_s19 = smov 0  }
   0x5   :  { %s1559_s20 = smov 0   ;;  %s1561_s21 = smov 0  }
   0x6 LB: > { %s1576_s22 = sadd.s32 4294967295, %s1513_s21   ;;  %s1268_s23 = sadd.s32 4294967294, %s1513_s21   ;;  %s1513_s21 = sphi %s1561_s21, %s2056_s21   ;;  %s1509_s20 = sphi %s1559_s20, %s2055_s20   ;;  %s1505_s19 = sphi %s1557_s19, %s2054_s19   ;;  %s1501_s18 = sphi %s1555_s18, %s2053_s18  }
   0x7   : > { %p42_p0 = scmp.ne.s32.totalorder %s1505_s19, %s1501_s18  ;;  %p2034_p1 = scmp.eq.s32.totalorder %s1576_s22, 0 }
   0x8   : > { %p156_p3 = scmp.eq.s32.totalorder %s1268_s23, 3  ;;  %p1269_p5 = scmp.ge.s32.totalorder %s1513_s21, 1 }
   0x9   : > { %p1585_p4 = por %p2034_p1, %p42_p0  ;;  %p163_p7 = scmp.lt.s32.totalorder %s1513_s21, 5 }
   0xa   : > { %p1590_p6 = por %p156_p3, %p42_p0  ;;  %s1515_s27 = smov [#allocation5]  }
   0xb   : > { %s2039_s24 = scalar_select %p1585_p4, 1, 0 }
   0xc   : > { %s2040_s25 = scalar_select %p1590_p6, 1, 0 }
   0xd   : > { %p1595_p8 = pnand %p1269_p5, %p163_p7  ;;  %s175_s28 = sshll.u32 %s1515_s27, 4  ;;  %s176_s28 = int_to_ptr.vmem [resolvable:$true] %s175_s28 }
   0xe   : > { %s1516_s30 = smov [#allocation7]   ;;  %s1376_s7 = scalar_lea.vmem %s176_s28, 16384 }
   0xf   : > { %s2041_s26 = scalar_select %p1595_p8, 1, 0 }
  0x10   : > { %p1304_p9 = pneg %p1595_p8  ;;  %s191_s6 = sshll.u32 %s1516_s30, 4  ;;  %s192_s6 = int_to_ptr.vmem [resolvable:$true] %s191_s6 }
  0x11   : > { %p1377_p12 = scmp.ne.s32.totalorder %s176_s28, %s1376_s7  ;;  %p1384_p3 = scmp.lt.s32.totalorder %s176_s28, %s176_s28 }
  0x12   : > { %p1603_p10 = pnand %p1304_p9, %p2034_p1  ;;  %p1385_p5 = scmp.lt.s32.totalorder %s1376_s7, %s1376_s7 }
  0x14   : > { %p1367_p11 = pneg %p1603_p10  ;;  %p1386_p7 = por %p1385_p5, %p1384_p3 }
  0x16   : > { %p1379_p13 = pnand %p1377_p12, %p1367_p11 }
  0x18   : > { %p1380_p0 = pneg %p1379_p13 }
  0x1a   : > { %p1387_p9 = pnand %p1386_p7, %p1380_p0 }
  0x1c   : > { %1390 = shalt.err (!%p1387_p9)
}
  0x1d   : > { %s1517_s8 = smov 256   ;;  %s1518_s9 = smov 16  }
  0x1e   : > { %1307 = dma.hbm_to_vmem [thread:$0]  (!%p1603_p10), %s2029_s1, 16384, %s176_s28, [#allocation6], %s1517_s8, %s1517_s8, %s1518_s9  }
  0x1f   : > { %s1402_s12 = scalar_lea.vmem %s192_s6, 16384  ;;  %p1410_p2 = scmp.lt.s32.totalorder %s192_s6, %s192_s6 }
  0x20   : > { %p1403_p1 = scmp.ne.s32.totalorder %s192_s6, %s1402_s12  ;;  %p1411_p6 = scmp.lt.s32.totalorder %s1402_s12, %s1402_s12 }
  0x22   : > { %p1405_p12 = pnand %p1403_p1, %p1367_p11  ;;  %p1412_p3 = por %p1411_p6, %p1410_p2 }
  0x24   : > { %p1406_p13 = pneg %p1405_p12 }
  0x26   : > { %p1413_p0 = pnand %p1412_p3, %p1406_p13 }
  0x28   : > { %1416 = shalt.err (!%p1413_p0)
}
  0x29   : > { %s2035_s13 = smov 512   ;;  %s1520_s14 = smov 32  }
  0x2a   : > { %1310 = dma.hbm_to_vmem [thread:$0]  (!%p1603_p10), %s2031_s3, 16384, %s192_s6, [#allocation6], %s2035_s13, %s2035_s13, %s1520_s14  }
  0x2b   : > { %s1629_s17 = sadd.s32 1, %s1513_s21   ;;  %s29_s27 = sadd.s32 1, %s1509_s20 }
  0x2c   : > { %s26_s23 = ssub.s32 %s1513_s21, %s1629_s17  ;;  %p36_p2 = scmp.ne.s32.totalorder %s1509_s20, %s1505_s19 }
  0x2d   : > { %p27_p1 = scmp.eq.s32.totalorder %s26_s23, 0  ;;  %p37_p6 = scmp.eq.s32.totalorder %s1513_s21, 0 }
  0x2e   : > { %p2043_p5 = scmp.eq.s32.totalorder %s1576_s22, 3  ;;  %p1321_p9 = scmp.lt.s32.totalorder %s1513_s21, 4 }
  0x2f   : > { %s1638_s28 = scalar_select %p27_p1, %s1509_s20, %s29_s27  }
  0x30   : > { %p38_p11 = por %p37_p6, %p36_p2  ;;  %p1642_p7 = por %p2043_p5, %p36_p2 }
  0x31   : > { %s208_s30 = sand.u32 1, %s1509_s20   ;;  %s1289_s6 = sshll.u32 %s1513_s21, 12 }
  0x32   : > { %s2044_s29 = scalar_select %p1642_p7, 1, 0 }
  0x33   : > { %s1273_s7 = sshll.u32 %s208_s30, 8  ;;  %s1652_s10 = scalar_lea.hbm %s2028_s0, %s1289_s6 }
  0x34   : > { %s212_s11 = scalar_lea.vmem [#allocation2], %s1273_s7  ;;  %p1656_p10 = pnand %p1321_p9, %p38_p11 }
  0x35   : > { %s220_s12 = sshll.u32 %s212_s11, 4  ;;  %s1660_s16 = scalar_lea.sflag [#allocation3], %s208_s30  ;;  %s1654_s12 = int_to_ptr.vmem [resolvable:$true] %s220_s12 }
  0x36   : > { %s1417_s23 = scalar_lea.hbm %s1652_s10, 4096  ;;  %p1419_p13 = pneg %p1656_p10 }
  0x37   : > { %p1418_p12 = scmp.ne.s32.totalorder %s1652_s10, %s1417_s23  ;;  %s1422_s7 = scalar_lea.hbm %s2028_s0, 16384 }
  0x38   : > { %p1423_p1 = scmp.lt.s32.totalorder %s1652_s10, %s2028_s0  ;;  %p1424_p2 = scmp.lt.s32.totalorder %s1422_s7, %s1417_s23 }
  0x39   : > { %p1420_p3 = pnand %p1419_p13, %p1418_p12 }
  0x3a   : > { %p1425_p6 = por %p1424_p2, %p1423_p1 }
  0x3b   : > { %p1421_p0 = pneg %p1420_p3 }
  0x3d   : > { %p1426_p11 = pnand %p1425_p6, %p1421_p0 }
  0x3f   : > { %1429 = shalt.err (!%p1426_p11)
}
  0x40   : > { %s1430_s30 = scalar_lea.vmem %s1654_s12, 4096  ;;  %s1521_s11 = smov [#allocation2]  }
  0x41   : > { %p1431_p5 = scmp.ne.s32.totalorder %s1654_s12, %s1430_s30  ;;  %s1435_s13 = sshll.u32 %s1521_s11, 4  ;;  %s1436_s13 = int_to_ptr.vmem [resolvable:$false] %s1435_s13 }
  0x42   : > { %s1437_s27 = scalar_lea.vmem %s1436_s13, 8192  ;;  %p1438_p3 = scmp.lt.s32.totalorder %s1654_s12, %s1436_s13 }
  0x43   : > { %p1433_p9 = pnand %p1431_p5, %p1419_p13  ;;  %p1439_p7 = scmp.lt.s32.totalorder %s1437_s27, %s1430_s30 }
  0x45   : > { %p1434_p12 = pneg %p1433_p9  ;;  %p1440_p4 = por %p1439_p7, %p1438_p3 }
  0x47   : > { %p1441_p8 = pnand %p1440_p4, %p1434_p12 }
  0x49   : > { %1444 = shalt.err (!%p1441_p8)
}
  0x4a   : > { %s2046_s23 = smov 512   ;;  %p2047_p13 = scmp.ne.s32.totalorder %s2041_s26, 0 }
  0x4b   : > { %1314 = dma.hbm_to_vmem [thread:$0]  (!%p1656_p10), %s1652_s10, 4096, %s1654_s12, %s1660_s16, %s2046_s23, %s2046_s23, %s1520_s14  }
  0x4c   : > { %232 = sbr.rel (%p2047_p13) target bundleno = 596 (0x254), region = 40  ;;  %s1687_s6 = sand.u32 (!%p2047_p13), 1, %s1505_s19  }
  0x4d   : > { %s1278_s13 = sshll.u32 (!%p2047_p13), %s1687_s6, 8  ;;  %s235_s7 = scalar_lea.sflag (!%p2047_p13), [#allocation3], %s1687_s6 }
  0x4e   : > { %s1693_s15 = scalar_lea.vmem (!%p2047_p13), [#allocation2], %s1278_s13  ;;  %p2048_p4 = scmp.ne.s32.totalorder (!%p2047_p13), %s2039_s24, 0 }
  0x51   : > { %1488 = dma.done.wait (%p2048_p4), %s235_s7, 4096  }
  0x52   : > { %1490 = vsyncadd (%p2048_p4), %s235_s7, 4294963200  ;;  %p2049_p8 = scmp.eq.s32.totalorder %s1576_s22, 0 }
  0x54   : > { %1492 = dma.done.wait (%p2049_p8), [#allocation6], 32768   ;;  %p2050_p7 = pmov %p2049_p8 }
  0x55   : > { %v338_v0 = vld [vmem:[#allocation5 + $0xf8] sm:$0xff]  ;;  %v337_v2 = vld [vmem:[#allocation5 + $0xf0] sm:$0xff]  ;;  %v336_v4 = vld [vmem:[#allocation5 + $0xe8] sm:$0xff]  ;;  %s1891_s12 = scalar_lea.vmem [#allocation8], %s1278_s13  ;;  %s1291_s16 = sshll.u32 %s1576_s22, 12 }
  0x56   : > { %1494 = vsyncadd (%p2050_p7), [#allocation6], 4294934528  ;;  %v402_v1 = vld [vmem:[#allocation5 + $0x2f8] sm:$0xff]  ;;  %447 = vmatprep.subr.mxu0 %v338_v0  ;;  %v401_v3 = vld [vmem:[#allocation5 + $0x2f0] sm:$0xff]  ;;  %s1176_s8 = sshll.u32 %s1891_s12, 4  ;;  %s1980_s22 = scalar_lea.hbm %s2033_s5, %s1291_s16  ;;  %s1982_s8 = int_to_ptr.vmem [resolvable:$true] %s1176_s8 }
  0x57   : > { %560 = vmatprep.subr.mxu1 %v402_v1  ;;  %v400_v5 = vld [vmem:[#allocation5 + $0x2e8] sm:$0xff]  ;;  %448 = vmatpush1.msra.mxu0 %v337_v2  ;;  %v335_v6 = vld [vmem:[#allocation5 + $0xe0] sm:$0xff]  ;;  %v334_v8 = vld [vmem:[#allocation5 + $0xd8] sm:$0xff]  ;;  %s1162_s11 = scalar_lea.sflag [#allocation4], %s1687_s6  ;;  %s1445_s27 = scalar_lea.vmem %s1982_s8, 4096 }
  0x58   : > { %561 = vmatpush1.msra.mxu1 %v401_v3  ;;  %v399_v7 = vld [vmem:[#allocation5 + $0x2e0] sm:$0xff]  ;;  %449 = vmatprep.subr.mxu0 %v336_v4  ;;  %v398_v9 = vld [vmem:[#allocation5 + $0x2d8] sm:$0xff]  ;;  %v333_v10 = vld [vmem:[#allocation5 + $0xd0] sm:$0xff]  ;;  %p1446_p10 = scmp.ne.s32.totalorder %s1982_s8, %s1445_s27  ;;  %p2051_p0 = scmp.ne.s32.totalorder %s2044_s29, 0 }
  0x59   : > { %562 = vmatprep.subr.mxu1 %v400_v5  ;;  %v397_v11 = vld [vmem:[#allocation5 + $0x2d0] sm:$0xff]  ;;  %450 = vmatpush1.msra.mxu0 %v335_v6  ;;  %v332_v12 = vld [vmem:[#allocation5 + $0xc8] sm:$0xff]  ;;  %v331_v14 = vld [vmem:[#allocation5 + $0xc0] sm:$0xff]  ;;  %s1522_s23 = smov [#allocation8]  }
  0x5a   : > { %563 = vmatpush1.msra.mxu1 %v399_v7  ;;  %v396_v13 = vld [vmem:[#allocation5 + $0x2c8] sm:$0xff]  ;;  %451 = vmatprep.subr.mxu0 %v334_v8  ;;  %v395_v15 = vld [vmem:[#allocation5 + $0x2c0] sm:$0xff]  ;;  %v330_v16 = vld [vmem:[#allocation5 + $0xb8] sm:$0xff]  ;;  %p1447_p1 = pnand %p1446_p10, %p2051_p0  ;;  %s1449_s13 = sshll.u32 %s1522_s23, 4  ;;  %s1450_s13 = int_to_ptr.vmem [resolvable:$false] %s1449_s13 }
  0x5b   : > { %564 = vmatprep.subr.mxu1 %v398_v9  ;;  %452 = vmatpush1.msra.mxu0 %v333_v10  ;;  %v394_v17 = vld [vmem:[#allocation5 + $0x2b8] sm:$0xff]  ;;  %v329_v18 = vld [vmem:[#allocation5 + $0xb0] sm:$0xff]  ;;  %v328_v20 = vld [vmem:[#allocation5 + $0xa8] sm:$0xff]  ;;  %s1451_s7 = scalar_lea.vmem %s1450_s13, 8192  ;;  %p1452_p6 = scmp.lt.s32.totalorder %s1982_s8, %s1450_s13 }
  0x5c   : > { %565 = vmatpush1.msra.mxu1 %v397_v11  ;;  %453 = vmatprep.subr.mxu0 %v332_v12  ;;  %v393_v19 = vld [vmem:[#allocation5 + $0x2b0] sm:$0xff]  ;;  %v392_v21 = vld [vmem:[#allocation5 + $0x2a8] sm:$0xff]  ;;  %v327_v22 = vld [vmem:[#allocation5 + $0xa0] sm:$0xff]  ;;  %p1448_p2 = pneg %p1447_p1  ;;  %p1453_p11 = scmp.lt.s32.totalorder %s1451_s7, %s1445_s27 }
  0x5d   : > { %566 = vmatprep.subr.mxu1 %v396_v13  ;;  %454 = vmatpush1.msra.mxu0 %v331_v14  ;;  %v391_v23 = vld [vmem:[#allocation5 + $0x2a0] sm:$0xff]  ;;  %v326_v24 = vld [vmem:[#allocation5 + $0x98] sm:$0xff]  ;;  %v325_v26 = vld [vmem:[#allocation5 + $0x90] sm:$0xff] }
  0x5e   : > { %567 = vmatpush1.msra.mxu1 %v395_v15  ;;  %455 = vmatprep.subr.mxu0 %v330_v16  ;;  %v390_v25 = vld [vmem:[#allocation5 + $0x298] sm:$0xff]  ;;  %v389_v27 = vld [vmem:[#allocation5 + $0x290] sm:$0xff]  ;;  %v324_v28 = vld [vmem:[#allocation5 + $0x88] sm:$0xff]  ;;  %p1454_p5 = por %p1453_p11, %p1452_p6 }
  0x5f   : > { %568 = vmatprep.subr.mxu1 %v394_v17  ;;  %456 = vmatpush1.msra.mxu0 %v329_v18  ;;  %v388_v29 = vld [vmem:[#allocation5 + $0x288] sm:$0xff]  ;;  %v323_v30 = vld [vmem:[#allocation5 + $0x80] sm:$0xff]  ;;  %v322_v32 = vld [vmem:[#allocation5 + $0x78] sm:$0xff] }
  0x60   : > { %569 = vmatpush1.msra.mxu1 %v393_v19  ;;  %457 = vmatprep.subr.mxu0 %v328_v20  ;;  %v387_v31 = vld [vmem:[#allocation5 + $0x280] sm:$0xff]  ;;  %v386_v33 = vld [vmem:[#allocation5 + $0x278] sm:$0xff]  ;;  %v321_v34 = vld [vmem:[#allocation5 + $0x70] sm:$0xff]  ;;  %p1455_p9 = pnand %p1454_p5, %p1448_p2 }
  0x61   : > { %570 = vmatprep.subr.mxu1 %v392_v21  ;;  %458 = vmatpush1.msra.mxu0 %v327_v22  ;;  %v385_v35 = vld [vmem:[#allocation5 + $0x270] sm:$0xff]  ;;  %v320_v36 = vld [vmem:[#allocation5 + $0x68] sm:$0xff]  ;;  %v319_v38 = vld [vmem:[#allocation5 + $0x60] sm:$0xff] }
  0x62   : > { %571 = vmatpush1.msra.mxu1 %v391_v23  ;;  %459 = vmatprep.subr.mxu0 %v326_v24  ;;  %v384_v37 = vld [vmem:[#allocation5 + $0x268] sm:$0xff]  ;;  %v383_v39 = vld [vmem:[#allocation5 + $0x260] sm:$0xff]  ;;  %v318_v40 = vld [vmem:[#allocation5 + $0x58] sm:$0xff] }
  0x63   : > { %572 = vmatprep.subr.mxu1 %v390_v25  ;;  %460 = vmatpush1.msra.mxu0 %v325_v26  ;;  %v382_v41 = vld [vmem:[#allocation5 + $0x258] sm:$0xff]  ;;  %v317_v42 = vld [vmem:[#allocation5 + $0x50] sm:$0xff]  ;;  %v316_v44 = vld [vmem:[#allocation5 + $0x48] sm:$0xff] }
  0x64   : > { %573 = vmatpush1.msra.mxu1 %v389_v27  ;;  %461 = vmatprep.subr.mxu0 %v324_v28  ;;  %v381_v43 = vld [vmem:[#allocation5 + $0x250] sm:$0xff]  ;;  %v380_v45 = vld [vmem:[#allocation5 + $0x248] sm:$0xff]  ;;  %v315_v46 = vld [vmem:[#allocation5 + $0x40] sm:$0xff] }
  0x65   : > { %574 = vmatprep.subr.mxu1 %v388_v29  ;;  %462 = vmatpush1.msra.mxu0 %v323_v30  ;;  %v379_v47 = vld [vmem:[#allocation5 + $0x240] sm:$0xff]  ;;  %v314_v48 = vld [vmem:[#allocation5 + $0x38] sm:$0xff]  ;;  %v313_v50 = vld [vmem:[#allocation5 + $0x30] sm:$0xff] }
  0x66   : > { %575 = vmatpush1.msra.mxu1 %v387_v31  ;;  %463 = vmatprep.subr.mxu0 %v322_v32  ;;  %v378_v49 = vld [vmem:[#allocation5 + $0x238] sm:$0xff]  ;;  %v377_v51 = vld [vmem:[#allocation5 + $0x230] sm:$0xff]  ;;  %v312_v52 = vld [vmem:[#allocation5 + $0x28] sm:$0xff] }
  0x67   : > { %576 = vmatprep.subr.mxu1 %v386_v33  ;;  %464 = vmatpush1.msra.mxu0 %v321_v34  ;;  %v376_v53 = vld [vmem:[#allocation5 + $0x228] sm:$0xff]  ;;  %v311_v54 = vld [vmem:[#allocation5 + $0x20] sm:$0xff]  ;;  %v310_v56 = vld [vmem:[#allocation5 + $0x18] sm:$0xff] }
  0x68   : > { %577 = vmatpush1.msra.mxu1 %v385_v35  ;;  %465 = vmatprep.subr.mxu0 %v320_v36  ;;  %v375_v55 = vld [vmem:[#allocation5 + $0x220] sm:$0xff]  ;;  %v374_v57 = vld [vmem:[#allocation5 + $0x218] sm:$0xff]  ;;  %v309_v58 = vld [vmem:[#allocation5 + $0x10] sm:$0xff] }
  0x69   : > { %578 = vmatprep.subr.mxu1 %v384_v37  ;;  %466 = vmatpush1.msra.mxu0 %v319_v38  ;;  %v373_v59 = vld [vmem:[#allocation5 + $0x210] sm:$0xff]  ;;  %v308_v60 = vld [vmem:[#allocation5 + $0x8] sm:$0xff]  ;;  %v307_v62 = vld [vmem:[#allocation5] sm:$0xff] }
  0x6a   : > { %579 = vmatpush1.msra.mxu1 %v383_v39  ;;  %467 = vmatprep.subr.mxu0 %v318_v40  ;;  %v372_v61 = vld [vmem:[#allocation5 + $0x208] sm:$0xff]  ;;  %v371_v63 = vld [vmem:[#allocation5 + $0x200] sm:$0xff]  ;;  %v370_v0 = vld [vmem:[#allocation5 + $0x1f8] sm:$0xff] }
  0x6b   : > { %580 = vmatprep.subr.mxu1 %v382_v41  ;;  %468 = vmatpush1.msra.mxu0 %v317_v42  ;;  %v434_v1 = vld [vmem:[#allocation5 + $0x3f8] sm:$0xff]  ;;  %v369_v2 = vld [vmem:[#allocation5 + $0x1f0] sm:$0xff]  ;;  %v368_v4 = vld [vmem:[#allocation5 + $0x1e8] sm:$0xff] }
  0x6c   : > { %581 = vmatpush1.msra.mxu1 %v381_v43  ;;  %469 = vmatprep.subr.mxu0 %v316_v44  ;;  %v433_v3 = vld [vmem:[#allocation5 + $0x3f0] sm:$0xff]  ;;  %v432_v5 = vld [vmem:[#allocation5 + $0x3e8] sm:$0xff]  ;;  %v367_v6 = vld [vmem:[#allocation5 + $0x1e0] sm:$0xff] }
  0x6d   : > { %582 = vmatprep.subr.mxu1 %v380_v45  ;;  %470 = vmatpush1.msra.mxu0 %v315_v46  ;;  %v431_v7 = vld [vmem:[#allocation5 + $0x3e0] sm:$0xff]  ;;  %v366_v8 = vld [vmem:[#allocation5 + $0x1d8] sm:$0xff]  ;;  %v365_v10 = vld [vmem:[#allocation5 + $0x1d0] sm:$0xff] }
  0x6e   : > { %583 = vmatpush1.msra.mxu1 %v379_v47  ;;  %471 = vmatprep.subr.mxu0 %v314_v48  ;;  %v430_v9 = vld [vmem:[#allocation5 + $0x3d8] sm:$0xff]  ;;  %v429_v11 = vld [vmem:[#allocation5 + $0x3d0] sm:$0xff]  ;;  %v364_v12 = vld [vmem:[#allocation5 + $0x1c8] sm:$0xff] }
  0x6f   : > { %584 = vmatprep.subr.mxu1 %v378_v49  ;;  %472 = vmatpush1.msra.mxu0 %v313_v50  ;;  %v428_v13 = vld [vmem:[#allocation5 + $0x3c8] sm:$0xff]  ;;  %v363_v14 = vld [vmem:[#allocation5 + $0x1c0] sm:$0xff]  ;;  %v362_v16 = vld [vmem:[#allocation5 + $0x1b8] sm:$0xff] }
  0x70   : > { %585 = vmatpush1.msra.mxu1 %v377_v51  ;;  %473 = vmatprep.subr.mxu0 %v312_v52  ;;  %v427_v15 = vld [vmem:[#allocation5 + $0x3c0] sm:$0xff]  ;;  %v426_v17 = vld [vmem:[#allocation5 + $0x3b8] sm:$0xff]  ;;  %v361_v18 = vld [vmem:[#allocation5 + $0x1b0] sm:$0xff] }
  0x71   : > { %586 = vmatprep.subr.mxu1 %v376_v53  ;;  %474 = vmatpush1.msra.mxu0 %v311_v54  ;;  %v425_v19 = vld [vmem:[#allocation5 + $0x3b0] sm:$0xff]  ;;  %v360_v20 = vld [vmem:[#allocation5 + $0x1a8] sm:$0xff]  ;;  %v359_v22 = vld [vmem:[#allocation5 + $0x1a0] sm:$0xff] }
  0x72   : > { %587 = vmatpush1.msra.mxu1 %v375_v55  ;;  %475 = vmatprep.subr.mxu0 %v310_v56  ;;  %v424_v21 = vld [vmem:[#allocation5 + $0x3a8] sm:$0xff]  ;;  %v423_v23 = vld [vmem:[#allocation5 + $0x3a0] sm:$0xff]  ;;  %v358_v24 = vld [vmem:[#allocation5 + $0x198] sm:$0xff] }
  0x73   : > { %588 = vmatprep.subr.mxu1 %v374_v57  ;;  %476 = vmatpush1.msra.mxu0 %v309_v58  ;;  %v422_v25 = vld [vmem:[#allocation5 + $0x398] sm:$0xff]  ;;  %v357_v26 = vld [vmem:[#allocation5 + $0x190] sm:$0xff]  ;;  %v356_v28 = vld [vmem:[#allocation5 + $0x188] sm:$0xff] }
  0x74   : > { %589 = vmatpush1.msra.mxu1 %v373_v59  ;;  %477 = vmatprep.subr.mxu0 %v308_v60  ;;  %v421_v27 = vld [vmem:[#allocation5 + $0x390] sm:$0xff]  ;;  %v420_v29 = vld [vmem:[#allocation5 + $0x388] sm:$0xff]  ;;  %v355_v30 = vld [vmem:[#allocation5 + $0x180] sm:$0xff] }
  0x75   : > { %590 = vmatprep.subr.mxu1 %v372_v61  ;;  %478 = vmatpush1.msra.mxu0 %v307_v62  ;;  %v419_v31 = vld [vmem:[#allocation5 + $0x380] sm:$0xff]  ;;  %v354_v32 = vld [vmem:[#allocation5 + $0x178] sm:$0xff]  ;;  %v353_v34 = vld [vmem:[#allocation5 + $0x170] sm:$0xff] }
  0x76   : > { %591 = vmatpush1.msra.mxu1 %v371_v63  ;;  %479 = vmatprep.subr.mxu0 %v370_v0  ;;  %v418_v33 = vld [vmem:[#allocation5 + $0x378] sm:$0xff]  ;;  %v417_v35 = vld [vmem:[#allocation5 + $0x370] sm:$0xff]  ;;  %v352_v36 = vld [vmem:[#allocation5 + $0x168] sm:$0xff] }
  0x77   : > { %592 = vmatprep.subr.mxu1 %v434_v1  ;;  %480 = vmatpush2.msra.mxu0 %v369_v2  ;;  %v416_v37 = vld [vmem:[#allocation5 + $0x368] sm:$0xff]  ;;  %v351_v38 = vld [vmem:[#allocation5 + $0x160] sm:$0xff]  ;;  %v350_v40 = vld [vmem:[#allocation5 + $0x158] sm:$0xff] }
  0x78   : > { %593 = vmatpush2.msra.mxu1 %v433_v3  ;;  %481 = vmatprep.subr.mxu0 %v368_v4  ;;  %v415_v39 = vld [vmem:[#allocation5 + $0x360] sm:$0xff]  ;;  %v414_v41 = vld [vmem:[#allocation5 + $0x358] sm:$0xff]  ;;  %v349_v42 = vld [vmem:[#allocation5 + $0x150] sm:$0xff] }
  0x79   : > { %594 = vmatprep.subr.mxu1 %v432_v5  ;;  %482 = vmatpush2.msra.mxu0 %v367_v6  ;;  %v413_v43 = vld [vmem:[#allocation5 + $0x350] sm:$0xff]  ;;  %v348_v44 = vld [vmem:[#allocation5 + $0x148] sm:$0xff]  ;;  %v347_v46 = vld [vmem:[#allocation5 + $0x140] sm:$0xff] }
  0x7a   : > { %595 = vmatpush2.msra.mxu1 %v431_v7  ;;  %483 = vmatprep.subr.mxu0 %v366_v8  ;;  %v412_v45 = vld [vmem:[#allocation5 + $0x348] sm:$0xff]  ;;  %v411_v47 = vld [vmem:[#allocation5 + $0x340] sm:$0xff]  ;;  %v346_v48 = vld [vmem:[#allocation5 + $0x138] sm:$0xff] }
  0x7b   : > { %596 = vmatprep.subr.mxu1 %v430_v9  ;;  %484 = vmatpush2.msra.mxu0 %v365_v10  ;;  %v410_v49 = vld [vmem:[#allocation5 + $0x338] sm:$0xff]  ;;  %v345_v50 = vld [vmem:[#allocation5 + $0x130] sm:$0xff]  ;;  %v344_v52 = vld [vmem:[#allocation5 + $0x128] sm:$0xff] }
  0x7c   : > { %597 = vmatpush2.msra.mxu1 %v429_v11  ;;  %485 = vmatprep.subr.mxu0 %v364_v12  ;;  %v409_v51 = vld [vmem:[#allocation5 + $0x330] sm:$0xff]  ;;  %v408_v53 = vld [vmem:[#allocation5 + $0x328] sm:$0xff]  ;;  %v343_v54 = vld [vmem:[#allocation5 + $0x120] sm:$0xff] }
  0x7d   : > { %598 = vmatprep.subr.mxu1 %v428_v13  ;;  %486 = vmatpush2.msra.mxu0 %v363_v14  ;;  %v407_v55 = vld [vmem:[#allocation5 + $0x320] sm:$0xff]  ;;  %v342_v56 = vld [vmem:[#allocation5 + $0x118] sm:$0xff]  ;;  %v341_v58 = vld [vmem:[#allocation5 + $0x110] sm:$0xff] }
  0x7e   : > { %599 = vmatpush2.msra.mxu1 %v427_v15  ;;  %487 = vmatprep.subr.mxu0 %v362_v16  ;;  %v406_v57 = vld [vmem:[#allocation5 + $0x318] sm:$0xff]  ;;  %v405_v59 = vld [vmem:[#allocation5 + $0x310] sm:$0xff]  ;;  %v340_v60 = vld [vmem:[#allocation5 + $0x108] sm:$0xff] }
  0x7f   : > { %600 = vmatprep.subr.mxu1 %v426_v17  ;;  %488 = vmatpush2.msra.mxu0 %v361_v18  ;;  %v404_v61 = vld [vmem:[#allocation5 + $0x308] sm:$0xff]  ;;  %v339_v62 = vld [vmem:[#allocation5 + $0x100] sm:$0xff]  ;;  %v1707_v1 = vld [vmem:[%s1693_s15 + $0x18] sm:$0xff] }
  0x80   : > { %601 = vmatpush2.msra.mxu1 %v425_v19  ;;  %489 = vmatprep.subr.mxu0 %v360_v20  ;;  %v1704_v63 = vld [vmem:[%s1693_s15 + $0x8] sm:$0xff]  ;;  %v403_v0 = vld [vmem:[#allocation5 + $0x300] sm:$0xff]  ;;  %v1713_v3 = vld [vmem:[%s1693_s15 + $0x10] sm:$0xff] }
  0x81   : > { %602 = vmatprep.subr.mxu1 %v424_v21  ;;  %490 = vmatpush2.msra.mxu0 %v359_v22  ;;  %v1710_v2 = vld [vmem:[%s1693_s15] sm:$0xff]  ;;  %v1717_v4 = vld [vmem:[%s1693_s15 + $0x28] sm:$0xff]  ;;  %v1720_v5 = vld [vmem:[%s1693_s15 + $0x38] sm:$0xff] }
  0x82   : > { %603 = vmatpush2.msra.mxu1 %v423_v23  ;;  %491 = vmatprep.subr.mxu0 %v358_v24  ;;  %v750_v6 = vld [vmem:[#allocation7 + $0x1e8] sm:$0xff]  ;;  %v752_v7 = vld [vmem:[#allocation7 + $0x1f8] sm:$0xff]  ;;  %v749_v8 = vld [vmem:[#allocation7 + $0x1e0] sm:$0xff] }
  0x83   : > { %604 = vmatprep.subr.mxu1 %v422_v25  ;;  %492 = vmatpush2.msra.mxu0 %v357_v26  ;;  %v751_v9 = vld [vmem:[#allocation7 + $0x1f0] sm:$0xff]  ;;  %v1728_v10 = vld [vmem:[%s1693_s15 + $0x20] sm:$0xff]  ;;  %v1734_v12 = vld [vmem:[%s1693_s15 + $0x48] sm:$0xff] }
  0x84   : > { %605 = vmatpush2.msra.mxu1 %v421_v27  ;;  %493 = vmatprep.subr.mxu0 %v356_v28  ;;  %v1731_v11 = vld [vmem:[%s1693_s15 + $0x30] sm:$0xff]  ;;  %v1737_v13 = vld [vmem:[%s1693_s15 + $0x58] sm:$0xff]  ;;  %v746_v14 = vld [vmem:[#allocation7 + $0x1c8] sm:$0xff] }
  0x85   : > { %606 = vmatprep.subr.mxu1 %v420_v29  ;;  %494 = vmatpush2.msra.mxu0 %v355_v30  ;;  %v748_v15 = vld [vmem:[#allocation7 + $0x1d8] sm:$0xff]  ;;  %v745_v16 = vld [vmem:[#allocation7 + $0x1c0] sm:$0xff]  ;;  %v747_v17 = vld [vmem:[#allocation7 + $0x1d0] sm:$0xff] }
  0x86   : > { %607 = vmatpush2.msra.mxu1 %v419_v31  ;;  %495 = vmatprep.subr.mxu0 %v354_v32  ;;  %v1744_v18 = vld [vmem:[%s1693_s15 + $0x40] sm:$0xff]  ;;  %v1747_v19 = vld [vmem:[%s1693_s15 + $0x50] sm:$0xff]  ;;  %v1750_v20 = vld [vmem:[%s1693_s15 + $0x68] sm:$0xff] }
  0x87   : > { %608 = vmatprep.subr.mxu1 %v418_v33  ;;  %496 = vmatpush2.msra.mxu0 %v353_v34  ;;  %v1753_v21 = vld [vmem:[%s1693_s15 + $0x78] sm:$0xff]  ;;  %v742_v22 = vld [vmem:[#allocation7 + $0x1a8] sm:$0xff]  ;;  %v741_v24 = vld [vmem:[#allocation7 + $0x1a0] sm:$0xff] }
  0x88   : > { %609 = vmatpush2.msra.mxu1 %v417_v35  ;;  %497 = vmatprep.subr.mxu0 %v352_v36  ;;  %v744_v23 = vld [vmem:[#allocation7 + $0x1b8] sm:$0xff]  ;;  %v743_v25 = vld [vmem:[#allocation7 + $0x1b0] sm:$0xff]  ;;  %v1760_v26 = vld [vmem:[%s1693_s15 + $0x60] sm:$0xff] }
  0x89   : > { %610 = vmatprep.subr.mxu1 %v416_v37  ;;  %498 = vmatpush2.msra.mxu0 %v351_v38  ;;  %v1763_v27 = vld [vmem:[%s1693_s15 + $0x70] sm:$0xff]  ;;  %v1766_v28 = vld [vmem:[%s1693_s15 + $0x88] sm:$0xff]  ;;  %v1769_v29 = vld [vmem:[%s1693_s15 + $0x98] sm:$0xff] }
  0x8a   : > { %611 = vmatpush2.msra.mxu1 %v415_v39  ;;  %499 = vmatprep.subr.mxu0 %v350_v40  ;;  %v738_v30 = vld [vmem:[#allocation7 + $0x188] sm:$0xff]  ;;  %v740_v31 = vld [vmem:[#allocation7 + $0x198] sm:$0xff]  ;;  %v737_v32 = vld [vmem:[#allocation7 + $0x180] sm:$0xff] }
  0x8b   : > { %612 = vmatprep.subr.mxu1 %v414_v41  ;;  %500 = vmatpush2.msra.mxu0 %v349_v42  ;;  %v739_v33 = vld [vmem:[#allocation7 + $0x190] sm:$0xff]  ;;  %v1776_v34 = vld [vmem:[%s1693_s15 + $0x80] sm:$0xff]  ;;  %v1782_v36 = vld [vmem:[%s1693_s15 + $0xa8] sm:$0xff] }
  0x8c   : > { %613 = vmatpush2.msra.mxu1 %v413_v43  ;;  %501 = vmatprep.subr.mxu0 %v348_v44  ;;  %v1779_v35 = vld [vmem:[%s1693_s15 + $0x90] sm:$0xff]  ;;  %v1785_v37 = vld [vmem:[%s1693_s15 + $0xb8] sm:$0xff]  ;;  %v734_v38 = vld [vmem:[#allocation7 + $0x168] sm:$0xff] }
  0x8d   : > { %614 = vmatprep.subr.mxu1 %v412_v45  ;;  %502 = vmatpush2.msra.mxu0 %v347_v46  ;;  %v736_v39 = vld [vmem:[#allocation7 + $0x178] sm:$0xff]  ;;  %v733_v40 = vld [vmem:[#allocation7 + $0x160] sm:$0xff]  ;;  %v735_v41 = vld [vmem:[#allocation7 + $0x170] sm:$0xff] }
  0x8e   : > { %615 = vmatpush2.msra.mxu1 %v411_v47  ;;  %503 = vmatprep.subr.mxu0 %v346_v48  ;;  %v1792_v42 = vld [vmem:[%s1693_s15 + $0xa0] sm:$0xff]  ;;  %v1795_v43 = vld [vmem:[%s1693_s15 + $0xb0] sm:$0xff]  ;;  %v1798_v44 = vld [vmem:[%s1693_s15 + $0xc8] sm:$0xff] }
  0x8f   : > { %616 = vmatprep.subr.mxu1 %v410_v49  ;;  %504 = vmatpush2.msra.mxu0 %v345_v50  ;;  %v1801_v45 = vld [vmem:[%s1693_s15 + $0xd8] sm:$0xff]  ;;  %v730_v46 = vld [vmem:[#allocation7 + $0x148] sm:$0xff]  ;;  %v729_v48 = vld [vmem:[#allocation7 + $0x140] sm:$0xff] }
  0x90   : > { %617 = vmatpush2.msra.mxu1 %v409_v51  ;;  %505 = vmatprep.subr.mxu0 %v344_v52  ;;  %v732_v47 = vld [vmem:[#allocation7 + $0x158] sm:$0xff]  ;;  %v731_v49 = vld [vmem:[#allocation7 + $0x150] sm:$0xff]  ;;  %v1808_v50 = vld [vmem:[%s1693_s15 + $0xc0] sm:$0xff] }
  0x91   : > { %618 = vmatprep.subr.mxu1 %v408_v53  ;;  %506 = vmatpush2.msra.mxu0 %v343_v54  ;;  %v1811_v51 = vld [vmem:[%s1693_s15 + $0xd0] sm:$0xff]  ;;  %v1814_v52 = vld [vmem:[%s1693_s15 + $0xe8] sm:$0xff]  ;;  %v1817_v53 = vld [vmem:[%s1693_s15 + $0xf8] sm:$0xff] }
  0x92   : > { %619 = vmatpush2.msra.mxu1 %v407_v55  ;;  %507 = vmatprep.subr.mxu0 %v342_v56  ;;  %v726_v54 = vld [vmem:[#allocation7 + $0x128] sm:$0xff]  ;;  %v728_v55 = vld [vmem:[#allocation7 + $0x138] sm:$0xff]  ;;  %v725_v56 = vld [vmem:[#allocation7 + $0x120] sm:$0xff] }
  0x93   : > { %620 = vmatprep.subr.mxu1 %v406_v57  ;;  %508 = vmatpush2.msra.mxu0 %v341_v58  ;;  %v727_v57 = vld [vmem:[#allocation7 + $0x130] sm:$0xff]  ;;  %v1824_v58 = vld [vmem:[%s1693_s15 + $0xe0] sm:$0xff] }
  0x94   : > { %621 = vmatpush2.msra.mxu1 %v405_v59  ;;  %509 = vmatprep.subr.mxu0 %v340_v60  ;;  %v1827_v59 = vld [vmem:[%s1693_s15 + $0xf0] sm:$0xff]  ;;  %v722_v60 = vld [vmem:[#allocation7 + $0x108] sm:$0xff] }
  0x95   : > { %622 = vmatprep.subr.mxu1 %v404_v61  ;;  %510 = vmatpush2.msra.mxu0 %v339_v62  ;;  %v724_v61 = vld [vmem:[#allocation7 + $0x118] sm:$0xff]  ;;  %v721_v62 = vld [vmem:[#allocation7 + $0x100] sm:$0xff] }
  0x96   : > { %511 = vmatprep.mubr.f32.mxu0 %v1704_v63  ;;  %623 = vmatpush2.msra.mxu1 %v403_v0  ;;  %v723_v0 = vld [vmem:[#allocation7 + $0x110] sm:$0xff] }
  0x97   : > { %624 = vmatprep.mubr.f32.mxu1 %v1707_v1  ;;  %512 = vmatmul.mubr.f32.vlgmr.msra.gmra.mxu0 %v1710_v2 }
  0x98   : > { %625 = vmatmul.mubr.f32.vlgmr.msra.gmra.mxu1 %v1713_v3  ;;  %517 = vmatprep.mubr.f32.mxu0 %v1717_v4 }
  0x99   : > { %630 = vmatprep.mubr.f32.mxu1 %v1720_v5  ;;  %839 = vmatprep.subr.mxu0 %v750_v6  ;;  %v718_v6 = vld [vmem:[#allocation7 + $0xe8] sm:$0xff] }
  0x9a   : > { %952 = vmatprep.subr.mxu1 %v752_v7  ;;  %840 = vmatpush1.msra.mxu0 %v749_v8  ;;  %v720_v7 = vld [vmem:[#allocation7 + $0xf8] sm:$0xff]  ;;  %v717_v8 = vld [vmem:[#allocation7 + $0xe0] sm:$0xff] }
  0x9b   : > { %953 = vmatpush1.msra.mxu1 %v751_v9  ;;  %518 = vmatmul.mubr.f32.gmra.mxu0 %v1728_v10  ;;  %v719_v9 = vld [vmem:[#allocation7 + $0xf0] sm:$0xff] }
  0x9c   : > { %631 = vmatmul.mubr.f32.gmra.mxu1 %v1731_v11  ;;  %523 = vmatprep.mubr.f32.mxu0 %v1734_v12 }
  0x9d   : > { %636 = vmatprep.mubr.f32.mxu1 %v1737_v13  ;;  %841 = vmatprep.subr.mxu0 %v746_v14  ;;  %v714_v14 = vld [vmem:[#allocation7 + $0xc8] sm:$0xff] }
  0x9e   : > { %954 = vmatprep.subr.mxu1 %v748_v15  ;;  %842 = vmatpush1.msra.mxu0 %v745_v16  ;;  %v716_v15 = vld [vmem:[#allocation7 + $0xd8] sm:$0xff]  ;;  %v713_v16 = vld [vmem:[#allocation7 + $0xc0] sm:$0xff] }
  0x9f   : > { %955 = vmatpush1.msra.mxu1 %v747_v17  ;;  %524 = vmatmul.mubr.f32.gmra.mxu0 %v1744_v18  ;;  %v715_v17 = vld [vmem:[#allocation7 + $0xd0] sm:$0xff] }
  0xa0   : > { %637 = vmatmul.mubr.f32.gmra.mxu1 %v1747_v19  ;;  %529 = vmatprep.mubr.f32.mxu0 %v1750_v20 }
  0xa1   : > { %642 = vmatprep.mubr.f32.mxu1 %v1753_v21  ;;  %843 = vmatprep.subr.mxu0 %v742_v22  ;;  %v710_v22 = vld [vmem:[#allocation7 + $0xa8] sm:$0xff] }
  0xa2   : > { %956 = vmatprep.subr.mxu1 %v744_v23  ;;  %844 = vmatpush1.msra.mxu0 %v741_v24  ;;  %v712_v23 = vld [vmem:[#allocation7 + $0xb8] sm:$0xff]  ;;  %v709_v24 = vld [vmem:[#allocation7 + $0xa0] sm:$0xff] }
  0xa3   : > { %957 = vmatpush1.msra.mxu1 %v743_v25  ;;  %530 = vmatmul.mubr.f32.gmra.mxu0 %v1760_v26  ;;  %v711_v25 = vld [vmem:[#allocation7 + $0xb0] sm:$0xff] }
  0xa4   : > { %643 = vmatmul.mubr.f32.gmra.mxu1 %v1763_v27  ;;  %535 = vmatprep.mubr.f32.mxu0 %v1766_v28 }
  0xa5   : > { %648 = vmatprep.mubr.f32.mxu1 %v1769_v29  ;;  %845 = vmatprep.subr.mxu0 %v738_v30  ;;  %v706_v30 = vld [vmem:[#allocation7 + $0x88] sm:$0xff] }
  0xa6   : > { %958 = vmatprep.subr.mxu1 %v740_v31  ;;  %846 = vmatpush1.msra.mxu0 %v737_v32  ;;  %v708_v31 = vld [vmem:[#allocation7 + $0x98] sm:$0xff]  ;;  %v705_v32 = vld [vmem:[#allocation7 + $0x80] sm:$0xff] }
  0xa7   : > { %959 = vmatpush1.msra.mxu1 %v739_v33  ;;  %536 = vmatmul.mubr.f32.gmra.mxu0 %v1776_v34  ;;  %v707_v33 = vld [vmem:[#allocation7 + $0x90] sm:$0xff] }
  0xa8   : > { %649 = vmatmul.mubr.f32.gmra.mxu1 %v1779_v35  ;;  %541 = vmatprep.mubr.f32.mxu0 %v1782_v36 }
  0xa9   : > { %654 = vmatprep.mubr.f32.mxu1 %v1785_v37  ;;  %847 = vmatprep.subr.mxu0 %v734_v38  ;;  %v702_v38 = vld [vmem:[#allocation7 + $0x68] sm:$0xff] }
  0xaa   : > { %960 = vmatprep.subr.mxu1 %v736_v39  ;;  %848 = vmatpush1.msra.mxu0 %v733_v40  ;;  %v704_v39 = vld [vmem:[#allocation7 + $0x78] sm:$0xff]  ;;  %v701_v40 = vld [vmem:[#allocation7 + $0x60] sm:$0xff] }
  0xab   : > { %961 = vmatpush1.msra.mxu1 %v735_v41  ;;  %542 = vmatmul.mubr.f32.gmra.mxu0 %v1792_v42  ;;  %v703_v41 = vld [vmem:[#allocation7 + $0x70] sm:$0xff] }
  0xac   : > { %655 = vmatmul.mubr.f32.gmra.mxu1 %v1795_v43  ;;  %547 = vmatprep.mubr.f32.mxu0 %v1798_v44 }
  0xad   : > { %660 = vmatprep.mubr.f32.mxu1 %v1801_v45  ;;  %849 = vmatprep.subr.mxu0 %v730_v46  ;;  %v698_v46 = vld [vmem:[#allocation7 + $0x48] sm:$0xff] }
  0xae   : > { %962 = vmatprep.subr.mxu1 %v732_v47  ;;  %850 = vmatpush1.msra.mxu0 %v729_v48  ;;  %v700_v47 = vld [vmem:[#allocation7 + $0x58] sm:$0xff]  ;;  %v697_v48 = vld [vmem:[#allocation7 + $0x40] sm:$0xff] }
  0xaf   : > { %963 = vmatpush1.msra.mxu1 %v731_v49  ;;  %548 = vmatmul.mubr.f32.gmra.mxu0 %v1808_v50  ;;  %v699_v49 = vld [vmem:[#allocation7 + $0x50] sm:$0xff] }
  0xb0   : > { %661 = vmatmul.mubr.f32.gmra.mxu1 %v1811_v51  ;;  %553 = vmatprep.mubr.f32.mxu0 %v1814_v52 }
  0xb1   : > { %666 = vmatprep.mubr.f32.mxu1 %v1817_v53  ;;  %851 = vmatprep.subr.mxu0 %v726_v54  ;;  %v694_v54 = vld [vmem:[#allocation7 + $0x28] sm:$0xff] }
  0xb2   : > { %964 = vmatprep.subr.mxu1 %v728_v55  ;;  %852 = vmatpush1.msra.mxu0 %v725_v56  ;;  %v696_v55 = vld [vmem:[#allocation7 + $0x38] sm:$0xff]  ;;  %v693_v56 = vld [vmem:[#allocation7 + $0x20] sm:$0xff] }
  0xb3   : > { %965 = vmatpush1.msra.mxu1 %v727_v57  ;;  %554 = vmatmul.mubr.f32.gmra.mxu0 %v1824_v58  ;;  %v695_v57 = vld [vmem:[#allocation7 + $0x30] sm:$0xff] }
  0xb4   : > { %667 = vmatmul.mubr.f32.gmra.mxu1 %v1827_v59  ;;  %853 = vmatprep.subr.mxu0 %v722_v60  ;;  %v690_v60 = vld [vmem:[#allocation7 + $0x8] sm:$0xff] }
  0xb5   : > { %966 = vmatprep.subr.mxu1 %v724_v61  ;;  %854 = vmatpush1.msra.mxu0 %v721_v62  ;;  %v692_v61 = vld [vmem:[#allocation7 + $0x18] sm:$0xff]  ;;  %v689_v62 = vld [vmem:[#allocation7] sm:$0xff] }
  0xb6   : > { %967 = vmatpush1.msra.mxu1 %v723_v0  ;;  %855 = vmatprep.subr.mxu0 %v718_v6  ;;  %v691_v0 = vld [vmem:[#allocation7 + $0x10] sm:$0xff]  ;;  %v814_v6 = vld [vmem:[#allocation7 + $0x3e8] sm:$0xff] }
  0xb7   : > { %968 = vmatprep.subr.mxu1 %v720_v7  ;;  %856 = vmatpush1.msra.mxu0 %v717_v8  ;;  %v816_v7 = vld [vmem:[#allocation7 + $0x3f8] sm:$0xff]  ;;  %v813_v8 = vld [vmem:[#allocation7 + $0x3e0] sm:$0xff] }
  0xb8   : > { %969 = vmatpush1.msra.mxu1 %v719_v9  ;;  %857 = vmatprep.subr.mxu0 %v714_v14  ;;  %v815_v9 = vld [vmem:[#allocation7 + $0x3f0] sm:$0xff]  ;;  %v810_v14 = vld [vmem:[#allocation7 + $0x3c8] sm:$0xff] }
  0xb9   : > { %970 = vmatprep.subr.mxu1 %v716_v15  ;;  %858 = vmatpush1.msra.mxu0 %v713_v16  ;;  %v812_v15 = vld [vmem:[#allocation7 + $0x3d8] sm:$0xff]  ;;  %v809_v16 = vld [vmem:[#allocation7 + $0x3c0] sm:$0xff] }
  0xba   : > { %971 = vmatpush1.msra.mxu1 %v715_v17  ;;  %859 = vmatprep.subr.mxu0 %v710_v22  ;;  %v811_v17 = vld [vmem:[#allocation7 + $0x3d0] sm:$0xff]  ;;  %v806_v22 = vld [vmem:[#allocation7 + $0x3a8] sm:$0xff] }
  0xbb   : > { %972 = vmatprep.subr.mxu1 %v712_v23  ;;  %860 = vmatpush1.msra.mxu0 %v709_v24  ;;  %v808_v23 = vld [vmem:[#allocation7 + $0x3b8] sm:$0xff]  ;;  %v805_v24 = vld [vmem:[#allocation7 + $0x3a0] sm:$0xff] }
  0xbc   : > { %973 = vmatpush1.msra.mxu1 %v711_v25  ;;  %861 = vmatprep.subr.mxu0 %v706_v30  ;;  %v807_v25 = vld [vmem:[#allocation7 + $0x3b0] sm:$0xff]  ;;  %v802_v30 = vld [vmem:[#allocation7 + $0x388] sm:$0xff] }
  0xbd   : > { %974 = vmatprep.subr.mxu1 %v708_v31  ;;  %862 = vmatpush1.msra.mxu0 %v705_v32  ;;  %v804_v31 = vld [vmem:[#allocation7 + $0x398] sm:$0xff]  ;;  %v801_v32 = vld [vmem:[#allocation7 + $0x380] sm:$0xff] }
  0xbe   : > { %975 = vmatpush1.msra.mxu1 %v707_v33  ;;  %863 = vmatprep.subr.mxu0 %v702_v38  ;;  %v803_v33 = vld [vmem:[#allocation7 + $0x390] sm:$0xff]  ;;  %v798_v38 = vld [vmem:[#allocation7 + $0x368] sm:$0xff] }
  0xbf   : > { %976 = vmatprep.subr.mxu1 %v704_v39  ;;  %864 = vmatpush1.msra.mxu0 %v701_v40  ;;  %v800_v39 = vld [vmem:[#allocation7 + $0x378] sm:$0xff]  ;;  %v797_v40 = vld [vmem:[#allocation7 + $0x360] sm:$0xff] }
  0xc0   : > { %977 = vmatpush1.msra.mxu1 %v703_v41  ;;  %865 = vmatprep.subr.mxu0 %v698_v46  ;;  %v799_v41 = vld [vmem:[#allocation7 + $0x370] sm:$0xff]  ;;  %v794_v46 = vld [vmem:[#allocation7 + $0x348] sm:$0xff] }
  0xc1   : > { %978 = vmatprep.subr.mxu1 %v700_v47  ;;  %866 = vmatpush1.msra.mxu0 %v697_v48  ;;  %v796_v47 = vld [vmem:[#allocation7 + $0x358] sm:$0xff]  ;;  %v793_v48 = vld [vmem:[#allocation7 + $0x340] sm:$0xff] }
  0xc2   : > { %979 = vmatpush1.msra.mxu1 %v699_v49  ;;  %867 = vmatprep.subr.mxu0 %v694_v54  ;;  %v795_v49 = vld [vmem:[#allocation7 + $0x350] sm:$0xff]  ;;  %v790_v54 = vld [vmem:[#allocation7 + $0x328] sm:$0xff] }
  0xc3   : > { %980 = vmatprep.subr.mxu1 %v696_v55  ;;  %868 = vmatpush1.msra.mxu0 %v693_v56  ;;  %v792_v55 = vld [vmem:[#allocation7 + $0x338] sm:$0xff]  ;;  %v789_v56 = vld [vmem:[#allocation7 + $0x320] sm:$0xff] }
  0xc4   : > { %981 = vmatpush1.msra.mxu1 %v695_v57  ;;  %869 = vmatprep.subr.mxu0 %v690_v60  ;;  %v791_v57 = vld [vmem:[#allocation7 + $0x330] sm:$0xff]  ;;  %v786_v60 = vld [vmem:[#allocation7 + $0x308] sm:$0xff] }
  0xc5   : > { %982 = vmatprep.subr.mxu1 %v692_v61  ;;  %870 = vmatpush1.msra.mxu0 %v689_v62  ;;  %v788_v61 = vld [vmem:[#allocation7 + $0x318] sm:$0xff]  ;;  %v785_v62 = vld [vmem:[#allocation7 + $0x300] sm:$0xff] }
  0xc6   : > { %983 = vmatpush1.msra.mxu1 %v691_v0  ;;  %871 = vmatprep.subr.mxu0 %v814_v6  ;;  %v787_v0 = vld [vmem:[#allocation7 + $0x310] sm:$0xff]  ;;  %v782_v6 = vld [vmem:[#allocation7 + $0x2e8] sm:$0xff] }
  0xc7   : > { %984 = vmatprep.subr.mxu1 %v816_v7  ;;  %872 = vmatpush2.msra.mxu0 %v813_v8  ;;  %v784_v7 = vld [vmem:[#allocation7 + $0x2f8] sm:$0xff]  ;;  %v781_v8 = vld [vmem:[#allocation7 + $0x2e0] sm:$0xff] }
  0xc8   : > { %985 = vmatpush2.msra.mxu1 %v815_v9  ;;  %873 = vmatprep.subr.mxu0 %v810_v14  ;;  %v783_v9 = vld [vmem:[#allocation7 + $0x2f0] sm:$0xff]  ;;  %v778_v14 = vld [vmem:[#allocation7 + $0x2c8] sm:$0xff] }
  0xc9   : > { %986 = vmatprep.subr.mxu1 %v812_v15  ;;  %874 = vmatpush2.msra.mxu0 %v809_v16  ;;  %v780_v15 = vld [vmem:[#allocation7 + $0x2d8] sm:$0xff]  ;;  %v777_v16 = vld [vmem:[#allocation7 + $0x2c0] sm:$0xff] }
  0xca   : > { %987 = vmatpush2.msra.mxu1 %v811_v17  ;;  %875 = vmatprep.subr.mxu0 %v806_v22  ;;  %v779_v17 = vld [vmem:[#allocation7 + $0x2d0] sm:$0xff]  ;;  %v774_v22 = vld [vmem:[#allocation7 + $0x2a8] sm:$0xff] }
  0xcb   : > { %988 = vmatprep.subr.mxu1 %v808_v23  ;;  %876 = vmatpush2.msra.mxu0 %v805_v24  ;;  %v776_v23 = vld [vmem:[#allocation7 + $0x2b8] sm:$0xff]  ;;  %v773_v24 = vld [vmem:[#allocation7 + $0x2a0] sm:$0xff] }
  0xcc   : > { %989 = vmatpush2.msra.mxu1 %v807_v25  ;;  %877 = vmatprep.subr.mxu0 %v802_v30  ;;  %v775_v25 = vld [vmem:[#allocation7 + $0x2b0] sm:$0xff]  ;;  %v770_v30 = vld [vmem:[#allocation7 + $0x288] sm:$0xff] }
  0xcd   : > { %990 = vmatprep.subr.mxu1 %v804_v31  ;;  %878 = vmatpush2.msra.mxu0 %v801_v32  ;;  %v772_v31 = vld [vmem:[#allocation7 + $0x298] sm:$0xff]  ;;  %v769_v32 = vld [vmem:[#allocation7 + $0x280] sm:$0xff] }
  0xce   : > { %991 = vmatpush2.msra.mxu1 %v803_v33  ;;  %879 = vmatprep.subr.mxu0 %v798_v38  ;;  %v771_v33 = vld [vmem:[#allocation7 + $0x290] sm:$0xff]  ;;  %v766_v38 = vld [vmem:[#allocation7 + $0x268] sm:$0xff] }
  0xcf   : > { %992 = vmatprep.subr.mxu1 %v800_v39  ;;  %880 = vmatpush2.msra.mxu0 %v797_v40  ;;  %v768_v39 = vld [vmem:[#allocation7 + $0x278] sm:$0xff]  ;;  %v765_v40 = vld [vmem:[#allocation7 + $0x260] sm:$0xff] }
  0xd0   : > { %993 = vmatpush2.msra.mxu1 %v799_v41  ;;  %881 = vmatprep.subr.mxu0 %v794_v46  ;;  %v767_v41 = vld [vmem:[#allocation7 + $0x270] sm:$0xff]  ;;  %v762_v46 = vld [vmem:[#allocation7 + $0x248] sm:$0xff] }
  0xd1   : > { %994 = vmatprep.subr.mxu1 %v796_v47  ;;  %882 = vmatpush2.msra.mxu0 %v793_v48  ;;  %v764_v47 = vld [vmem:[#allocation7 + $0x258] sm:$0xff]  ;;  %v761_v48 = vld [vmem:[#allocation7 + $0x240] sm:$0xff] }
  0xd2   : > { %995 = vmatpush2.msra.mxu1 %v795_v49  ;;  %883 = vmatprep.subr.mxu0 %v790_v54  ;;  %v763_v49 = vld [vmem:[#allocation7 + $0x250] sm:$0xff]  ;;  %v758_v54 = vld [vmem:[#allocation7 + $0x228] sm:$0xff] }
  0xd3   : > { %996 = vmatprep.subr.mxu1 %v792_v55  ;;  %884 = vmatpush2.msra.mxu0 %v789_v56  ;;  %v760_v55 = vld [vmem:[#allocation7 + $0x238] sm:$0xff]  ;;  %v757_v56 = vld [vmem:[#allocation7 + $0x220] sm:$0xff] }
  0xd4   : > { %997 = vmatpush2.msra.mxu1 %v791_v57  ;;  %885 = vmatprep.subr.mxu0 %v786_v60  ;;  %v759_v57 = vld [vmem:[#allocation7 + $0x230] sm:$0xff]  ;;  %v754_v60 = vld [vmem:[#allocation7 + $0x208] sm:$0xff] }
  0xd5   : > { %998 = vmatprep.subr.mxu1 %v788_v61  ;;  %886 = vmatpush2.msra.mxu0 %v785_v62  ;;  %v756_v61 = vld [vmem:[#allocation7 + $0x218] sm:$0xff]  ;;  %v753_v62 = vld [vmem:[#allocation7 + $0x200] sm:$0xff] }
  0xd6   : > { %999 = vmatpush2.msra.mxu1 %v787_v0  ;;  %887 = vmatprep.subr.mxu0 %v782_v6  ;;  %v755_v0 = vld [vmem:[#allocation7 + $0x210] sm:$0xff]  ;;  %v437_v6 = vlaneseq }
  0xd7   : > { %1000 = vmatprep.subr.mxu1 %v784_v7  ;;  %888 = vmatpush2.msra.mxu0 %v781_v8 }
  0xd8   : > { %1001 = vmatpush2.msra.mxu1 %v783_v9  ;;  %889 = vmatprep.subr.mxu0 %v778_v14  ;;  %v1831_v7 = vshrl.u32 %v437_v6, 7  ;;  %v435_v9 = vld [vmem:[%s2030_s2] sm:$0x3] }
  0xd9   : > { %1002 = vmatprep.subr.mxu1 %v780_v15  ;;  %890 = vmatpush2.msra.mxu0 %v777_v16 }
  0xda   : > { %1003 = vmatpush2.msra.mxu1 %v779_v17  ;;  %891 = vmatprep.subr.mxu0 %v774_v22  ;;  %v439_v8 = vsub.s32 0, %v1831_v7  ;;  %v443_v14 = vsub.s32 1, %v1831_v7 }
  0xdb   : > { %1004 = vmatprep.subr.mxu1 %v776_v23  ;;  %892 = vmatpush2.msra.mxu0 %v773_v24 }
  0xdc   : > { %1005 = vmatpush2.msra.mxu1 %v775_v25  ;;  %893 = vmatprep.subr.mxu0 %v770_v30  ;;  %v1840_v15 = vrot.slane %v435_v9, %v439_v8  ;;  %v1844_v16 = vrot.slane %v435_v9, %v443_v14 }
  0xdd   : > { %1006 = vmatprep.subr.mxu1 %v772_v31  ;;  %894 = vmatpush2.msra.mxu0 %v769_v32 }
  0xde   : > { %1007 = vmatpush2.msra.mxu1 %v771_v33  ;;  %895 = vmatprep.subr.mxu0 %v766_v38 }
  0xdf   : > { %1008 = vmatprep.subr.mxu1 %v768_v39  ;;  %896 = vmatpush2.msra.mxu0 %v765_v40 }
  0xe0   : > { %1009 = vmatpush2.msra.mxu1 %v767_v41  ;;  %897 = vmatprep.subr.mxu0 %v762_v46 }
  0xe1   : > { %1010 = vmatprep.subr.mxu1 %v764_v47  ;;  %898 = vmatpush2.msra.mxu0 %v761_v48 }
  0xe2   : > { %1011 = vmatpush2.msra.mxu1 %v763_v49  ;;  %899 = vmatprep.subr.mxu0 %v758_v54 }
  0xe3   : > { %1012 = vmatprep.subr.mxu1 %v760_v55  ;;  %900 = vmatpush2.msra.mxu0 %v757_v56 }
  0xe4   : > { %1013 = vmatpush2.msra.mxu1 %v759_v57  ;;  %901 = vmatprep.subr.mxu0 %v754_v60 }
  0xe5   : > { %1014 = vmatprep.subr.mxu1 %v756_v61  ;;  %902 = vmatpush2.msra.mxu0 %v753_v62 }
  0xe6   : > { %1015 = vmatpush2.msra.mxu1 %v755_v0 }
 0x157   : > { %v513_v17 = vpop.f32.mrf.mxu0 }
 0x158   : > { %v626_v22 = vpop.f32.mrf.mxu1  ;;  %v514_v23 = vadd.f32 %v513_v17, %v1840_v15 }
 0x159   : > { %v515_v24 = vpop.f32.mrf.mxu0 }
 0x15a   : > { %v628_v25 = vpop.f32.mrf.mxu1  ;;  %v516_v30 = vadd.f32 %v515_v24, %v1844_v16  ;;  %v627_v31 = vadd.f32 %v626_v22, %v514_v23 }
 0x15b   : > { %v519_v32 = vpop.f32.mrf.mxu0 }
 0x15c   : > { %v632_v33 = vpop.f32.mrf.mxu1  ;;  %v629_v38 = vadd.f32 %v628_v25, %v516_v30  ;;  %v520_v39 = vadd.f32 %v519_v32, %v1840_v15  ;;  %v673_v48 = vmax.f32 %v627_v31, 0.0 }
 0x15d   : > { %v521_v40 = vpop.f32.mrf.mxu0 }
 0x15e   : > { %v634_v41 = vpop.f32.mrf.mxu1  ;;  %v674_v46 = vmax.f32 %v629_v38, 0.0  ;;  %v522_v47 = vadd.f32 %v521_v40, %v1844_v16  ;;  %v633_v49 = vadd.f32 %v632_v33, %v520_v39 }
 0x15f   : > { %v525_v54 = vpop.f32.mrf.mxu0 }
 0x160   : > { %v638_v55 = vpop.f32.mrf.mxu1  ;;  %v635_v56 = vadd.f32 %v634_v41, %v522_v47  ;;  %v526_v57 = vadd.f32 %v525_v54, %v1840_v15  ;;  %903 = vmatprep.mubr.f32.mxu0 %v674_v46  ;;  %1016 = vmatprep.mubr.f32.mxu1 %v674_v46  ;;  %v675_v6 = vmax.f32 %v633_v49, 0.0 }
 0x161   : > { %v527_v60 = vpop.f32.mrf.mxu0  ;;  %904 = vmatmul.mubr.f32.vlgmr.msra.gmra.mxu0 %v673_v48  ;;  %1017 = vmatmul.mubr.f32.vlgmr.msra.gmra.mxu1 %v673_v48 }
 0x162   : > { %v640_v61 = vpop.f32.mrf.mxu1  ;;  %v676_v62 = vmax.f32 %v635_v56, 0.0  ;;  %v528_v0 = vadd.f32 %v527_v60, %v1844_v16  ;;  %v639_v9 = vadd.f32 %v638_v55, %v526_v57 }
 0x163   : > { %v531_v17 = vpop.f32.mrf.mxu0 }
 0x164   : > { %v644_v22 = vpop.f32.mrf.mxu1  ;;  %v641_v23 = vadd.f32 %v640_v61, %v528_v0  ;;  %v532_v24 = vadd.f32 %v531_v17, %v1840_v15  ;;  %909 = vmatprep.mubr.f32.mxu0 %v676_v62  ;;  %1022 = vmatprep.mubr.f32.mxu1 %v676_v62  ;;  %v677_v33 = vmax.f32 %v639_v9, 0.0 }
 0x165   : > { %v533_v25 = vpop.f32.mrf.mxu0  ;;  %910 = vmatmul.mubr.f32.gmra.mxu0 %v675_v6  ;;  %1023 = vmatmul.mubr.f32.gmra.mxu1 %v675_v6 }
 0x166   : > { %v646_v30 = vpop.f32.mrf.mxu1  ;;  %v678_v31 = vmax.f32 %v641_v23, 0.0  ;;  %v534_v32 = vadd.f32 %v533_v25, %v1844_v16  ;;  %v645_v38 = vadd.f32 %v644_v22, %v532_v24 }
 0x167   : > { %v537_v39 = vpop.f32.mrf.mxu0 }
 0x168   : > { %v650_v40 = vpop.f32.mrf.mxu1  ;;  %v647_v41 = vadd.f32 %v646_v30, %v534_v32  ;;  %v538_v46 = vadd.f32 %v537_v39, %v1840_v15  ;;  %915 = vmatprep.mubr.f32.mxu0 %v678_v31  ;;  %1028 = vmatprep.mubr.f32.mxu1 %v678_v31  ;;  %v679_v55 = vmax.f32 %v645_v38, 0.0 }
 0x169   : > { %v539_v47 = vpop.f32.mrf.mxu0  ;;  %916 = vmatmul.mubr.f32.gmra.mxu0 %v677_v33  ;;  %1029 = vmatmul.mubr.f32.gmra.mxu1 %v677_v33 }
 0x16a   : > { %v652_v48 = vpop.f32.mrf.mxu1  ;;  %v680_v49 = vmax.f32 %v647_v41, 0.0  ;;  %v540_v54 = vadd.f32 %v539_v47, %v1844_v16  ;;  %v651_v56 = vadd.f32 %v650_v40, %v538_v46 }
 0x16b   : > { %v543_v57 = vpop.f32.mrf.mxu0 }
 0x16c   : > { %v656_v60 = vpop.f32.mrf.mxu1  ;;  %v653_v61 = vadd.f32 %v652_v48, %v540_v54  ;;  %v544_v62 = vadd.f32 %v543_v57, %v1840_v15  ;;  %921 = vmatprep.mubr.f32.mxu0 %v680_v49  ;;  %1034 = vmatprep.mubr.f32.mxu1 %v680_v49  ;;  %v681_v22 = vmax.f32 %v651_v56, 0.0 }
 0x16d   : > { %v545_v0 = vpop.f32.mrf.mxu0  ;;  %922 = vmatmul.mubr.f32.gmra.mxu0 %v679_v55  ;;  %1035 = vmatmul.mubr.f32.gmra.mxu1 %v679_v55 }
 0x16e   : > { %v658_v6 = vpop.f32.mrf.mxu1  ;;  %v682_v9 = vmax.f32 %v653_v61, 0.0  ;;  %v546_v17 = vadd.f32 %v545_v0, %v1844_v16  ;;  %v657_v23 = vadd.f32 %v656_v60, %v544_v62 }
 0x16f   : > { %v549_v24 = vpop.f32.mrf.mxu0 }
 0x170   : > { %v662_v25 = vpop.f32.mrf.mxu1  ;;  %v659_v30 = vadd.f32 %v658_v6, %v546_v17  ;;  %v550_v31 = vadd.f32 %v549_v24, %v1840_v15  ;;  %927 = vmatprep.mubr.f32.mxu0 %v682_v9  ;;  %1040 = vmatprep.mubr.f32.mxu1 %v682_v9  ;;  %v683_v40 = vmax.f32 %v657_v23, 0.0  ;;  %v833_v9 = vsub.s32 3, %v1831_v7 }
 0x171   : > { %v551_v32 = vpop.f32.mrf.mxu0  ;;  %928 = vmatmul.mubr.f32.gmra.mxu0 %v681_v22  ;;  %1041 = vmatmul.mubr.f32.gmra.mxu1 %v681_v22 }
 0x172   : > { %v664_v33 = vpop.f32.mrf.mxu1  ;;  %v684_v38 = vmax.f32 %v659_v30, 0.0  ;;  %v552_v39 = vadd.f32 %v551_v32, %v1844_v16  ;;  %v663_v41 = vadd.f32 %v662_v25, %v550_v31 }
 0x173   : > { %v555_v46 = vpop.f32.mrf.mxu0 }
 0x174   : > { %v668_v47 = vpop.f32.mrf.mxu1  ;;  %v665_v48 = vadd.f32 %v664_v33, %v552_v39  ;;  %v556_v49 = vadd.f32 %v555_v46, %v1840_v15  ;;  %933 = vmatprep.mubr.f32.mxu0 %v684_v38  ;;  %1046 = vmatprep.mubr.f32.mxu1 %v684_v38  ;;  %v685_v57 = vmax.f32 %v663_v41, 0.0  ;;  %v829_v15 = vsub.s32 2, %v1831_v7 }
 0x175   : > { %v557_v54 = vpop.f32.mrf.mxu0  ;;  %934 = vmatmul.mubr.f32.gmra.mxu0 %v683_v40  ;;  %1047 = vmatmul.mubr.f32.gmra.mxu1 %v683_v40 }
 0x176   : > { %v686_v55 = vmax.f32 %v665_v48, 0.0  ;;  %v558_v56 = vadd.f32 %v557_v54, %v1844_v16  ;;  %v669_v60 = vadd.f32 %v668_v47, %v556_v49  ;;  %v670_v61 = vpop.f32.mrf.mxu1  ;;  %v817_v16 = vld [vmem:[%s2032_s4] sm:$0xf] }
 0x177   : > { %v1869_v17 = vrot.slane %v817_v16, %v439_v8  ;;  %v1871_v22 = vrot.slane %v817_v16, %v829_v15  ;;  %v1875_v23 = vrot.slane %v817_v16, %v443_v14  ;;  %v1877_v24 = vrot.slane %v817_v16, %v833_v9 }
 0x178   : > { %v671_v62 = vadd.f32 %v670_v61, %v558_v56  ;;  %939 = vmatprep.mubr.f32.mxu0 %v686_v55  ;;  %1052 = vmatprep.mubr.f32.mxu1 %v686_v55  ;;  %v687_v6 = vmax.f32 %v669_v60, 0.0 }
 0x179   : > { %940 = vmatmul.mubr.f32.gmra.mxu0 %v685_v57  ;;  %1053 = vmatmul.mubr.f32.gmra.mxu1 %v685_v57 }
 0x17a   : > { %v688_v0 = vmax.f32 %v671_v62, 0.0 }
 0x17c   : > { %945 = vmatprep.mubr.f32.mxu0 %v688_v0  ;;  %1058 = vmatprep.mubr.f32.mxu1 %v688_v0 }
 0x17d   : > { %946 = vmatmul.mubr.f32.gmra.mxu0 %v687_v6  ;;  %1059 = vmatmul.mubr.f32.gmra.mxu1 %v687_v6 }
 0x221   : > { %v905_v25 = vpop.f32.mrf.mxu0  ;;  %v1018_v30 = vpop.f32.mrf.mxu1 }
 0x222   : > { %v906_v31 = vadd.f32 %v905_v25, %v1869_v17  ;;  %v1019_v32 = vadd.f32 %v1018_v30, %v1871_v22 }
 0x223   : > { %v907_v33 = vpop.f32.mrf.mxu0  ;;  %v1020_v38 = vpop.f32.mrf.mxu1 }
 0x224   : > { %v1065_v8 = vadd.f32 %v906_v31, %v1710_v2  ;;  %v1067_v39 = vadd.f32 %v1019_v32, %v1713_v3  ;;  %v908_v40 = vadd.f32 %v907_v33, %v1875_v23  ;;  %v1021_v7 = vadd.f32 %v1020_v38, %v1877_v24 }
 0x225   : > { %v911_v14 = vpop.f32.mrf.mxu0  ;;  %v1024_v41 = vpop.f32.mrf.mxu1 }
 0x226   : > { %v1097_v46 = vmax.f32 %v1065_v8, 0.0  ;;  %v1099_v47 = vmax.f32 %v1067_v39, 0.0  ;;  %v1066_v48 = vadd.f32 %v908_v40, %v1704_v63  ;;  %v1068_v49 = vadd.f32 %v1021_v7, %v1707_v1 }
 0x227   : > { %v912_v54 = vadd.f32 %v911_v14, %v1869_v17  ;;  %v1025_v55 = vadd.f32 %v1024_v41, %v1871_v22  ;;  %v913_v56 = vpop.f32.mrf.mxu0  ;;  %v1026_v2 = vpop.f32.mrf.mxu1 }
 0x228   : > { %1129 = vst [vmem:[%s1891_s12] sm:$0xff] %v1097_v46  ;;  %1131 = vst [vmem:[%s1891_s12 + $0x10] sm:$0xff] %v1099_v47  ;;  %v1098_v3 = vmax.f32 %v1066_v48, 0.0  ;;  %v1100_v57 = vmax.f32 %v1068_v49, 0.0  ;;  %v914_v63 = vadd.f32 %v913_v56, %v1875_v23  ;;  %v1027_v1 = vadd.f32 %v1026_v2, %v1877_v24 }
 0x229   : > { %v1069_v60 = vadd.f32 %v912_v54, %v1728_v10  ;;  %v1071_v61 = vadd.f32 %v1025_v55, %v1731_v11  ;;  %v917_v62 = vpop.f32.mrf.mxu0  ;;  %v1030_v0 = vpop.f32.mrf.mxu1 }
 0x22a   : > { %1130 = vst [vmem:[%s1891_s12 + $0x8] sm:$0xff] %v1098_v3  ;;  %1132 = vst [vmem:[%s1891_s12 + $0x18] sm:$0xff] %v1100_v57  ;;  %v1070_v6 = vadd.f32 %v914_v63, %v1717_v4  ;;  %v1072_v15 = vadd.f32 %v1027_v1, %v1720_v5  ;;  %v918_v16 = vadd.f32 %v917_v62, %v1869_v17 }
 0x22b   : > { %v1031_v9 = vadd.f32 %v1030_v0, %v1871_v22  ;;  %v1101_v25 = vmax.f32 %v1069_v60, 0.0  ;;  %v1103_v10 = vmax.f32 %v1071_v61, 0.0  ;;  %v919_v30 = vpop.f32.mrf.mxu0  ;;  %v1032_v11 = vpop.f32.mrf.mxu1 }
 0x22c   : > { %v1102_v31 = vmax.f32 %v1070_v6, 0.0  ;;  %v1104_v32 = vmax.f32 %v1072_v15, 0.0  ;;  %v1073_v33 = vadd.f32 %v918_v16, %v1744_v18  ;;  %v920_v4 = vadd.f32 %v919_v30, %v1875_v23 }
 0x22d   : > { %v1075_v38 = vadd.f32 %v1031_v9, %v1747_v19  ;;  %1133 = vst [vmem:[%s1891_s12 + $0x20] sm:$0xff] %v1101_v25  ;;  %1135 = vst [vmem:[%s1891_s12 + $0x30] sm:$0xff] %v1103_v10  ;;  %v1033_v5 = vadd.f32 %v1032_v11, %v1877_v24  ;;  %v923_v8 = vpop.f32.mrf.mxu0  ;;  %v1036_v39 = vpop.f32.mrf.mxu1 }
 0x22e   : > { %1134 = vst [vmem:[%s1891_s12 + $0x28] sm:$0xff] %v1102_v31  ;;  %1136 = vst [vmem:[%s1891_s12 + $0x38] sm:$0xff] %v1104_v32  ;;  %v1105_v40 = vmax.f32 %v1073_v33, 0.0  ;;  %v924_v14 = vadd.f32 %v923_v8, %v1869_v17  ;;  %v1037_v18 = vadd.f32 %v1036_v39, %v1871_v22  ;;  %v1074_v19 = vadd.f32 %v920_v4, %v1734_v12 }
 0x22f   : > { %v1107_v7 = vmax.f32 %v1075_v38, 0.0  ;;  %v1076_v41 = vadd.f32 %v1033_v5, %v1737_v13  ;;  %v925_v46 = vpop.f32.mrf.mxu0  ;;  %v1038_v47 = vpop.f32.mrf.mxu1 }
 0x230   : > { %1137 = vst [vmem:[%s1891_s12 + $0x40] sm:$0xff] %v1105_v40  ;;  %v1077_v48 = vadd.f32 %v924_v14, %v1760_v26  ;;  %v1079_v49 = vadd.f32 %v1037_v18, %v1763_v27  ;;  %v926_v54 = vadd.f32 %v925_v46, %v1875_v23  ;;  %v1039_v55 = vadd.f32 %v1038_v47, %v1877_v24 }
 0x231   : > { %1139 = vst [vmem:[%s1891_s12 + $0x50] sm:$0xff] %v1107_v7  ;;  %v1106_v56 = vmax.f32 %v1074_v19, 0.0  ;;  %v1108_v12 = vmax.f32 %v1076_v41, 0.0  ;;  %v929_v2 = vpop.f32.mrf.mxu0  ;;  %v1042_v13 = vpop.f32.mrf.mxu1 }
 0x232   : > { %v1109_v3 = vmax.f32 %v1077_v48, 0.0  ;;  %v1111_v57 = vmax.f32 %v1079_v49, 0.0  ;;  %v1078_v63 = vadd.f32 %v926_v54, %v1750_v20  ;;  %v1080_v1 = vadd.f32 %v1039_v55, %v1753_v21 }
 0x233   : > { %1138 = vst [vmem:[%s1891_s12 + $0x48] sm:$0xff] %v1106_v56  ;;  %1140 = vst [vmem:[%s1891_s12 + $0x58] sm:$0xff] %v1108_v12  ;;  %v930_v26 = vadd.f32 %v929_v2, %v1869_v17  ;;  %v1043_v27 = vadd.f32 %v1042_v13, %v1871_v22  ;;  %v931_v60 = vpop.f32.mrf.mxu0  ;;  %v1044_v61 = vpop.f32.mrf.mxu1 }
 0x234   : > { %1141 = vst [vmem:[%s1891_s12 + $0x60] sm:$0xff] %v1109_v3  ;;  %1143 = vst [vmem:[%s1891_s12 + $0x70] sm:$0xff] %v1111_v57  ;;  %v1110_v62 = vmax.f32 %v1078_v63, 0.0  ;;  %v1112_v0 = vmax.f32 %v1080_v1, 0.0  ;;  %v932_v6 = vadd.f32 %v931_v60, %v1875_v23  ;;  %v1045_v20 = vadd.f32 %v1044_v61, %v1877_v24 }
 0x235   : > { %v1081_v21 = vadd.f32 %v930_v26, %v1776_v34  ;;  %v1083_v15 = vadd.f32 %v1043_v27, %v1779_v35  ;;  %v935_v16 = vpop.f32.mrf.mxu0  ;;  %v1048_v9 = vpop.f32.mrf.mxu1 }
 0x236   : > { %1142 = vst [vmem:[%s1891_s12 + $0x68] sm:$0xff] %v1110_v62  ;;  %1144 = vst [vmem:[%s1891_s12 + $0x78] sm:$0xff] %v1112_v0  ;;  %v1082_v25 = vadd.f32 %v932_v6, %v1766_v28  ;;  %v1084_v10 = vadd.f32 %v1045_v20, %v1769_v29  ;;  %v936_v30 = vadd.f32 %v935_v16, %v1869_v17 }
 0x237   : > { %v1049_v11 = vadd.f32 %v1048_v9, %v1871_v22  ;;  %v1113_v31 = vmax.f32 %v1081_v21, 0.0  ;;  %v1115_v34 = vmax.f32 %v1083_v15, 0.0  ;;  %v937_v32 = vpop.f32.mrf.mxu0  ;;  %v1050_v35 = vpop.f32.mrf.mxu1 }
 0x238   : > { %v1114_v33 = vmax.f32 %v1082_v25, 0.0  ;;  %v1116_v38 = vmax.f32 %v1084_v10, 0.0  ;;  %v1085_v4 = vadd.f32 %v936_v30, %v1792_v42  ;;  %v938_v28 = vadd.f32 %v937_v32, %v1875_v23 }
 0x239   : > { %v1087_v5 = vadd.f32 %v1049_v11, %v1795_v43  ;;  %1145 = vst [vmem:[%s1891_s12 + $0x80] sm:$0xff] %v1113_v31  ;;  %1147 = vst [vmem:[%s1891_s12 + $0x90] sm:$0xff] %v1115_v34  ;;  %v1051_v29 = vadd.f32 %v1050_v35, %v1877_v24  ;;  %v941_v8 = vpop.f32.mrf.mxu0  ;;  %v1054_v39 = vpop.f32.mrf.mxu1 }
 0x23a   : > { %1146 = vst [vmem:[%s1891_s12 + $0x88] sm:$0xff] %v1114_v33  ;;  %1148 = vst [vmem:[%s1891_s12 + $0x98] sm:$0xff] %v1116_v38  ;;  %v1117_v40 = vmax.f32 %v1085_v4, 0.0  ;;  %v942_v14 = vadd.f32 %v941_v8, %v1869_v17  ;;  %v1055_v42 = vadd.f32 %v1054_v39, %v1871_v22  ;;  %v1086_v43 = vadd.f32 %v938_v28, %v1782_v36 }
 0x23b   : > { %v1119_v7 = vmax.f32 %v1087_v5, 0.0  ;;  %v1088_v18 = vadd.f32 %v1051_v29, %v1785_v37  ;;  %v943_v19 = vpop.f32.mrf.mxu0  ;;  %v1056_v41 = vpop.f32.mrf.mxu1 }
 0x23c   : > { %1149 = vst [vmem:[%s1891_s12 + $0xa0] sm:$0xff] %v1117_v40  ;;  %v1089_v46 = vadd.f32 %v942_v14, %v1808_v50  ;;  %v1091_v47 = vadd.f32 %v1055_v42, %v1811_v51  ;;  %v944_v48 = vadd.f32 %v943_v19, %v1875_v23  ;;  %v1057_v49 = vadd.f32 %v1056_v41, %v1877_v24 }
 0x23d   : > { %1151 = vst [vmem:[%s1891_s12 + $0xb0] sm:$0xff] %v1119_v7  ;;  %v1118_v54 = vmax.f32 %v1086_v43, 0.0  ;;  %v1120_v36 = vmax.f32 %v1088_v18, 0.0  ;;  %v947_v55 = vpop.f32.mrf.mxu0  ;;  %v1060_v37 = vpop.f32.mrf.mxu1 }
 0x23e   : > { %v1121_v56 = vmax.f32 %v1089_v46, 0.0  ;;  %v1123_v12 = vmax.f32 %v1091_v47, 0.0  ;;  %v1090_v2 = vadd.f32 %v944_v48, %v1798_v44  ;;  %v1092_v50 = vadd.f32 %v1057_v49, %v1801_v45 }
 0x23f   : > { %1150 = vst [vmem:[%s1891_s12 + $0xa8] sm:$0xff] %v1118_v54  ;;  %1152 = vst [vmem:[%s1891_s12 + $0xb8] sm:$0xff] %v1120_v36  ;;  %v948_v51 = vadd.f32 %v947_v55, %v1869_v17  ;;  %v1061_v13 = vadd.f32 %v1060_v37, %v1871_v22  ;;  %v949_v3 = vpop.f32.mrf.mxu0  ;;  %v1062_v57 = vpop.f32.mrf.mxu1 }
 0x240   : > { %1153 = vst [vmem:[%s1891_s12 + $0xc0] sm:$0xff] %v1121_v56  ;;  %1155 = vst [vmem:[%s1891_s12 + $0xd0] sm:$0xff] %v1123_v12  ;;  %v1122_v63 = vmax.f32 %v1090_v2, 0.0  ;;  %v1124_v1 = vmax.f32 %v1092_v50, 0.0  ;;  %v950_v26 = vadd.f32 %v949_v3, %v1875_v23  ;;  %v1063_v44 = vadd.f32 %v1062_v57, %v1877_v24 }
 0x241   : > { %v1093_v45 = vadd.f32 %v948_v51, %v1824_v58  ;;  %v1095_v17 = vadd.f32 %v1061_v13, %v1827_v59 }
 0x242   : > { %1154 = vst [vmem:[%s1891_s12 + $0xc8] sm:$0xff] %v1122_v63  ;;  %1156 = vst [vmem:[%s1891_s12 + $0xd8] sm:$0xff] %v1124_v1  ;;  %v1094_v22 = vadd.f32 %v950_v26, %v1814_v52  ;;  %v1096_v23 = vadd.f32 %v1063_v44, %v1817_v53 }
 0x243   : > { %v1125_v27 = vmax.f32 %v1093_v45, 0.0  ;;  %v1127_v60 = vmax.f32 %v1095_v17, 0.0 }
 0x244   : > { %v1126_v58 = vmax.f32 %v1094_v22, 0.0  ;;  %v1128_v59 = vmax.f32 %v1096_v23, 0.0 }
 0x245   : > { %1157 = vst [vmem:[%s1891_s12 + $0xe0] sm:$0xff] %v1125_v27  ;;  %1159 = vst [vmem:[%s1891_s12 + $0xf0] sm:$0xff] %v1127_v60 }
 0x246   : > { %1158 = vst [vmem:[%s1891_s12 + $0xe8] sm:$0xff] %v1126_v58  ;;  %1160 = vst [vmem:[%s1891_s12 + $0xf8] sm:$0xff] %v1128_v59 }
 0x247   : > { %1458 = shalt.err (!%p1455_p9)
}
 0x248   : > { %s1459_s15 = scalar_lea.hbm %s1980_s22, 4096  ;;  %s1463_s14 = scalar_lea.hbm %s2033_s5, 16384 }
 0x249   : > { %p1460_p12 = scmp.ne.s32.totalorder %s1980_s22, %s1459_s15  ;;  %p1464_p4 = scmp.lt.s32.totalorder %s1980_s22, %s2033_s5 }
 0x24a   : > { %p1465_p8 = scmp.lt.s32.totalorder %s1463_s14, %s1459_s15 }
 0x24b   : > { %p1461_p3 = pnand %p1460_p12, %p2051_p0 }
 0x24c   : > { %p1466_p7 = por %p1465_p8, %p1464_p4 }
 0x24d   : > { %p1462_p13 = pneg %p1461_p3 }
 0x24f   : > { %p1467_p10 = pnand %p1466_p7, %p1462_p13 }
 0x251   : > { %1470 = shalt.err (!%p1467_p10)
}
 0x252   : > { %s1523_s16 = smov 512   ;;  %s1524_s9 = smov 32  }
 0x253   : > { %1302 = dma.vmem_to_hbm [thread:$0]  (%p2051_p0), %s1982_s8, 4096, %s1980_s22, %s1162_s11, %s1523_s16, %s1523_s16, %s1524_s9  }
 0x254 PF: > { %p1324_p1 = scmp.ge.s32.totalorder %s1513_s21, 2  ;;  %s1191_s30 = sand.u32 1, %s1501_s18  }
 0x255   : > { %p2052_p2 = scmp.ne.s32.totalorder %s2040_s25, 0  ;;  %s1192_s27 = scalar_lea.sflag [#allocation4], %s1191_s30 }
 0x257   : > { %p1316_p6 = pnand %p1324_p1, %p2052_p2 }
 0x259   : > { %p1317_p11 = pneg %p1316_p6 }
 0x25b   : > { %1496 = dma.done.wait (%p1317_p11), %s1192_s27, 4096  }
 0x25c   : > { %1498 = vsyncadd (%p1317_p11), %s1192_s27, 4294963200  ;;  %p19_p5 = scmp.ge.s32.totalorder %s1629_s17, 6   ;;  %s2053_s18 = smov %s1505_s19 }
 0x25d   : > { %s2054_s19 = smov %s1509_s20  ;;  %s2055_s20 = smov %s1638_s28 }
 0x25e   : > { %s2056_s21 = smov %s1629_s17  ;;  %21 = sbr.rel (!%p19_p5) target bundleno = 6 (0x6), region = 93 }
 0x263   :  { %1197 = vsyncpa [#allocation3], 1 }
 0x264   :  { %1199 = vsyncpa [#allocation3 + $0x1], 1 }
 0x265   :  { %1200 = vsyncpa [#allocation6], 1 }
 0x266   :  { %1201 = vsyncpa [#allocation4], 1 }
 0x267   :  { %1203 = vsyncpa [#allocation4 + $0x1], 1 }

// kernel: tpu_custom_call.1
= control target key start
LH: loop header
LB: loop body
LE: loop exit
PB: predicated region body
PF: predicated region fallthrough
CT: control target
= control target key end

     0   :  { %10 = vsyncpa [#allocation3], 0  ;;  %s2028_s0 = inlined_call_operand.hbm [shape: f32[256,512], index: 0, kind: input, shape index: {}]   ;;  %s2029_s1 = inlined_call_operand.hbm [shape: f32[512,256], index: 1, kind: input, shape index: {}]   ;;  %s2030_s2 = inlined_call_operand.vmem [shape: f32[1,256], index: 2, kind: input, shape index: {}]   ;;  %s2031_s3 = inlined_call_operand.hbm [shape: f32[256,512], index: 3, kind: input, shape index: {}]   ;;  %s2032_s4 = inlined_call_operand.vmem [shape: f32[1,512], index: 4, kind: input, shape index: {}]   ;;  %s2033_s5 = inlined_call_operand.hbm [shape: f32[256,512], index: 5, kind: output, shape index: {}]  }
   0x1   :  { %12 = vsyncpa [#allocation3 + $0x1], 0 }
   0x2   :  { %13 = vsyncpa [#allocation6], 0 }
   0x3   :  { %14 = vsyncpa [#allocation4], 0 }
   0x4   :  { %16 = vsyncpa [#allocation4 + $0x1], 0  ;;  %s1555_s18 = smov 0   ;;  %s1557_s19 = smov 0  }
   0x5   :  { %s1559_s20 = smov 0   ;;  %s1561_s21 = smov 0  }
   0x6 LB: > { %s1576_s22 = sadd.s32 4294967295, %s1513_s21   ;;  %s1268_s23 = sadd.s32 4294967294, %s1513_s21   ;;  %s1513_s21 = sphi %s1561_s21, %s2056_s21   ;;  %s1509_s20 = sphi %s1559_s20, %s2055_s20   ;;  %s1505_s19 = sphi %s1557_s19, %s2054_s19   ;;  %s1501_s18 = sphi %s1555_s18, %s2053_s18  }
   0x7   : > { %p42_p0 = scmp.ne.s32.totalorder %s1505_s19, %s1501_s18  ;;  %p2034_p1 = scmp.eq.s32.totalorder %s1576_s22, 0 }
   0x8   : > { %p156_p3 = scmp.eq.s32.totalorder %s1268_s23, 3  ;;  %p1269_p5 = scmp.ge.s32.totalorder %s1513_s21, 1 }
   0x9   : > { %p1585_p4 = por %p2034_p1, %p42_p0  ;;  %p163_p7 = scmp.lt.s32.totalorder %s1513_s21, 5 }
   0xa   : > { %p1590_p6 = por %p156_p3, %p42_p0  ;;  %s1515_s27 = smov [#allocation5]  }
   0xb   : > { %s2039_s24 = scalar_select %p1585_p4, 1, 0 }
   0xc   : > { %s2040_s25 = scalar_select %p1590_p6, 1, 0 }
   0xd   : > { %p1595_p8 = pnand %p1269_p5, %p163_p7  ;;  %s175_s28 = sshll.u32 %s1515_s27, 4  ;;  %s176_s28 = int_to_ptr.vmem [resolvable:$true] %s175_s28 }
   0xe   : > { %s1516_s30 = smov [#allocation7]   ;;  %s1376_s7 = scalar_lea.vmem %s176_s28, 16384 }
   0xf   : > { %s2041_s26 = scalar_select %p1595_p8, 1, 0 }
  0x10   : > { %p1304_p9 = pneg %p1595_p8  ;;  %s191_s6 = sshll.u32 %s1516_s30, 4  ;;  %s192_s6 = int_to_ptr.vmem [resolvable:$true] %s191_s6 }
  0x11   : > { %p1377_p12 = scmp.ne.s32.totalorder %s176_s28, %s1376_s7  ;;  %p1384_p3 = scmp.lt.s32.totalorder %s176_s28, %s176_s28 }
  0x12   : > { %p1603_p10 = pnand %p1304_p9, %p2034_p1  ;;  %p1385_p5 = scmp.lt.s32.totalorder %s1376_s7, %s1376_s7 }
  0x14   : > { %p1367_p11 = pneg %p1603_p10  ;;  %p1386_p7 = por %p1385_p5, %p1384_p3 }
  0x16   : > { %p1379_p13 = pnand %p1377_p12, %p1367_p11 }
  0x18   : > { %p1380_p0 = pneg %p1379_p13 }
  0x1a   : > { %p1387_p9 = pnand %p1386_p7, %p1380_p0 }
  0x1c   : > { %1390 = shalt.err (!%p1387_p9)
}
  0x1d   : > { %s1517_s8 = smov 256   ;;  %s1518_s9 = smov 16  }
  0x1e   : > { %1307 = dma.hbm_to_vmem [thread:$0]  (!%p1603_p10), %s2029_s1, 16384, %s176_s28, [#allocation6], %s1517_s8, %s1517_s8, %s1518_s9  }
  0x1f   : > { %s1402_s12 = scalar_lea.vmem %s192_s6, 16384  ;;  %p1410_p2 = scmp.lt.s32.totalorder %s192_s6, %s192_s6 }
  0x20   : > { %p1403_p1 = scmp.ne.s32.totalorder %s192_s6, %s1402_s12  ;;  %p1411_p6 = scmp.lt.s32.totalorder %s1402_s12, %s1402_s12 }
  0x22   : > { %p1405_p12 = pnand %p1403_p1, %p1367_p11  ;;  %p1412_p3 = por %p1411_p6, %p1410_p2 }
  0x24   : > { %p1406_p13 = pneg %p1405_p12 }
  0x26   : > { %p1413_p0 = pnand %p1412_p3, %p1406_p13 }
  0x28   : > { %1416 = shalt.err (!%p1413_p0)
}
  0x29   : > { %s2035_s13 = smov 512   ;;  %s1520_s14 = smov 32  }
  0x2a   : > { %1310 = dma.hbm_to_vmem [thread:$0]  (!%p1603_p10), %s2031_s3, 16384, %s192_s6, [#allocation6], %s2035_s13, %s2035_s13, %s1520_s14  }
  0x2b   : > { %s1629_s17 = sadd.s32 1, %s1513_s21   ;;  %s29_s27 = sadd.s32 1, %s1509_s20 }
  0x2c   : > { %s26_s23 = ssub.s32 %s1513_s21, %s1629_s17  ;;  %p36_p2 = scmp.ne.s32.totalorder %s1509_s20, %s1505_s19 }
  0x2d   : > { %p27_p1 = scmp.eq.s32.totalorder %s26_s23, 0  ;;  %p37_p6 = scmp.eq.s32.totalorder %s1513_s21, 0 }
  0x2e   : > { %p2043_p5 = scmp.eq.s32.totalorder %s1576_s22, 3  ;;  %p1321_p9 = scmp.lt.s32.totalorder %s1513_s21, 4 }
  0x2f   : > { %s1638_s28 = scalar_select %p27_p1, %s1509_s20, %s29_s27  }
  0x30   : > { %p38_p11 = por %p37_p6, %p36_p2  ;;  %p1642_p7 = por %p2043_p5, %p36_p2 }
  0x31   : > { %s208_s30 = sand.u32 1, %s1509_s20   ;;  %s1289_s6 = sshll.u32 %s1513_s21, 12 }
  0x32   : > { %s2044_s29 = scalar_select %p1642_p7, 1, 0 }
  0x33   : > { %s1273_s7 = sshll.u32 %s208_s30, 8  ;;  %s1652_s10 = scalar_lea.hbm %s2028_s0, %s1289_s6 }
  0x34   : > { %s212_s11 = scalar_lea.vmem [#allocation2], %s1273_s7  ;;  %p1656_p10 = pnand %p1321_p9, %p38_p11 }
  0x35   : > { %s220_s12 = sshll.u32 %s212_s11, 4  ;;  %s1660_s16 = scalar_lea.sflag [#allocation3], %s208_s30  ;;  %s1654_s12 = int_to_ptr.vmem [resolvable:$true] %s220_s12 }
  0x36   : > { %s1417_s23 = scalar_lea.hbm %s1652_s10, 4096  ;;  %p1419_p13 = pneg %p1656_p10 }
  0x37   : > { %p1418_p12 = scmp.ne.s32.totalorder %s1652_s10, %s1417_s23  ;;  %s1422_s7 = scalar_lea.hbm %s2028_s0, 16384 }
  0x38   : > { %p1423_p1 = scmp.lt.s32.totalorder %s1652_s10, %s2028_s0  ;;  %p1424_p2 = scmp.lt.s32.totalorder %s1422_s7, %s1417_s23 }
  0x39   : > { %p1420_p3 = pnand %p1419_p13, %p1418_p12 }
  0x3a   : > { %p1425_p6 = por %p1424_p2, %p1423_p1 }
  0x3b   : > { %p1421_p0 = pneg %p1420_p3 }
  0x3d   : > { %p1426_p11 = pnand %p1425_p6, %p1421_p0 }
  0x3f   : > { %1429 = shalt.err (!%p1426_p11)
}
  0x40   : > { %s1430_s30 = scalar_lea.vmem %s1654_s12, 4096  ;;  %s1521_s11 = smov [#allocation2]  }
  0x41   : > { %p1431_p5 = scmp.ne.s32.totalorder %s1654_s12, %s1430_s30  ;;  %s1435_s13 = sshll.u32 %s1521_s11, 4  ;;  %s1436_s13 = int_to_ptr.vmem [resolvable:$false] %s1435_s13 }
  0x42   : > { %s1437_s27 = scalar_lea.vmem %s1436_s13, 8192  ;;  %p1438_p3 = scmp.lt.s32.totalorder %s1654_s12, %s1436_s13 }
  0x43   : > { %p1433_p9 = pnand %p1431_p5, %p1419_p13  ;;  %p1439_p7 = scmp.lt.s32.totalorder %s1437_s27, %s1430_s30 }
  0x45   : > { %p1434_p12 = pneg %p1433_p9  ;;  %p1440_p4 = por %p1439_p7, %p1438_p3 }
  0x47   : > { %p1441_p8 = pnand %p1440_p4, %p1434_p12 }
  0x49   : > { %1444 = shalt.err (!%p1441_p8)
}
  0x4a   : > { %s2046_s23 = smov 512   ;;  %p2047_p13 = scmp.ne.s32.totalorder %s2041_s26, 0 }
  0x4b   : > { %1314 = dma.hbm_to_vmem [thread:$0]  (!%p1656_p10), %s1652_s10, 4096, %s1654_s12, %s1660_s16, %s2046_s23, %s2046_s23, %s1520_s14  }
  0x4c   : > { %232 = sbr.rel (%p2047_p13) target bundleno = 596 (0x254), region = 40  ;;  %s1687_s6 = sand.u32 (!%p2047_p13), 1, %s1505_s19  }
  0x4d   : > { %s1278_s13 = sshll.u32 (!%p2047_p13), %s1687_s6, 8  ;;  %s235_s7 = scalar_lea.sflag (!%p2047_p13), [#allocation3], %s1687_s6 }
  0x4e   : > { %s1693_s15 = scalar_lea.vmem (!%p2047_p13), [#allocation2], %s1278_s13  ;;  %p2048_p4 = scmp.ne.s32.totalorder (!%p2047_p13), %s2039_s24, 0 }
  0x51   : > { %1488 = dma.done.wait (%p2048_p4), %s235_s7, 4096  }
  0x52   : > { %1490 = vsyncadd (%p2048_p4), %s235_s7, 4294963200  ;;  %p2049_p8 = scmp.eq.s32.totalorder %s1576_s22, 0 }
  0x54   : > { %1492 = dma.done.wait (%p2049_p8), [#allocation6], 32768   ;;  %p2050_p7 = pmov %p2049_p8 }
  0x55   : > { %v338_v0 = vld [vmem:[#allocation5 + $0xf8] sm:$0xff]  ;;  %v337_v2 = vld [vmem:[#allocation5 + $0xf0] sm:$0xff]  ;;  %v336_v4 = vld [vmem:[#allocation5 + $0xe8] sm:$0xff]  ;;  %s1891_s12 = scalar_lea.vmem [#allocation8], %s1278_s13  ;;  %s1291_s16 = sshll.u32 %s1576_s22, 12 }
  0x56   : > { %1494 = vsyncadd (%p2050_p7), [#allocation6], 4294934528  ;;  %v402_v1 = vld [vmem:[#allocation5 + $0x2f8] sm:$0xff]  ;;  %447 = vmatprep.subr.mxu0 %v338_v0  ;;  %v401_v3 = vld [vmem:[#allocation5 + $0x2f0] sm:$0xff]  ;;  %s1176_s8 = sshll.u32 %s1891_s12, 4  ;;  %s1980_s22 = scalar_lea.hbm %s2033_s5, %s1291_s16  ;;  %s1982_s8 = int_to_ptr.vmem [resolvable:$true] %s1176_s8 }
  0x57   : > { %560 = vmatprep.subr.mxu1 %v402_v1  ;;  %v400_v5 = vld [vmem:[#allocation5 + $0x2e8] sm:$0xff]  ;;  %448 = vmatpush1.msra.mxu0 %v337_v2  ;;  %v335_v6 = vld [vmem:[#allocation5 + $0xe0] sm:$0xff]  ;;  %v334_v8 = vld [vmem:[#allocation5 + $0xd8] sm:$0xff]  ;;  %s1162_s11 = scalar_lea.sflag [#allocation4], %s1687_s6  ;;  %s1445_s27 = scalar_lea.vmem %s1982_s8, 4096 }
  0x58   : > { %561 = vmatpush1.msra.mxu1 %v401_v3  ;;  %v399_v7 = vld [vmem:[#allocation5 + $0x2e0] sm:$0xff]  ;;  %449 = vmatprep.subr.mxu0 %v336_v4  ;;  %v398_v9 = vld [vmem:[#allocation5 + $0x2d8] sm:$0xff]  ;;  %v333_v10 = vld [vmem:[#allocation5 + $0xd0] sm:$0xff]  ;;  %p1446_p10 = scmp.ne.s32.totalorder %s1982_s8, %s1445_s27  ;;  %p2051_p0 = scmp.ne.s32.totalorder %s2044_s29, 0 }
  0x59   : > { %562 = vmatprep.subr.mxu1 %v400_v5  ;;  %v397_v11 = vld [vmem:[#allocation5 + $0x2d0] sm:$0xff]  ;;  %450 = vmatpush1.msra.mxu0 %v335_v6  ;;  %v332_v12 = vld [vmem:[#allocation5 + $0xc8] sm:$0xff]  ;;  %v331_v14 = vld [vmem:[#allocation5 + $0xc0] sm:$0xff]  ;;  %s1522_s23 = smov [#allocation8]  }
  0x5a   : > { %563 = vmatpush1.msra.mxu1 %v399_v7  ;;  %v396_v13 = vld [vmem:[#allocation5 + $0x2c8] sm:$0xff]  ;;  %451 = vmatprep.subr.mxu0 %v334_v8  ;;  %v395_v15 = vld [vmem:[#allocation5 + $0x2c0] sm:$0xff]  ;;  %v330_v16 = vld [vmem:[#allocation5 + $0xb8] sm:$0xff]  ;;  %p1447_p1 = pnand %p1446_p10, %p2051_p0  ;;  %s1449_s13 = sshll.u32 %s1522_s23, 4  ;;  %s1450_s13 = int_to_ptr.vmem [resolvable:$false] %s1449_s13 }
  0x5b   : > { %564 = vmatprep.subr.mxu1 %v398_v9  ;;  %452 = vmatpush1.msra.mxu0 %v333_v10  ;;  %v394_v17 = vld [vmem:[#allocation5 + $0x2b8] sm:$0xff]  ;;  %v329_v18 = vld [vmem:[#allocation5 + $0xb0] sm:$0xff]  ;;  %v328_v20 = vld [vmem:[#allocation5 + $0xa8] sm:$0xff]  ;;  %s1451_s7 = scalar_lea.vmem %s1450_s13, 8192  ;;  %p1452_p6 = scmp.lt.s32.totalorder %s1982_s8, %s1450_s13 }
  0x5c   : > { %565 = vmatpush1.msra.mxu1 %v397_v11  ;;  %453 = vmatprep.subr.mxu0 %v332_v12  ;;  %v393_v19 = vld [vmem:[#allocation5 + $0x2b0] sm:$0xff]  ;;  %v392_v21 = vld [vmem:[#allocation5 + $0x2a8] sm:$0xff]  ;;  %v327_v22 = vld [vmem:[#allocation5 + $0xa0] sm:$0xff]  ;;  %p1448_p2 = pneg %p1447_p1  ;;  %p1453_p11 = scmp.lt.s32.totalorder %s1451_s7, %s1445_s27 }
  0x5d   : > { %566 = vmatprep.subr.mxu1 %v396_v13  ;;  %454 = vmatpush1.msra.mxu0 %v331_v14  ;;  %v391_v23 = vld [vmem:[#allocation5 + $0x2a0] sm:$0xff]  ;;  %v326_v24 = vld [vmem:[#allocation5 + $0x98] sm:$0xff]  ;;  %v325_v26 = vld [vmem:[#allocation5 + $0x90] sm:$0xff] }
  0x5e   : > { %567 = vmatpush1.msra.mxu1 %v395_v15  ;;  %455 = vmatprep.subr.mxu0 %v330_v16  ;;  %v390_v25 = vld [vmem:[#allocation5 + $0x298] sm:$0xff]  ;;  %v389_v27 = vld [vmem:[#allocation5 + $0x290] sm:$0xff]  ;;  %v324_v28 = vld [vmem:[#allocation5 + $0x88] sm:$0xff]  ;;  %p1454_p5 = por %p1453_p11, %p1452_p6 }
  0x5f   : > { %568 = vmatprep.subr.mxu1 %v394_v17  ;;  %456 = vmatpush1.msra.mxu0 %v329_v18  ;;  %v388_v29 = vld [vmem:[#allocation5 + $0x288] sm:$0xff]  ;;  %v323_v30 = vld [vmem:[#allocation5 + $0x80] sm:$0xff]  ;;  %v322_v32 = vld [vmem:[#allocation5 + $0x78] sm:$0xff] }
  0x60   : > { %569 = vmatpush1.msra.mxu1 %v393_v19  ;;  %457 = vmatprep.subr.mxu0 %v328_v20  ;;  %v387_v31 = vld [vmem:[#allocation5 + $0x280] sm:$0xff]  ;;  %v386_v33 = vld [vmem:[#allocation5 + $0x278] sm:$0xff]  ;;  %v321_v34 = vld [vmem:[#allocation5 + $0x70] sm:$0xff]  ;;  %p1455_p9 = pnand %p1454_p5, %p1448_p2 }
  0x61   : > { %570 = vmatprep.subr.mxu1 %v392_v21  ;;  %458 = vmatpush1.msra.mxu0 %v327_v22  ;;  %v385_v35 = vld [vmem:[#allocation5 + $0x270] sm:$0xff]  ;;  %v320_v36 = vld [vmem:[#allocation5 + $0x68] sm:$0xff]  ;;  %v319_v38 = vld [vmem:[#allocation5 + $0x60] sm:$0xff] }
  0x62   : > { %571 = vmatpush1.msra.mxu1 %v391_v23  ;;  %459 = vmatprep.subr.mxu0 %v326_v24  ;;  %v384_v37 = vld [vmem:[#allocation5 + $0x268] sm:$0xff]  ;;  %v383_v39 = vld [vmem:[#allocation5 + $0x260] sm:$0xff]  ;;  %v318_v40 = vld [vmem:[#allocation5 + $0x58] sm:$0xff] }
  0x63   : > { %572 = vmatprep.subr.mxu1 %v390_v25  ;;  %460 = vmatpush1.msra.mxu0 %v325_v26  ;;  %v382_v41 = vld [vmem:[#allocation5 + $0x258] sm:$0xff]  ;;  %v317_v42 = vld [vmem:[#allocation5 + $0x50] sm:$0xff]  ;;  %v316_v44 = vld [vmem:[#allocation5 + $0x48] sm:$0xff] }
  0x64   : > { %573 = vmatpush1.msra.mxu1 %v389_v27  ;;  %461 = vmatprep.subr.mxu0 %v324_v28  ;;  %v381_v43 = vld [vmem:[#allocation5 + $0x250] sm:$0xff]  ;;  %v380_v45 = vld [vmem:[#allocation5 + $0x248] sm:$0xff]  ;;  %v315_v46 = vld [vmem:[#allocation5 + $0x40] sm:$0xff] }
  0x65   : > { %574 = vmatprep.subr.mxu1 %v388_v29  ;;  %462 = vmatpush1.msra.mxu0 %v323_v30  ;;  %v379_v47 = vld [vmem:[#allocation5 + $0x240] sm:$0xff]  ;;  %v314_v48 = vld [vmem:[#allocation5 + $0x38] sm:$0xff]  ;;  %v313_v50 = vld [vmem:[#allocation5 + $0x30] sm:$0xff] }
  0x66   : > { %575 = vmatpush1.msra.mxu1 %v387_v31  ;;  %463 = vmatprep.subr.mxu0 %v322_v32  ;;  %v378_v49 = vld [vmem:[#allocation5 + $0x238] sm:$0xff]  ;;  %v377_v51 = vld [vmem:[#allocation5 + $0x230] sm:$0xff]  ;;  %v312_v52 = vld [vmem:[#allocation5 + $0x28] sm:$0xff] }
  0x67   : > { %576 = vmatprep.subr.mxu1 %v386_v33  ;;  %464 = vmatpush1.msra.mxu0 %v321_v34  ;;  %v376_v53 = vld [vmem:[#allocation5 + $0x228] sm:$0xff]  ;;  %v311_v54 = vld [vmem:[#allocation5 + $0x20] sm:$0xff]  ;;  %v310_v56 = vld [vmem:[#allocation5 + $0x18] sm:$0xff] }
  0x68   : > { %577 = vmatpush1.msra.mxu1 %v385_v35  ;;  %465 = vmatprep.subr.mxu0 %v320_v36  ;;  %v375_v55 = vld [vmem:[#allocation5 + $0x220] sm:$0xff]  ;;  %v374_v57 = vld [vmem:[#allocation5 + $0x218] sm:$0xff]  ;;  %v309_v58 = vld [vmem:[#allocation5 + $0x10] sm:$0xff] }
  0x69   : > { %578 = vmatprep.subr.mxu1 %v384_v37  ;;  %466 = vmatpush1.msra.mxu0 %v319_v38  ;;  %v373_v59 = vld [vmem:[#allocation5 + $0x210] sm:$0xff]  ;;  %v308_v60 = vld [vmem:[#allocation5 + $0x8] sm:$0xff]  ;;  %v307_v62 = vld [vmem:[#allocation5] sm:$0xff] }
  0x6a   : > { %579 = vmatpush1.msra.mxu1 %v383_v39  ;;  %467 = vmatprep.subr.mxu0 %v318_v40  ;;  %v372_v61 = vld [vmem:[#allocation5 + $0x208] sm:$0xff]  ;;  %v371_v63 = vld [vmem:[#allocation5 + $0x200] sm:$0xff]  ;;  %v370_v0 = vld [vmem:[#allocation5 + $0x1f8] sm:$0xff] }
  0x6b   : > { %580 = vmatprep.subr.mxu1 %v382_v41  ;;  %468 = vmatpush1.msra.mxu0 %v317_v42  ;;  %v434_v1 = vld [vmem:[#allocation5 + $0x3f8] sm:$0xff]  ;;  %v369_v2 = vld [vmem:[#allocation5 + $0x1f0] sm:$0xff]  ;;  %v368_v4 = vld [vmem:[#allocation5 + $0x1e8] sm:$0xff] }
  0x6c   : > { %581 = vmatpush1.msra.mxu1 %v381_v43  ;;  %469 = vmatprep.subr.mxu0 %v316_v44  ;;  %v433_v3 = vld [vmem:[#allocation5 + $0x3f0] sm:$0xff]  ;;  %v432_v5 = vld [vmem:[#allocation5 + $0x3e8] sm:$0xff]  ;;  %v367_v6 = vld [vmem:[#allocation5 + $0x1e0] sm:$0xff] }
  0x6d   : > { %582 = vmatprep.subr.mxu1 %v380_v45  ;;  %470 = vmatpush1.msra.mxu0 %v315_v46  ;;  %v431_v7 = vld [vmem:[#allocation5 + $0x3e0] sm:$0xff]  ;;  %v366_v8 = vld [vmem:[#allocation5 + $0x1d8] sm:$0xff]  ;;  %v365_v10 = vld [vmem:[#allocation5 + $0x1d0] sm:$0xff] }
  0x6e   : > { %583 = vmatpush1.msra.mxu1 %v379_v47  ;;  %471 = vmatprep.subr.mxu0 %v314_v48  ;;  %v430_v9 = vld [vmem:[#allocation5 + $0x3d8] sm:$0xff]  ;;  %v429_v11 = vld [vmem:[#allocation5 + $0x3d0] sm:$0xff]  ;;  %v364_v12 = vld [vmem:[#allocation5 + $0x1c8] sm:$0xff] }
  0x6f   : > { %584 = vmatprep.subr.mxu1 %v378_v49  ;;  %472 = vmatpush1.msra.mxu0 %v313_v50  ;;  %v428_v13 = vld [vmem:[#allocation5 + $0x3c8] sm:$0xff]  ;;  %v363_v14 = vld [vmem:[#allocation5 + $0x1c0] sm:$0xff]  ;;  %v362_v16 = vld [vmem:[#allocation5 + $0x1b8] sm:$0xff] }
  0x70   : > { %585 = vmatpush1.msra.mxu1 %v377_v51  ;;  %473 = vmatprep.subr.mxu0 %v312_v52  ;;  %v427_v15 = vld [vmem:[#allocation5 + $0x3c0] sm:$0xff]  ;;  %v426_v17 = vld [vmem:[#allocation5 + $0x3b8] sm:$0xff]  ;;  %v361_v18 = vld [vmem:[#allocation5 + $0x1b0] sm:$0xff] }
  0x71   : > { %586 = vmatprep.subr.mxu1 %v376_v53  ;;  %474 = vmatpush1.msra.mxu0 %v311_v54  ;;  %v425_v19 = vld [vmem:[#allocation5 + $0x3b0] sm:$0xff]  ;;  %v360_v20 = vld [vmem:[#allocation5 + $0x1a8] sm:$0xff]  ;;  %v359_v22 = vld [vmem:[#allocation5 + $0x1a0] sm:$0xff] }
  0x72   : > { %587 = vmatpush1.msra.mxu1 %v375_v55  ;;  %475 = vmatprep.subr.mxu0 %v310_v56  ;;  %v424_v21 = vld [vmem:[#allocation5 + $0x3a8] sm:$0xff]  ;;  %v423_v23 = vld [vmem:[#allocation5 + $0x3a0] sm:$0xff]  ;;  %v358_v24 = vld [vmem:[#allocation5 + $0x198] sm:$0xff] }
  0x73   : > { %588 = vmatprep.subr.mxu1 %v374_v57  ;;  %476 = vmatpush1.msra.mxu0 %v309_v58  ;;  %v422_v25 = vld [vmem:[#allocation5 + $0x398] sm:$0xff]  ;;  %v357_v26 = vld [vmem:[#allocation5 + $0x190] sm:$0xff]  ;;  %v356_v28 = vld [vmem:[#allocation5 + $0x188] sm:$0xff] }
  0x74   : > { %589 = vmatpush1.msra.mxu1 %v373_v59  ;;  %477 = vmatprep.subr.mxu0 %v308_v60  ;;  %v421_v27 = vld [vmem:[#allocation5 + $0x390] sm:$0xff]  ;;  %v420_v29 = vld [vmem:[#allocation5 + $0x388] sm:$0xff]  ;;  %v355_v30 = vld [vmem:[#allocation5 + $0x180] sm:$0xff] }
  0x75   : > { %590 = vmatprep.subr.mxu1 %v372_v61  ;;  %478 = vmatpush1.msra.mxu0 %v307_v62  ;;  %v419_v31 = vld [vmem:[#allocation5 + $0x380] sm:$0xff]  ;;  %v354_v32 = vld [vmem:[#allocation5 + $0x178] sm:$0xff]  ;;  %v353_v34 = vld [vmem:[#allocation5 + $0x170] sm:$0xff] }
  0x76   : > { %591 = vmatpush1.msra.mxu1 %v371_v63  ;;  %479 = vmatprep.subr.mxu0 %v370_v0  ;;  %v418_v33 = vld [vmem:[#allocation5 + $0x378] sm:$0xff]  ;;  %v417_v35 = vld [vmem:[#allocation5 + $0x370] sm:$0xff]  ;;  %v352_v36 = vld [vmem:[#allocation5 + $0x168] sm:$0xff] }
  0x77   : > { %592 = vmatprep.subr.mxu1 %v434_v1  ;;  %480 = vmatpush2.msra.mxu0 %v369_v2  ;;  %v416_v37 = vld [vmem:[#allocation5 + $0x368] sm:$0xff]  ;;  %v351_v38 = vld [vmem:[#allocation5 + $0x160] sm:$0xff]  ;;  %v350_v40 = vld [vmem:[#allocation5 + $0x158] sm:$0xff] }
  0x78   : > { %593 = vmatpush2.msra.mxu1 %v433_v3  ;;  %481 = vmatprep.subr.mxu0 %v368_v4  ;;  %v415_v39 = vld [vmem:[#allocation5 + $0x360] sm:$0xff]  ;;  %v414_v41 = vld [vmem:[#allocation5 + $0x358] sm:$0xff]  ;;  %v349_v42 = vld [vmem:[#allocation5 + $0x150] sm:$0xff] }
  0x79   : > { %594 = vmatprep.subr.mxu1 %v432_v5  ;;  %482 = vmatpush2.msra.mxu0 %v367_v6  ;;  %v413_v43 = vld [vmem:[#allocation5 + $0x350] sm:$0xff]  ;;  %v348_v44 = vld [vmem:[#allocation5 + $0x148] sm:$0xff]  ;;  %v347_v46 = vld [vmem:[#allocation5 + $0x140] sm:$0xff] }
  0x7a   : > { %595 = vmatpush2.msra.mxu1 %v431_v7  ;;  %483 = vmatprep.subr.mxu0 %v366_v8  ;;  %v412_v45 = vld [vmem:[#allocation5 + $0x348] sm:$0xff]  ;;  %v411_v47 = vld [vmem:[#allocation5 + $0x340] sm:$0xff]  ;;  %v346_v48 = vld [vmem:[#allocation5 + $0x138] sm:$0xff] }
  0x7b   : > { %596 = vmatprep.subr.mxu1 %v430_v9  ;;  %484 = vmatpush2.msra.mxu0 %v365_v10  ;;  %v410_v49 = vld [vmem:[#allocation5 + $0x338] sm:$0xff]  ;;  %v345_v50 = vld [vmem:[#allocation5 + $0x130] sm:$0xff]  ;;  %v344_v52 = vld [vmem:[#allocation5 + $0x128] sm:$0xff] }
  0x7c   : > { %597 = vmatpush2.msra.mxu1 %v429_v11  ;;  %485 = vmatprep.subr.mxu0 %v364_v12  ;;  %v409_v51 = vld [vmem:[#allocation5 + $0x330] sm:$0xff]  ;;  %v408_v53 = vld [vmem:[#allocation5 + $0x328] sm:$0xff]  ;;  %v343_v54 = vld [vmem:[#allocation5 + $0x120] sm:$0xff] }
  0x7d   : > { %598 = vmatprep.subr.mxu1 %v428_v13  ;;  %486 = vmatpush2.msra.mxu0 %v363_v14  ;;  %v407_v55 = vld [vmem:[#allocation5 + $0x320] sm:$0xff]  ;;  %v342_v56 = vld [vmem:[#allocation5 + $0x118] sm:$0xff]  ;;  %v341_v58 = vld [vmem:[#allocation5 + $0x110] sm:$0xff] }
  0x7e   : > { %599 = vmatpush2.msra.mxu1 %v427_v15  ;;  %487 = vmatprep.subr.mxu0 %v362_v16  ;;  %v406_v57 = vld [vmem:[#allocation5 + $0x318] sm:$0xff]  ;;  %v405_v59 = vld [vmem:[#allocation5 + $0x310] sm:$0xff]  ;;  %v340_v60 = vld [vmem:[#allocation5 + $0x108] sm:$0xff] }
  0x7f   : > { %600 = vmatprep.subr.mxu1 %v426_v17  ;;  %488 = vmatpush2.msra.mxu0 %v361_v18  ;;  %v404_v61 = vld [vmem:[#allocation5 + $0x308] sm:$0xff]  ;;  %v339_v62 = vld [vmem:[#allocation5 + $0x100] sm:$0xff]  ;;  %v1707_v1 = vld [vmem:[%s1693_s15 + $0x18] sm:$0xff] }
  0x80   : > { %601 = vmatpush2.msra.mxu1 %v425_v19  ;;  %489 = vmatprep.subr.mxu0 %v360_v20  ;;  %v1704_v63 = vld [vmem:[%s1693_s15 + $0x8] sm:$0xff]  ;;  %v403_v0 = vld [vmem:[#allocation5 + $0x300] sm:$0xff]  ;;  %v1713_v3 = vld [vmem:[%s1693_s15 + $0x10] sm:$0xff] }
  0x81   : > { %602 = vmatprep.subr.mxu1 %v424_v21  ;;  %490 = vmatpush2.msra.mxu0 %v359_v22  ;;  %v1710_v2 = vld [vmem:[%s1693_s15] sm:$0xff]  ;;  %v1717_v4 = vld [vmem:[%s1693_s15 + $0x28] sm:$0xff]  ;;  %v1720_v5 = vld [vmem:[%s1693_s15 + $0x38] sm:$0xff] }
  0x82   : > { %603 = vmatpush2.msra.mxu1 %v423_v23  ;;  %491 = vmatprep.subr.mxu0 %v358_v24  ;;  %v750_v6 = vld [vmem:[#allocation7 + $0x1e8] sm:$0xff]  ;;  %v752_v7 = vld [vmem:[#allocation7 + $0x1f8] sm:$0xff]  ;;  %v749_v8 = vld [vmem:[#allocation7 + $0x1e0] sm:$0xff] }
  0x83   : > { %604 = vmatprep.subr.mxu1 %v422_v25  ;;  %492 = vmatpush2.msra.mxu0 %v357_v26  ;;  %v751_v9 = vld [vmem:[#allocation7 + $0x1f0] sm:$0xff]  ;;  %v1728_v10 = vld [vmem:[%s1693_s15 + $0x20] sm:$0xff]  ;;  %v1734_v12 = vld [vmem:[%s1693_s15 + $0x48] sm:$0xff] }
  0x84   : > { %605 = vmatpush2.msra.mxu1 %v421_v27  ;;  %493 = vmatprep.subr.mxu0 %v356_v28  ;;  %v1731_v11 = vld [vmem:[%s1693_s15 + $0x30] sm:$0xff]  ;;  %v1737_v13 = vld [vmem:[%s1693_s15 + $0x58] sm:$0xff]  ;;  %v746_v14 = vld [vmem:[#allocation7 + $0x1c8] sm:$0xff] }
  0x85   : > { %606 = vmatprep.subr.mxu1 %v420_v29  ;;  %494 = vmatpush2.msra.mxu0 %v355_v30  ;;  %v748_v15 = vld [vmem:[#allocation7 + $0x1d8] sm:$0xff]  ;;  %v745_v16 = vld [vmem:[#allocation7 + $0x1c0] sm:$0xff]  ;;  %v747_v17 = vld [vmem:[#allocation7 + $0x1d0] sm:$0xff] }
  0x86   : > { %607 = vmatpush2.msra.mxu1 %v419_v31  ;;  %495 = vmatprep.subr.mxu0 %v354_v32  ;;  %v1744_v18 = vld [vmem:[%s1693_s15 + $0x40] sm:$0xff]  ;;  %v1747_v19 = vld [vmem:[%s1693_s15 + $0x50] sm:$0xff]  ;;  %v1750_v20 = vld [vmem:[%s1693_s15 + $0x68] sm:$0xff] }
  0x87   : > { %608 = vmatprep.subr.mxu1 %v418_v33  ;;  %496 = vmatpush2.msra.mxu0 %v353_v34  ;;  %v1753_v21 = vld [vmem:[%s1693_s15 + $0x78] sm:$0xff]  ;;  %v742_v22 = vld [vmem:[#allocation7 + $0x1a8] sm:$0xff]  ;;  %v741_v24 = vld [vmem:[#allocation7 + $0x1a0] sm:$0xff] }
  0x88   : > { %609 = vmatpush2.msra.mxu1 %v417_v35  ;;  %497 = vmatprep.subr.mxu0 %v352_v36  ;;  %v744_v23 = vld [vmem:[#allocation7 + $0x1b8] sm:$0xff]  ;;  %v743_v25 = vld [vmem:[#allocation7 + $0x1b0] sm:$0xff]  ;;  %v1760_v26 = vld [vmem:[%s1693_s15 + $0x60] sm:$0xff] }
  0x89   : > { %610 = vmatprep.subr.mxu1 %v416_v37  ;;  %498 = vmatpush2.msra.mxu0 %v351_v38  ;;  %v1763_v27 = vld [vmem:[%s1693_s15 + $0x70] sm:$0xff]  ;;  %v1766_v28 = vld [vmem:[%s1693_s15 + $0x88] sm:$0xff]  ;;  %v1769_v29 = vld [vmem:[%s1693_s15 + $0x98] sm:$0xff] }
  0x8a   : > { %611 = vmatpush2.msra.mxu1 %v415_v39  ;;  %499 = vmatprep.subr.mxu0 %v350_v40  ;;  %v738_v30 = vld [vmem:[#allocation7 + $0x188] sm:$0xff]  ;;  %v740_v31 = vld [vmem:[#allocation7 + $0x198] sm:$0xff]  ;;  %v737_v32 = vld [vmem:[#allocation7 + $0x180] sm:$0xff] }
  0x8b   : > { %612 = vmatprep.subr.mxu1 %v414_v41  ;;  %500 = vmatpush2.msra.mxu0 %v349_v42  ;;  %v739_v33 = vld [vmem:[#allocation7 + $0x190] sm:$0xff]  ;;  %v1776_v34 = vld [vmem:[%s1693_s15 + $0x80] sm:$0xff]  ;;  %v1782_v36 = vld [vmem:[%s1693_s15 + $0xa8] sm:$0xff] }
  0x8c   : > { %613 = vmatpush2.msra.mxu1 %v413_v43  ;;  %501 = vmatprep.subr.mxu0 %v348_v44  ;;  %v1779_v35 = vld [vmem:[%s1693_s15 + $0x90] sm:$0xff]  ;;  %v1785_v37 = vld [vmem:[%s1693_s15 + $0xb8] sm:$0xff]  ;;  %v734_v38 = vld [vmem:[#allocation7 + $0x168] sm:$0xff] }
  0x8d   : > { %614 = vmatprep.subr.mxu1 %v412_v45  ;;  %502 = vmatpush2.msra.mxu0 %v347_v46  ;;  %v736_v39 = vld [vmem:[#allocation7 + $0x178] sm:$0xff]  ;;  %v733_v40 = vld [vmem:[#allocation7 + $0x160] sm:$0xff]  ;;  %v735_v41 = vld [vmem:[#allocation7 + $0x170] sm:$0xff] }
  0x8e   : > { %615 = vmatpush2.msra.mxu1 %v411_v47  ;;  %503 = vmatprep.subr.mxu0 %v346_v48  ;;  %v1792_v42 = vld [vmem:[%s1693_s15 + $0xa0] sm:$0xff]  ;;  %v1795_v43 = vld [vmem:[%s1693_s15 + $0xb0] sm:$0xff]  ;;  %v1798_v44 = vld [vmem:[%s1693_s15 + $0xc8] sm:$0xff] }
  0x8f   : > { %616 = vmatprep.subr.mxu1 %v410_v49  ;;  %504 = vmatpush2.msra.mxu0 %v345_v50  ;;  %v1801_v45 = vld [vmem:[%s1693_s15 + $0xd8] sm:$0xff]  ;;  %v730_v46 = vld [vmem:[#allocation7 + $0x148] sm:$0xff]  ;;  %v729_v48 = vld [vmem:[#allocation7 + $0x140] sm:$0xff] }
  0x90   : > { %617 = vmatpush2.msra.mxu1 %v409_v51  ;;  %505 = vmatprep.subr.mxu0 %v344_v52  ;;  %v732_v47 = vld [vmem:[#allocation7 + $0x158] sm:$0xff]  ;;  %v731_v49 = vld [vmem:[#allocation7 + $0x150] sm:$0xff]  ;;  %v1808_v50 = vld [vmem:[%s1693_s15 + $0xc0] sm:$0xff] }
  0x91   : > { %618 = vmatprep.subr.mxu1 %v408_v53  ;;  %506 = vmatpush2.msra.mxu0 %v343_v54  ;;  %v1811_v51 = vld [vmem:[%s1693_s15 + $0xd0] sm:$0xff]  ;;  %v1814_v52 = vld [vmem:[%s1693_s15 + $0xe8] sm:$0xff]  ;;  %v1817_v53 = vld [vmem:[%s1693_s15 + $0xf8] sm:$0xff] }
  0x92   : > { %619 = vmatpush2.msra.mxu1 %v407_v55  ;;  %507 = vmatprep.subr.mxu0 %v342_v56  ;;  %v726_v54 = vld [vmem:[#allocation7 + $0x128] sm:$0xff]  ;;  %v728_v55 = vld [vmem:[#allocation7 + $0x138] sm:$0xff]  ;;  %v725_v56 = vld [vmem:[#allocation7 + $0x120] sm:$0xff] }
  0x93   : > { %620 = vmatprep.subr.mxu1 %v406_v57  ;;  %508 = vmatpush2.msra.mxu0 %v341_v58  ;;  %v727_v57 = vld [vmem:[#allocation7 + $0x130] sm:$0xff]  ;;  %v1824_v58 = vld [vmem:[%s1693_s15 + $0xe0] sm:$0xff] }
  0x94   : > { %621 = vmatpush2.msra.mxu1 %v405_v59  ;;  %509 = vmatprep.subr.mxu0 %v340_v60  ;;  %v1827_v59 = vld [vmem:[%s1693_s15 + $0xf0] sm:$0xff]  ;;  %v722_v60 = vld [vmem:[#allocation7 + $0x108] sm:$0xff] }
  0x95   : > { %622 = vmatprep.subr.mxu1 %v404_v61  ;;  %510 = vmatpush2.msra.mxu0 %v339_v62  ;;  %v724_v61 = vld [vmem:[#allocation7 + $0x118] sm:$0xff]  ;;  %v721_v62 = vld [vmem:[#allocation7 + $0x100] sm:$0xff] }
  0x96   : > { %511 = vmatprep.mubr.f32.mxu0 %v1704_v63  ;;  %623 = vmatpush2.msra.mxu1 %v403_v0  ;;  %v723_v0 = vld [vmem:[#allocation7 + $0x110] sm:$0xff] }
  0x97   : > { %624 = vmatprep.mubr.f32.mxu1 %v1707_v1  ;;  %512 = vmatmul.mubr.f32.vlgmr.msra.gmra.mxu0 %v1710_v2 }
  0x98   : > { %625 = vmatmul.mubr.f32.vlgmr.msra.gmra.mxu1 %v1713_v3  ;;  %517 = vmatprep.mubr.f32.mxu0 %v1717_v4 }
  0x99   : > { %630 = vmatprep.mubr.f32.mxu1 %v1720_v5  ;;  %839 = vmatprep.subr.mxu0 %v750_v6  ;;  %v718_v6 = vld [vmem:[#allocation7 + $0xe8] sm:$0xff] }
  0x9a   : > { %952 = vmatprep.subr.mxu1 %v752_v7  ;;  %840 = vmatpush1.msra.mxu0 %v749_v8  ;;  %v720_v7 = vld [vmem:[#allocation7 + $0xf8] sm:$0xff]  ;;  %v717_v8 = vld [vmem:[#allocation7 + $0xe0] sm:$0xff] }
  0x9b   : > { %953 = vmatpush1.msra.mxu1 %v751_v9  ;;  %518 = vmatmul.mubr.f32.gmra.mxu0 %v1728_v10  ;;  %v719_v9 = vld [vmem:[#allocation7 + $0xf0] sm:$0xff] }
  0x9c   : > { %631 = vmatmul.mubr.f32.gmra.mxu1 %v1731_v11  ;;  %523 = vmatprep.mubr.f32.mxu0 %v1734_v12 }
  0x9d   : > { %636 = vmatprep.mubr.f32.mxu1 %v1737_v13  ;;  %841 = vmatprep.subr.mxu0 %v746_v14  ;;  %v714_v14 = vld [vmem:[#allocation7 + $0xc8] sm:$0xff] }
  0x9e   : > { %954 = vmatprep.subr.mxu1 %v748_v15  ;;  %842 = vmatpush1.msra.mxu0 %v745_v16  ;;  %v716_v15 = vld [vmem:[#allocation7 + $0xd8] sm:$0xff]  ;;  %v713_v16 = vld [vmem:[#allocation7 + $0xc0] sm:$0xff] }
  0x9f   : > { %955 = vmatpush1.msra.mxu1 %v747_v17  ;;  %524 = vmatmul.mubr.f32.gmra.mxu0 %v1744_v18  ;;  %v715_v17 = vld [vmem:[#allocation7 + $0xd0] sm:$0xff] }
  0xa0   : > { %637 = vmatmul.mubr.f32.gmra.mxu1 %v1747_v19  ;;  %529 = vmatprep.mubr.f32.mxu0 %v1750_v20 }
  0xa1   : > { %642 = vmatprep.mubr.f32.mxu1 %v1753_v21  ;;  %843 = vmatprep.subr.mxu0 %v742_v22  ;;  %v710_v22 = vld [vmem:[#allocation7 + $0xa8] sm:$0xff] }
  0xa2   : > { %956 = vmatprep.subr.mxu1 %v744_v23  ;;  %844 = vmatpush1.msra.mxu0 %v741_v24  ;;  %v712_v23 = vld [vmem:[#allocation7 + $0xb8] sm:$0xff]  ;;  %v709_v24 = vld [vmem:[#allocation7 + $0xa0] sm:$0xff] }
  0xa3   : > { %957 = vmatpush1.msra.mxu1 %v743_v25  ;;  %530 = vmatmul.mubr.f32.gmra.mxu0 %v1760_v26  ;;  %v711_v25 = vld [vmem:[#allocation7 + $0xb0] sm:$0xff] }
  0xa4   : > { %643 = vmatmul.mubr.f32.gmra.mxu1 %v1763_v27  ;;  %535 = vmatprep.mubr.f32.mxu0 %v1766_v28 }
  0xa5   : > { %648 = vmatprep.mubr.f32.mxu1 %v1769_v29  ;;  %845 = vmatprep.subr.mxu0 %v738_v30  ;;  %v706_v30 = vld [vmem:[#allocation7 + $0x88] sm:$0xff] }
  0xa6   : > { %958 = vmatprep.subr.mxu1 %v740_v31  ;;  %846 = vmatpush1.msra.mxu0 %v737_v32  ;;  %v708_v31 = vld [vmem:[#allocation7 + $0x98] sm:$0xff]  ;;  %v705_v32 = vld [vmem:[#allocation7 + $0x80] sm:$0xff] }
  0xa7   : > { %959 = vmatpush1.msra.mxu1 %v739_v33  ;;  %536 = vmatmul.mubr.f32.gmra.mxu0 %v1776_v34  ;;  %v707_v33 = vld [vmem:[#allocation7 + $0x90] sm:$0xff] }
  0xa8   : > { %649 = vmatmul.mubr.f32.gmra.mxu1 %v1779_v35  ;;  %541 = vmatprep.mubr.f32.mxu0 %v1782_v36 }
  0xa9   : > { %654 = vmatprep.mubr.f32.mxu1 %v1785_v37  ;;  %847 = vmatprep.subr.mxu0 %v734_v38  ;;  %v702_v38 = vld [vmem:[#allocation7 + $0x68] sm:$0xff] }
  0xaa   : > { %960 = vmatprep.subr.mxu1 %v736_v39  ;;  %848 = vmatpush1.msra.mxu0 %v733_v40  ;;  %v704_v39 = vld [vmem:[#allocation7 + $0x78] sm:$0xff]  ;;  %v701_v40 = vld [vmem:[#allocation7 + $0x60] sm:$0xff] }
  0xab   : > { %961 = vmatpush1.msra.mxu1 %v735_v41  ;;  %542 = vmatmul.mubr.f32.gmra.mxu0 %v1792_v42  ;;  %v703_v41 = vld [vmem:[#allocation7 + $0x70] sm:$0xff] }
  0xac   : > { %655 = vmatmul.mubr.f32.gmra.mxu1 %v1795_v43  ;;  %547 = vmatprep.mubr.f32.mxu0 %v1798_v44 }
  0xad   : > { %660 = vmatprep.mubr.f32.mxu1 %v1801_v45  ;;  %849 = vmatprep.subr.mxu0 %v730_v46  ;;  %v698_v46 = vld [vmem:[#allocation7 + $0x48] sm:$0xff] }
  0xae   : > { %962 = vmatprep.subr.mxu1 %v732_v47  ;;  %850 = vmatpush1.msra.mxu0 %v729_v48  ;;  %v700_v47 = vld [vmem:[#allocation7 + $0x58] sm:$0xff]  ;;  %v697_v48 = vld [vmem:[#allocation7 + $0x40] sm:$0xff] }
  0xaf   : > { %963 = vmatpush1.msra.mxu1 %v731_v49  ;;  %548 = vmatmul.mubr.f32.gmra.mxu0 %v1808_v50  ;;  %v699_v49 = vld [vmem:[#allocation7 + $0x50] sm:$0xff] }
  0xb0   : > { %661 = vmatmul.mubr.f32.gmra.mxu1 %v1811_v51  ;;  %553 = vmatprep.mubr.f32.mxu0 %v1814_v52 }
  0xb1   : > { %666 = vmatprep.mubr.f32.mxu1 %v1817_v53  ;;  %851 = vmatprep.subr.mxu0 %v726_v54  ;;  %v694_v54 = vld [vmem:[#allocation7 + $0x28] sm:$0xff] }
  0xb2   : > { %964 = vmatprep.subr.mxu1 %v728_v55  ;;  %852 = vmatpush1.msra.mxu0 %v725_v56  ;;  %v696_v55 = vld [vmem:[#allocation7 + $0x38] sm:$0xff]  ;;  %v693_v56 = vld [vmem:[#allocation7 + $0x20] sm:$0xff] }
  0xb3   : > { %965 = vmatpush1.msra.mxu1 %v727_v57  ;;  %554 = vmatmul.mubr.f32.gmra.mxu0 %v1824_v58  ;;  %v695_v57 = vld [vmem:[#allocation7 + $0x30] sm:$0xff] }
  0xb4   : > { %667 = vmatmul.mubr.f32.gmra.mxu1 %v1827_v59  ;;  %853 = vmatprep.subr.mxu0 %v722_v60  ;;  %v690_v60 = vld [vmem:[#allocation7 + $0x8] sm:$0xff] }
  0xb5   : > { %966 = vmatprep.subr.mxu1 %v724_v61  ;;  %854 = vmatpush1.msra.mxu0 %v721_v62  ;;  %v692_v61 = vld [vmem:[#allocation7 + $0x18] sm:$0xff]  ;;  %v689_v62 = vld [vmem:[#allocation7] sm:$0xff] }
  0xb6   : > { %967 = vmatpush1.msra.mxu1 %v723_v0  ;;  %855 = vmatprep.subr.mxu0 %v718_v6  ;;  %v691_v0 = vld [vmem:[#allocation7 + $0x10] sm:$0xff]  ;;  %v814_v6 = vld [vmem:[#allocation7 + $0x3e8] sm:$0xff] }
  0xb7   : > { %968 = vmatprep.subr.mxu1 %v720_v7  ;;  %856 = vmatpush1.msra.mxu0 %v717_v8  ;;  %v816_v7 = vld [vmem:[#allocation7 + $0x3f8] sm:$0xff]  ;;  %v813_v8 = vld [vmem:[#allocation7 + $0x3e0] sm:$0xff] }
  0xb8   : > { %969 = vmatpush1.msra.mxu1 %v719_v9  ;;  %857 = vmatprep.subr.mxu0 %v714_v14  ;;  %v815_v9 = vld [vmem:[#allocation7 + $0x3f0] sm:$0xff]  ;;  %v810_v14 = vld [vmem:[#allocation7 + $0x3c8] sm:$0xff] }
  0xb9   : > { %970 = vmatprep.subr.mxu1 %v716_v15  ;;  %858 = vmatpush1.msra.mxu0 %v713_v16  ;;  %v812_v15 = vld [vmem:[#allocation7 + $0x3d8] sm:$0xff]  ;;  %v809_v16 = vld [vmem:[#allocation7 + $0x3c0] sm:$0xff] }
  0xba   : > { %971 = vmatpush1.msra.mxu1 %v715_v17  ;;  %859 = vmatprep.subr.mxu0 %v710_v22  ;;  %v811_v17 = vld [vmem:[#allocation7 + $0x3d0] sm:$0xff]  ;;  %v806_v22 = vld [vmem:[#allocation7 + $0x3a8] sm:$0xff] }
  0xbb   : > { %972 = vmatprep.subr.mxu1 %v712_v23  ;;  %860 = vmatpush1.msra.mxu0 %v709_v24  ;;  %v808_v23 = vld [vmem:[#allocation7 + $0x3b8] sm:$0xff]  ;;  %v805_v24 = vld [vmem:[#allocation7 + $0x3a0] sm:$0xff] }
  0xbc   : > { %973 = vmatpush1.msra.mxu1 %v711_v25  ;;  %861 = vmatprep.subr.mxu0 %v706_v30  ;;  %v807_v25 = vld [vmem:[#allocation7 + $0x3b0] sm:$0xff]  ;;  %v802_v30 = vld [vmem:[#allocation7 + $0x388] sm:$0xff] }
  0xbd   : > { %974 = vmatprep.subr.mxu1 %v708_v31  ;;  %862 = vmatpush1.msra.mxu0 %v705_v32  ;;  %v804_v31 = vld [vmem:[#allocation7 + $0x398] sm:$0xff]  ;;  %v801_v32 = vld [vmem:[#allocation7 + $0x380] sm:$0xff] }
  0xbe   : > { %975 = vmatpush1.msra.mxu1 %v707_v33  ;;  %863 = vmatprep.subr.mxu0 %v702_v38  ;;  %v803_v33 = vld [vmem:[#allocation7 + $0x390] sm:$0xff]  ;;  %v798_v38 = vld [vmem:[#allocation7 + $0x368] sm:$0xff] }
  0xbf   : > { %976 = vmatprep.subr.mxu1 %v704_v39  ;;  %864 = vmatpush1.msra.mxu0 %v701_v40  ;;  %v800_v39 = vld [vmem:[#allocation7 + $0x378] sm:$0xff]  ;;  %v797_v40 = vld [vmem:[#allocation7 + $0x360] sm:$0xff] }
  0xc0   : > { %977 = vmatpush1.msra.mxu1 %v703_v41  ;;  %865 = vmatprep.subr.mxu0 %v698_v46  ;;  %v799_v41 = vld [vmem:[#allocation7 + $0x370] sm:$0xff]  ;;  %v794_v46 = vld [vmem:[#allocation7 + $0x348] sm:$0xff] }
  0xc1   : > { %978 = vmatprep.subr.mxu1 %v700_v47  ;;  %866 = vmatpush1.msra.mxu0 %v697_v48  ;;  %v796_v47 = vld [vmem:[#allocation7 + $0x358] sm:$0xff]  ;;  %v793_v48 = vld [vmem:[#allocation7 + $0x340] sm:$0xff] }
  0xc2   : > { %979 = vmatpush1.msra.mxu1 %v699_v49  ;;  %867 = vmatprep.subr.mxu0 %v694_v54  ;;  %v795_v49 = vld [vmem:[#allocation7 + $0x350] sm:$0xff]  ;;  %v790_v54 = vld [vmem:[#allocation7 + $0x328] sm:$0xff] }
  0xc3   : > { %980 = vmatprep.subr.mxu1 %v696_v55  ;;  %868 = vmatpush1.msra.mxu0 %v693_v56  ;;  %v792_v55 = vld [vmem:[#allocation7 + $0x338] sm:$0xff]  ;;  %v789_v56 = vld [vmem:[#allocation7 + $0x320] sm:$0xff] }
  0xc4   : > { %981 = vmatpush1.msra.mxu1 %v695_v57  ;;  %869 = vmatprep.subr.mxu0 %v690_v60  ;;  %v791_v57 = vld [vmem:[#allocation7 + $0x330] sm:$0xff]  ;;  %v786_v60 = vld [vmem:[#allocation7 + $0x308] sm:$0xff] }
  0xc5   : > { %982 = vmatprep.subr.mxu1 %v692_v61  ;;  %870 = vmatpush1.msra.mxu0 %v689_v62  ;;  %v788_v61 = vld [vmem:[#allocation7 + $0x318] sm:$0xff]  ;;  %v785_v62 = vld [vmem:[#allocation7 + $0x300] sm:$0xff] }
  0xc6   : > { %983 = vmatpush1.msra.mxu1 %v691_v0  ;;  %871 = vmatprep.subr.mxu0 %v814_v6  ;;  %v787_v0 = vld [vmem:[#allocation7 + $0x310] sm:$0xff]  ;;  %v782_v6 = vld [vmem:[#allocation7 + $0x2e8] sm:$0xff] }
  0xc7   : > { %984 = vmatprep.subr.mxu1 %v816_v7  ;;  %872 = vmatpush2.msra.mxu0 %v813_v8  ;;  %v784_v7 = vld [vmem:[#allocation7 + $0x2f8] sm:$0xff]  ;;  %v781_v8 = vld [vmem:[#allocation7 + $0x2e0] sm:$0xff] }
  0xc8   : > { %985 = vmatpush2.msra.mxu1 %v815_v9  ;;  %873 = vmatprep.subr.mxu0 %v810_v14  ;;  %v783_v9 = vld [vmem:[#allocation7 + $0x2f0] sm:$0xff]  ;;  %v778_v14 = vld [vmem:[#allocation7 + $0x2c8] sm:$0xff] }
  0xc9   : > { %986 = vmatprep.subr.mxu1 %v812_v15  ;;  %874 = vmatpush2.msra.mxu0 %v809_v16  ;;  %v780_v15 = vld [vmem:[#allocation7 + $0x2d8] sm:$0xff]  ;;  %v777_v16 = vld [vmem:[#allocation7 + $0x2c0] sm:$0xff] }
  0xca   : > { %987 = vmatpush2.msra.mxu1 %v811_v17  ;;  %875 = vmatprep.subr.mxu0 %v806_v22  ;;  %v779_v17 = vld [vmem:[#allocation7 + $0x2d0] sm:$0xff]  ;;  %v774_v22 = vld [vmem:[#allocation7 + $0x2a8] sm:$0xff] }
  0xcb   : > { %988 = vmatprep.subr.mxu1 %v808_v23  ;;  %876 = vmatpush2.msra.mxu0 %v805_v24  ;;  %v776_v23 = vld [vmem:[#allocation7 + $0x2b8] sm:$0xff]  ;;  %v773_v24 = vld [vmem:[#allocation7 + $0x2a0] sm:$0xff] }
  0xcc   : > { %989 = vmatpush2.msra.mxu1 %v807_v25  ;;  %877 = vmatprep.subr.mxu0 %v802_v30  ;;  %v775_v25 = vld [vmem:[#allocation7 + $0x2b0] sm:$0xff]  ;;  %v770_v30 = vld [vmem:[#allocation7 + $0x288] sm:$0xff] }
  0xcd   : > { %990 = vmatprep.subr.mxu1 %v804_v31  ;;  %878 = vmatpush2.msra.mxu0 %v801_v32  ;;  %v772_v31 = vld [vmem:[#allocation7 + $0x298] sm:$0xff]  ;;  %v769_v32 = vld [vmem:[#allocation7 + $0x280] sm:$0xff] }
  0xce   : > { %991 = vmatpush2.msra.mxu1 %v803_v33  ;;  %879 = vmatprep.subr.mxu0 %v798_v38  ;;  %v771_v33 = vld [vmem:[#allocation7 + $0x290] sm:$0xff]  ;;  %v766_v38 = vld [vmem:[#allocation7 + $0x268] sm:$0xff] }
  0xcf   : > { %992 = vmatprep.subr.mxu1 %v800_v39  ;;  %880 = vmatpush2.msra.mxu0 %v797_v40  ;;  %v768_v39 = vld [vmem:[#allocation7 + $0x278] sm:$0xff]  ;;  %v765_v40 = vld [vmem:[#allocation7 + $0x260] sm:$0xff] }
  0xd0   : > { %993 = vmatpush2.msra.mxu1 %v799_v41  ;;  %881 = vmatprep.subr.mxu0 %v794_v46  ;;  %v767_v41 = vld [vmem:[#allocation7 + $0x270] sm:$0xff]  ;;  %v762_v46 = vld [vmem:[#allocation7 + $0x248] sm:$0xff] }
  0xd1   : > { %994 = vmatprep.subr.mxu1 %v796_v47  ;;  %882 = vmatpush2.msra.mxu0 %v793_v48  ;;  %v764_v47 = vld [vmem:[#allocation7 + $0x258] sm:$0xff]  ;;  %v761_v48 = vld [vmem:[#allocation7 + $0x240] sm:$0xff] }
  0xd2   : > { %995 = vmatpush2.msra.mxu1 %v795_v49  ;;  %883 = vmatprep.subr.mxu0 %v790_v54  ;;  %v763_v49 = vld [vmem:[#allocation7 + $0x250] sm:$0xff]  ;;  %v758_v54 = vld [vmem:[#allocation7 + $0x228] sm:$0xff] }
  0xd3   : > { %996 = vmatprep.subr.mxu1 %v792_v55  ;;  %884 = vmatpush2.msra.mxu0 %v789_v56  ;;  %v760_v55 = vld [vmem:[#allocation7 + $0x238] sm:$0xff]  ;;  %v757_v56 = vld [vmem:[#allocation7 + $0x220] sm:$0xff] }
  0xd4   : > { %997 = vmatpush2.msra.mxu1 %v791_v57  ;;  %885 = vmatprep.subr.mxu0 %v786_v60  ;;  %v759_v57 = vld [vmem:[#allocation7 + $0x230] sm:$0xff]  ;;  %v754_v60 = vld [vmem:[#allocation7 + $0x208] sm:$0xff] }
  0xd5   : > { %998 = vmatprep.subr.mxu1 %v788_v61  ;;  %886 = vmatpush2.msra.mxu0 %v785_v62  ;;  %v756_v61 = vld [vmem:[#allocation7 + $0x218] sm:$0xff]  ;;  %v753_v62 = vld [vmem:[#allocation7 + $0x200] sm:$0xff] }
  0xd6   : > { %999 = vmatpush2.msra.mxu1 %v787_v0  ;;  %887 = vmatprep.subr.mxu0 %v782_v6  ;;  %v755_v0 = vld [vmem:[#allocation7 + $0x210] sm:$0xff]  ;;  %v437_v6 = vlaneseq }
  0xd7   : > { %1000 = vmatprep.subr.mxu1 %v784_v7  ;;  %888 = vmatpush2.msra.mxu0 %v781_v8 }
  0xd8   : > { %1001 = vmatpush2.msra.mxu1 %v783_v9  ;;  %889 = vmatprep.subr.mxu0 %v778_v14  ;;  %v1831_v7 = vshrl.u32 %v437_v6, 7  ;;  %v435_v9 = vld [vmem:[%s2030_s2] sm:$0x3] }
  0xd9   : > { %1002 = vmatprep.subr.mxu1 %v780_v15  ;;  %890 = vmatpush2.msra.mxu0 %v777_v16 }
  0xda   : > { %1003 = vmatpush2.msra.mxu1 %v779_v17  ;;  %891 = vmatprep.subr.mxu0 %v774_v22  ;;  %v439_v8 = vsub.s32 0, %v1831_v7  ;;  %v443_v14 = vsub.s32 1, %v1831_v7 }
  0xdb   : > { %1004 = vmatprep.subr.mxu1 %v776_v23  ;;  %892 = vmatpush2.msra.mxu0 %v773_v24 }
  0xdc   : > { %1005 = vmatpush2.msra.mxu1 %v775_v25  ;;  %893 = vmatprep.subr.mxu0 %v770_v30  ;;  %v1840_v15 = vrot.slane %v435_v9, %v439_v8  ;;  %v1844_v16 = vrot.slane %v435_v9, %v443_v14 }
  0xdd   : > { %1006 = vmatprep.subr.mxu1 %v772_v31  ;;  %894 = vmatpush2.msra.mxu0 %v769_v32 }
  0xde   : > { %1007 = vmatpush2.msra.mxu1 %v771_v33  ;;  %895 = vmatprep.subr.mxu0 %v766_v38 }
  0xdf   : > { %1008 = vmatprep.subr.mxu1 %v768_v39  ;;  %896 = vmatpush2.msra.mxu0 %v765_v40 }
  0xe0   : > { %1009 = vmatpush2.msra.mxu1 %v767_v41  ;;  %897 = vmatprep.subr.mxu0 %v762_v46 }
  0xe1   : > { %1010 = vmatprep.subr.mxu1 %v764_v47  ;;  %898 = vmatpush2.msra.mxu0 %v761_v48 }
  0xe2   : > { %1011 = vmatpush2.msra.mxu1 %v763_v49  ;;  %899 = vmatprep.subr.mxu0 %v758_v54 }
  0xe3   : > { %1012 = vmatprep.subr.mxu1 %v760_v55  ;;  %900 = vmatpush2.msra.mxu0 %v757_v56 }
  0xe4   : > { %1013 = vmatpush2.msra.mxu1 %v759_v57  ;;  %901 = vmatprep.subr.mxu0 %v754_v60 }
  0xe5   : > { %1014 = vmatprep.subr.mxu1 %v756_v61  ;;  %902 = vmatpush2.msra.mxu0 %v753_v62 }
  0xe6   : > { %1015 = vmatpush2.msra.mxu1 %v755_v0 }
 0x157   : > { %v513_v17 = vpop.f32.mrf.mxu0 }
 0x158   : > { %v626_v22 = vpop.f32.mrf.mxu1  ;;  %v514_v23 = vadd.f32 %v513_v17, %v1840_v15 }
 0x159   : > { %v515_v24 = vpop.f32.mrf.mxu0 }
 0x15a   : > { %v628_v25 = vpop.f32.mrf.mxu1  ;;  %v516_v30 = vadd.f32 %v515_v24, %v1844_v16  ;;  %v627_v31 = vadd.f32 %v626_v22, %v514_v23 }
 0x15b   : > { %v519_v32 = vpop.f32.mrf.mxu0 }
 0x15c   : > { %v632_v33 = vpop.f32.mrf.mxu1  ;;  %v629_v38 = vadd.f32 %v628_v25, %v516_v30  ;;  %v520_v39 = vadd.f32 %v519_v32, %v1840_v15  ;;  %v673_v48 = vmax.f32 %v627_v31, 0.0 }
 0x15d   : > { %v521_v40 = vpop.f32.mrf.mxu0 }
 0x15e   : > { %v634_v41 = vpop.f32.mrf.mxu1  ;;  %v674_v46 = vmax.f32 %v629_v38, 0.0  ;;  %v522_v47 = vadd.f32 %v521_v40, %v1844_v16  ;;  %v633_v49 = vadd.f32 %v632_v33, %v520_v39 }
 0x15f   : > { %v525_v54 = vpop.f32.mrf.mxu0 }
 0x160   : > { %v638_v55 = vpop.f32.mrf.mxu1  ;;  %v635_v56 = vadd.f32 %v634_v41, %v522_v47  ;;  %v526_v57 = vadd.f32 %v525_v54, %v1840_v15  ;;  %903 = vmatprep.mubr.f32.mxu0 %v674_v46  ;;  %1016 = vmatprep.mubr.f32.mxu1 %v674_v46  ;;  %v675_v6 = vmax.f32 %v633_v49, 0.0 }
 0x161   : > { %v527_v60 = vpop.f32.mrf.mxu0  ;;  %904 = vmatmul.mubr.f32.vlgmr.msra.gmra.mxu0 %v673_v48  ;;  %1017 = vmatmul.mubr.f32.vlgmr.msra.gmra.mxu1 %v673_v48 }
 0x162   : > { %v640_v61 = vpop.f32.mrf.mxu1  ;;  %v676_v62 = vmax.f32 %v635_v56, 0.0  ;;  %v528_v0 = vadd.f32 %v527_v60, %v1844_v16  ;;  %v639_v9 = vadd.f32 %v638_v55, %v526_v57 }
 0x163   : > { %v531_v17 = vpop.f32.mrf.mxu0 }
 0x164   : > { %v644_v22 = vpop.f32.mrf.mxu1  ;;  %v641_v23 = vadd.f32 %v640_v61, %v528_v0  ;;  %v532_v24 = vadd.f32 %v531_v17, %v1840_v15  ;;  %909 = vmatprep.mubr.f32.mxu0 %v676_v62  ;;  %1022 = vmatprep.mubr.f32.mxu1 %v676_v62  ;;  %v677_v33 = vmax.f32 %v639_v9, 0.0 }
 0x165   : > { %v533_v25 = vpop.f32.mrf.mxu0  ;;  %910 = vmatmul.mubr.f32.gmra.mxu0 %v675_v6  ;;  %1023 = vmatmul.mubr.f32.gmra.mxu1 %v675_v6 }
 0x166   : > { %v646_v30 = vpop.f32.mrf.mxu1  ;;  %v678_v31 = vmax.f32 %v641_v23, 0.0  ;;  %v534_v32 = vadd.f32 %v533_v25, %v1844_v16  ;;  %v645_v38 = vadd.f32 %v644_v22, %v532_v24 }
 0x167   : > { %v537_v39 = vpop.f32.mrf.mxu0 }
 0x168   : > { %v650_v40 = vpop.f32.mrf.mxu1  ;;  %v647_v41 = vadd.f32 %v646_v30, %v534_v32  ;;  %v538_v46 = vadd.f32 %v537_v39, %v1840_v15  ;;  %915 = vmatprep.mubr.f32.mxu0 %v678_v31  ;;  %1028 = vmatprep.mubr.f32.mxu1 %v678_v31  ;;  %v679_v55 = vmax.f32 %v645_v38, 0.0 }
 0x169   : > { %v539_v47 = vpop.f32.mrf.mxu0  ;;  %916 = vmatmul.mubr.f32.gmra.mxu0 %v677_v33  ;;  %1029 = vmatmul.mubr.f32.gmra.mxu1 %v677_v33 }
 0x16a   : > { %v652_v48 = vpop.f32.mrf.mxu1  ;;  %v680_v49 = vmax.f32 %v647_v41, 0.0  ;;  %v540_v54 = vadd.f32 %v539_v47, %v1844_v16  ;;  %v651_v56 = vadd.f32 %v650_v40, %v538_v46 }
 0x16b   : > { %v543_v57 = vpop.f32.mrf.mxu0 }
 0x16c   : > { %v656_v60 = vpop.f32.mrf.mxu1  ;;  %v653_v61 = vadd.f32 %v652_v48, %v540_v54  ;;  %v544_v62 = vadd.f32 %v543_v57, %v1840_v15  ;;  %921 = vmatprep.mubr.f32.mxu0 %v680_v49  ;;  %1034 = vmatprep.mubr.f32.mxu1 %v680_v49  ;;  %v681_v22 = vmax.f32 %v651_v56, 0.0 }
 0x16d   : > { %v545_v0 = vpop.f32.mrf.mxu0  ;;  %922 = vmatmul.mubr.f32.gmra.mxu0 %v679_v55  ;;  %1035 = vmatmul.mubr.f32.gmra.mxu1 %v679_v55 }
 0x16e   : > { %v658_v6 = vpop.f32.mrf.mxu1  ;;  %v682_v9 = vmax.f32 %v653_v61, 0.0  ;;  %v546_v17 = vadd.f32 %v545_v0, %v1844_v16  ;;  %v657_v23 = vadd.f32 %v656_v60, %v544_v62 }
 0x16f   : > { %v549_v24 = vpop.f32.mrf.mxu0 }
 0x170   : > { %v662_v25 = vpop.f32.mrf.mxu1  ;;  %v659_v30 = vadd.f32 %v658_v6, %v546_v17  ;;  %v550_v31 = vadd.f32 %v549_v24, %v1840_v15  ;;  %927 = vmatprep.mubr.f32.mxu0 %v682_v9  ;;  %1040 = vmatprep.mubr.f32.mxu1 %v682_v9  ;;  %v683_v40 = vmax.f32 %v657_v23, 0.0  ;;  %v833_v9 = vsub.s32 3, %v1831_v7 }
 0x171   : > { %v551_v32 = vpop.f32.mrf.mxu0  ;;  %928 = vmatmul.mubr.f32.gmra.mxu0 %v681_v22  ;;  %1041 = vmatmul.mubr.f32.gmra.mxu1 %v681_v22 }
 0x172   : > { %v664_v33 = vpop.f32.mrf.mxu1  ;;  %v684_v38 = vmax.f32 %v659_v30, 0.0  ;;  %v552_v39 = vadd.f32 %v551_v32, %v1844_v16  ;;  %v663_v41 = vadd.f32 %v662_v25, %v550_v31 }
 0x173   : > { %v555_v46 = vpop.f32.mrf.mxu0 }
 0x174   : > { %v668_v47 = vpop.f32.mrf.mxu1  ;;  %v665_v48 = vadd.f32 %v664_v33, %v552_v39  ;;  %v556_v49 = vadd.f32 %v555_v46, %v1840_v15  ;;  %933 = vmatprep.mubr.f32.mxu0 %v684_v38  ;;  %1046 = vmatprep.mubr.f32.mxu1 %v684_v38  ;;  %v685_v57 = vmax.f32 %v663_v41, 0.0  ;;  %v829_v15 = vsub.s32 2, %v1831_v7 }
 0x175   : > { %v557_v54 = vpop.f32.mrf.mxu0  ;;  %934 = vmatmul.mubr.f32.gmra.mxu0 %v683_v40  ;;  %1047 = vmatmul.mubr.f32.gmra.mxu1 %v683_v40 }
 0x176   : > { %v686_v55 = vmax.f32 %v665_v48, 0.0  ;;  %v558_v56 = vadd.f32 %v557_v54, %v1844_v16  ;;  %v669_v60 = vadd.f32 %v668_v47, %v556_v49  ;;  %v670_v61 = vpop.f32.mrf.mxu1  ;;  %v817_v16 = vld [vmem:[%s2032_s4] sm:$0xf] }
 0x177   : > { %v1869_v17 = vrot.slane %v817_v16, %v439_v8  ;;  %v1871_v22 = vrot.slane %v817_v16, %v829_v15  ;;  %v1875_v23 = vrot.slane %v817_v16, %v443_v14  ;;  %v1877_v24 = vrot.slane %v817_v16, %v833_v9 }
 0x178   : > { %v671_v62 = vadd.f32 %v670_v61, %v558_v56  ;;  %939 = vmatprep.mubr.f32.mxu0 %v686_v55  ;;  %1052 = vmatprep.mubr.f32.mxu1 %v686_v55  ;;  %v687_v6 = vmax.f32 %v669_v60, 0.0 }
 0x179   : > { %940 = vmatmul.mubr.f32.gmra.mxu0 %v685_v57  ;;  %1053 = vmatmul.mubr.f32.gmra.mxu1 %v685_v57 }
 0x17a   : > { %v688_v0 = vmax.f32 %v671_v62, 0.0 }
 0x17c   : > { %945 = vmatprep.mubr.f32.mxu0 %v688_v0  ;;  %1058 = vmatprep.mubr.f32.mxu1 %v688_v0 }
 0x17d   : > { %946 = vmatmul.mubr.f32.gmra.mxu0 %v687_v6  ;;  %1059 = vmatmul.mubr.f32.gmra.mxu1 %v687_v6 }
 0x221   : > { %v905_v25 = vpop.f32.mrf.mxu0  ;;  %v1018_v30 = vpop.f32.mrf.mxu1 }
 0x222   : > { %v906_v31 = vadd.f32 %v905_v25, %v1869_v17  ;;  %v1019_v32 = vadd.f32 %v1018_v30, %v1871_v22 }
 0x223   : > { %v907_v33 = vpop.f32.mrf.mxu0  ;;  %v1020_v38 = vpop.f32.mrf.mxu1 }
 0x224   : > { %v1065_v8 = vadd.f32 %v906_v31, %v1710_v2  ;;  %v1067_v39 = vadd.f32 %v1019_v32, %v1713_v3  ;;  %v908_v40 = vadd.f32 %v907_v33, %v1875_v23  ;;  %v1021_v7 = vadd.f32 %v1020_v38, %v1877_v24 }
 0x225   : > { %v911_v14 = vpop.f32.mrf.mxu0  ;;  %v1024_v41 = vpop.f32.mrf.mxu1 }
 0x226   : > { %v1097_v46 = vmax.f32 %v1065_v8, 0.0  ;;  %v1099_v47 = vmax.f32 %v1067_v39, 0.0  ;;  %v1066_v48 = vadd.f32 %v908_v40, %v1704_v63  ;;  %v1068_v49 = vadd.f32 %v1021_v7, %v1707_v1 }
 0x227   : > { %v912_v54 = vadd.f32 %v911_v14, %v1869_v17  ;;  %v1025_v55 = vadd.f32 %v1024_v41, %v1871_v22  ;;  %v913_v56 = vpop.f32.mrf.mxu0  ;;  %v1026_v2 = vpop.f32.mrf.mxu1 }
 0x228   : > { %1129 = vst [vmem:[%s1891_s12] sm:$0xff] %v1097_v46  ;;  %1131 = vst [vmem:[%s1891_s12 + $0x10] sm:$0xff] %v1099_v47  ;;  %v1098_v3 = vmax.f32 %v1066_v48, 0.0  ;;  %v1100_v57 = vmax.f32 %v1068_v49, 0.0  ;;  %v914_v63 = vadd.f32 %v913_v56, %v1875_v23  ;;  %v1027_v1 = vadd.f32 %v1026_v2, %v1877_v24 }
 0x229   : > { %v1069_v60 = vadd.f32 %v912_v54, %v1728_v10  ;;  %v1071_v61 = vadd.f32 %v1025_v55, %v1731_v11  ;;  %v917_v62 = vpop.f32.mrf.mxu0  ;;  %v1030_v0 = vpop.f32.mrf.mxu1 }
 0x22a   : > { %1130 = vst [vmem:[%s1891_s12 + $0x8] sm:$0xff] %v1098_v3  ;;  %1132 = vst [vmem:[%s1891_s12 + $0x18] sm:$0xff] %v1100_v57  ;;  %v1070_v6 = vadd.f32 %v914_v63, %v1717_v4  ;;  %v1072_v15 = vadd.f32 %v1027_v1, %v1720_v5  ;;  %v918_v16 = vadd.f32 %v917_v62, %v1869_v17 }
 0x22b   : > { %v1031_v9 = vadd.f32 %v1030_v0, %v1871_v22  ;;  %v1101_v25 = vmax.f32 %v1069_v60, 0.0  ;;  %v1103_v10 = vmax.f32 %v1071_v61, 0.0  ;;  %v919_v30 = vpop.f32.mrf.mxu0  ;;  %v1032_v11 = vpop.f32.mrf.mxu1 }
 0x22c   : > { %v1102_v31 = vmax.f32 %v1070_v6, 0.0  ;;  %v1104_v32 = vmax.f32 %v1072_v15, 0.0  ;;  %v1073_v33 = vadd.f32 %v918_v16, %v1744_v18  ;;  %v920_v4 = vadd.f32 %v919_v30, %v1875_v23 }
 0x22d   : > { %v1075_v38 = vadd.f32 %v1031_v9, %v1747_v19  ;;  %1133 = vst [vmem:[%s1891_s12 + $0x20] sm:$0xff] %v1101_v25  ;;  %1135 = vst [vmem:[%s1891_s12 + $0x30] sm:$0xff] %v1103_v10  ;;  %v1033_v5 = vadd.f32 %v1032_v11, %v1877_v24  ;;  %v923_v8 = vpop.f32.mrf.mxu0  ;;  %v1036_v39 = vpop.f32.mrf.mxu1 }
 0x22e   : > { %1134 = vst [vmem:[%s1891_s12 + $0x28] sm:$0xff] %v1102_v31  ;;  %1136 = vst [vmem:[%s1891_s12 + $0x38] sm:$0xff] %v1104_v32  ;;  %v1105_v40 = vmax.f32 %v1073_v33, 0.0  ;;  %v924_v14 = vadd.f32 %v923_v8, %v1869_v17  ;;  %v1037_v18 = vadd.f32 %v1036_v39, %v1871_v22  ;;  %v1074_v19 = vadd.f32 %v920_v4, %v1734_v12 }
 0x22f   : > { %v1107_v7 = vmax.f32 %v1075_v38, 0.0  ;;  %v1076_v41 = vadd.f32 %v1033_v5, %v1737_v13  ;;  %v925_v46 = vpop.f32.mrf.mxu0  ;;  %v1038_v47 = vpop.f32.mrf.mxu1 }
 0x230   : > { %1137 = vst [vmem:[%s1891_s12 + $0x40] sm:$0xff] %v1105_v40  ;;  %v1077_v48 = vadd.f32 %v924_v14, %v1760_v26  ;;  %v1079_v49 = vadd.f32 %v1037_v18, %v1763_v27  ;;  %v926_v54 = vadd.f32 %v925_v46, %v1875_v23  ;;  %v1039_v55 = vadd.f32 %v1038_v47, %v1877_v24 }
 0x231   : > { %1139 = vst [vmem:[%s1891_s12 + $0x50] sm:$0xff] %v1107_v7  ;;  %v1106_v56 = vmax.f32 %v1074_v19, 0.0  ;;  %v1108_v12 = vmax.f32 %v1076_v41, 0.0  ;;  %v929_v2 = vpop.f32.mrf.mxu0  ;;  %v1042_v13 = vpop.f32.mrf.mxu1 }
 0x232   : > { %v1109_v3 = vmax.f32 %v1077_v48, 0.0  ;;  %v1111_v57 = vmax.f32 %v1079_v49, 0.0  ;;  %v1078_v63 = vadd.f32 %v926_v54, %v1750_v20  ;;  %v1080_v1 = vadd.f32 %v1039_v55, %v1753_v21 }
 0x233   : > { %1138 = vst [vmem:[%s1891_s12 + $0x48] sm:$0xff] %v1106_v56  ;;  %1140 = vst [vmem:[%s1891_s12 + $0x58] sm:$0xff] %v1108_v12  ;;  %v930_v26 = vadd.f32 %v929_v2, %v1869_v17  ;;  %v1043_v27 = vadd.f32 %v1042_v13, %v1871_v22  ;;  %v931_v60 = vpop.f32.mrf.mxu0  ;;  %v1044_v61 = vpop.f32.mrf.mxu1 }
 0x234   : > { %1141 = vst [vmem:[%s1891_s12 + $0x60] sm:$0xff] %v1109_v3  ;;  %1143 = vst [vmem:[%s1891_s12 + $0x70] sm:$0xff] %v1111_v57  ;;  %v1110_v62 = vmax.f32 %v1078_v63, 0.0  ;;  %v1112_v0 = vmax.f32 %v1080_v1, 0.0  ;;  %v932_v6 = vadd.f32 %v931_v60, %v1875_v23  ;;  %v1045_v20 = vadd.f32 %v1044_v61, %v1877_v24 }
 0x235   : > { %v1081_v21 = vadd.f32 %v930_v26, %v1776_v34  ;;  %v1083_v15 = vadd.f32 %v1043_v27, %v1779_v35  ;;  %v935_v16 = vpop.f32.mrf.mxu0  ;;  %v1048_v9 = vpop.f32.mrf.mxu1 }
 0x236   : > { %1142 = vst [vmem:[%s1891_s12 + $0x68] sm:$0xff] %v1110_v62  ;;  %1144 = vst [vmem:[%s1891_s12 + $0x78] sm:$0xff] %v1112_v0  ;;  %v1082_v25 = vadd.f32 %v932_v6, %v1766_v28  ;;  %v1084_v10 = vadd.f32 %v1045_v20, %v1769_v29  ;;  %v936_v30 = vadd.f32 %v935_v16, %v1869_v17 }
 0x237   : > { %v1049_v11 = vadd.f32 %v1048_v9, %v1871_v22  ;;  %v1113_v31 = vmax.f32 %v1081_v21, 0.0  ;;  %v1115_v34 = vmax.f32 %v1083_v15, 0.0  ;;  %v937_v32 = vpop.f32.mrf.mxu0  ;;  %v1050_v35 = vpop.f32.mrf.mxu1 }
 0x238   : > { %v1114_v33 = vmax.f32 %v1082_v25, 0.0  ;;  %v1116_v38 = vmax.f32 %v1084_v10, 0.0  ;;  %v1085_v4 = vadd.f32 %v936_v30, %v1792_v42  ;;  %v938_v28 = vadd.f32 %v937_v32, %v1875_v23 }
 0x239   : > { %v1087_v5 = vadd.f32 %v1049_v11, %v1795_v43  ;;  %1145 = vst [vmem:[%s1891_s12 + $0x80] sm:$0xff] %v1113_v31  ;;  %1147 = vst [vmem:[%s1891_s12 + $0x90] sm:$0xff] %v1115_v34  ;;  %v1051_v29 = vadd.f32 %v1050_v35, %v1877_v24  ;;  %v941_v8 = vpop.f32.mrf.mxu0  ;;  %v1054_v39 = vpop.f32.mrf.mxu1 }
 0x23a   : > { %1146 = vst [vmem:[%s1891_s12 + $0x88] sm:$0xff] %v1114_v33  ;;  %1148 = vst [vmem:[%s1891_s12 + $0x98] sm:$0xff] %v1116_v38  ;;  %v1117_v40 = vmax.f32 %v1085_v4, 0.0  ;;  %v942_v14 = vadd.f32 %v941_v8, %v1869_v17  ;;  %v1055_v42 = vadd.f32 %v1054_v39, %v1871_v22  ;;  %v1086_v43 = vadd.f32 %v938_v28, %v1782_v36 }
 0x23b   : > { %v1119_v7 = vmax.f32 %v1087_v5, 0.0  ;;  %v1088_v18 = vadd.f32 %v1051_v29, %v1785_v37  ;;  %v943_v19 = vpop.f32.mrf.mxu0  ;;  %v1056_v41 = vpop.f32.mrf.mxu1 }
 0x23c   : > { %1149 = vst [vmem:[%s1891_s12 + $0xa0] sm:$0xff] %v1117_v40  ;;  %v1089_v46 = vadd.f32 %v942_v14, %v1808_v50  ;;  %v1091_v47 = vadd.f32 %v1055_v42, %v1811_v51  ;;  %v944_v48 = vadd.f32 %v943_v19, %v1875_v23  ;;  %v1057_v49 = vadd.f32 %v1056_v41, %v1877_v24 }
 0x23d   : > { %1151 = vst [vmem:[%s1891_s12 + $0xb0] sm:$0xff] %v1119_v7  ;;  %v1118_v54 = vmax.f32 %v1086_v43, 0.0  ;;  %v1120_v36 = vmax.f32 %v1088_v18, 0.0  ;;  %v947_v55 = vpop.f32.mrf.mxu0  ;;  %v1060_v37 = vpop.f32.mrf.mxu1 }
 0x23e   : > { %v1121_v56 = vmax.f32 %v1089_v46, 0.0  ;;  %v1123_v12 = vmax.f32 %v1091_v47, 0.0  ;;  %v1090_v2 = vadd.f32 %v944_v48, %v1798_v44  ;;  %v1092_v50 = vadd.f32 %v1057_v49, %v1801_v45 }
 0x23f   : > { %1150 = vst [vmem:[%s1891_s12 + $0xa8] sm:$0xff] %v1118_v54  ;;  %1152 = vst [vmem:[%s1891_s12 + $0xb8] sm:$0xff] %v1120_v36  ;;  %v948_v51 = vadd.f32 %v947_v55, %v1869_v17  ;;  %v1061_v13 = vadd.f32 %v1060_v37, %v1871_v22  ;;  %v949_v3 = vpop.f32.mrf.mxu0  ;;  %v1062_v57 = vpop.f32.mrf.mxu1 }
 0x240   : > { %1153 = vst [vmem:[%s1891_s12 + $0xc0] sm:$0xff] %v1121_v56  ;;  %1155 = vst [vmem:[%s1891_s12 + $0xd0] sm:$0xff] %v1123_v12  ;;  %v1122_v63 = vmax.f32 %v1090_v2, 0.0  ;;  %v1124_v1 = vmax.f32 %v1092_v50, 0.0  ;;  %v950_v26 = vadd.f32 %v949_v3, %v1875_v23  ;;  %v1063_v44 = vadd.f32 %v1062_v57, %v1877_v24 }
 0x241   : > { %v1093_v45 = vadd.f32 %v948_v51, %v1824_v58  ;;  %v1095_v17 = vadd.f32 %v1061_v13, %v1827_v59 }
 0x242   : > { %1154 = vst [vmem:[%s1891_s12 + $0xc8] sm:$0xff] %v1122_v63  ;;  %1156 = vst [vmem:[%s1891_s12 + $0xd8] sm:$0xff] %v1124_v1  ;;  %v1094_v22 = vadd.f32 %v950_v26, %v1814_v52  ;;  %v1096_v23 = vadd.f32 %v1063_v44, %v1817_v53 }
 0x243   : > { %v1125_v27 = vmax.f32 %v1093_v45, 0.0  ;;  %v1127_v60 = vmax.f32 %v1095_v17, 0.0 }
 0x244   : > { %v1126_v58 = vmax.f32 %v1094_v22, 0.0  ;;  %v1128_v59 = vmax.f32 %v1096_v23, 0.0 }
 0x245   : > { %1157 = vst [vmem:[%s1891_s12 + $0xe0] sm:$0xff] %v1125_v27  ;;  %1159 = vst [vmem:[%s1891_s12 + $0xf0] sm:$0xff] %v1127_v60 }
 0x246   : > { %1158 = vst [vmem:[%s1891_s12 + $0xe8] sm:$0xff] %v1126_v58  ;;  %1160 = vst [vmem:[%s1891_s12 + $0xf8] sm:$0xff] %v1128_v59 }
 0x247   : > { %1458 = shalt.err (!%p1455_p9)
}
 0x248   : > { %s1459_s15 = scalar_lea.hbm %s1980_s22, 4096  ;;  %s1463_s14 = scalar_lea.hbm %s2033_s5, 16384 }
 0x249   : > { %p1460_p12 = scmp.ne.s32.totalorder %s1980_s22, %s1459_s15  ;;  %p1464_p4 = scmp.lt.s32.totalorder %s1980_s22, %s2033_s5 }
 0x24a   : > { %p1465_p8 = scmp.lt.s32.totalorder %s1463_s14, %s1459_s15 }
 0x24b   : > { %p1461_p3 = pnand %p1460_p12, %p2051_p0 }
 0x24c   : > { %p1466_p7 = por %p1465_p8, %p1464_p4 }
 0x24d   : > { %p1462_p13 = pneg %p1461_p3 }
 0x24f   : > { %p1467_p10 = pnand %p1466_p7, %p1462_p13 }
 0x251   : > { %1470 = shalt.err (!%p1467_p10)
}
 0x252   : > { %s1523_s16 = smov 512   ;;  %s1524_s9 = smov 32  }
 0x253   : > { %1302 = dma.vmem_to_hbm [thread:$0]  (%p2051_p0), %s1982_s8, 4096, %s1980_s22, %s1162_s11, %s1523_s16, %s1523_s16, %s1524_s9  }
 0x254 PF: > { %p1324_p1 = scmp.ge.s32.totalorder %s1513_s21, 2  ;;  %s1191_s30 = sand.u32 1, %s1501_s18  }
 0x255   : > { %p2052_p2 = scmp.ne.s32.totalorder %s2040_s25, 0  ;;  %s1192_s27 = scalar_lea.sflag [#allocation4], %s1191_s30 }
 0x257   : > { %p1316_p6 = pnand %p1324_p1, %p2052_p2 }
 0x259   : > { %p1317_p11 = pneg %p1316_p6 }
 0x25b   : > { %1496 = dma.done.wait (%p1317_p11), %s1192_s27, 4096  }
 0x25c   : > { %1498 = vsyncadd (%p1317_p11), %s1192_s27, 4294963200  ;;  %p19_p5 = scmp.ge.s32.totalorder %s1629_s17, 6   ;;  %s2053_s18 = smov %s1505_s19 }
 0x25d   : > { %s2054_s19 = smov %s1509_s20  ;;  %s2055_s20 = smov %s1638_s28 }
 0x25e   : > { %s2056_s21 = smov %s1629_s17  ;;  %21 = sbr.rel (!%p19_p5) target bundleno = 6 (0x6), region = 93 }
 0x263   :  { %1197 = vsyncpa [#allocation3], 1 }
 0x264   :  { %1199 = vsyncpa [#allocation3 + $0x1], 1 }
 0x265   :  { %1200 = vsyncpa [#allocation6], 1 }
 0x266   :  { %1201 = vsyncpa [#allocation4], 1 }
 0x267   :  { %1203 = vsyncpa [#allocation4 + $0x1], 1 }

</bundles_post_ra>
